<compile_context>
chip_gen: v6e
topology: v6e:2x2x1
jax: 0.10.0
libtpu: 0.0.40
codegen_flags: <defaults>
</compile_context>

<pallas_src>
import functools

import jax
import jax.numpy as jnp
from jax.experimental import pallas as pl
from jax.experimental.pallas import tpu as pltpu


def pvam_kernel(x_ref, wfc_ref, bfc_ref, pos_ref, watt_ref, o_ref, wf_ref, *,
                ew_dtype):
    # Per grid step:
    #   x_ref   : (Bblk, T, C) bf16   batch block of word features
    #   wfc_ref : (C, C)       bf16   word_fc weight, transposed (wf = x @ W^T)
    #   bfc_ref : (1, C)       f32    word_fc bias
    #   pos_ref : (Lblk, C)    f32    chunk of the positional embedding table
    #   watt_ref: (1, C)       f32    atten_fc weight row
    #   o_ref   : (Bblk, Lblk, C)     output chunk
    #   wf_ref  : VMEM scratch (Bblk, T, C) f32 — persists across the L axis
    bblk, t, c = x_ref.shape
    lblk = pos_ref.shape[0]

    # word_fc once per batch block (L is the innermost, "arbitrary" axis):
    # one big bf16 MXU matmul with f32 accumulation, cached in VMEM.
    @pl.when(pl.program_id(1) == 0)
    def _():
        x2d = x_ref[...].reshape(bblk * t, c)                       # bf16
        wf2d = jnp.dot(x2d, wfc_ref[...],
                       preferred_element_type=jnp.float32)          # f32 accum
        wf2d = wf2d + bfc_ref[...].astype(jnp.float32)
        wf_ref[...] = wf2d.reshape(bblk, t, c)

    wf = wf_ref[...]                                                # (Bblk,T,C) f32
    wf_e = wf.astype(ew_dtype)
    pos = pos_ref[...].astype(ew_dtype)                             # (Lblk,C)
    watt = watt_ref[...].astype(ew_dtype).reshape(1, 1, 1, c)

    # Dominant O(B*L*T*C) chain: broadcast add + tanh (+ watt multiply) runs
    # in bf16 on v6e/v7x (bf16 VPU/EUP ~2x, half-size intermediate), f32 on v5e.
    add = jnp.tanh(wf_e[:, None, :, :] + pos[None, :, None, :])     # (Bblk,Lblk,T,C)
    # TODO(synk): routing this C-reduction through the MXU (add2d @ watt^T)
    # would free VALU/XLU slots, but the (M,1)->(...,T) result needs a lane
    # relayout; keep the VPU+XLU form until a bundle dump shows those slots
    # saturate first.
    scores = jnp.sum((add * watt).astype(jnp.float32), axis=-1)     # (Bblk,Lblk,T) f32
    # atten_fc bias is constant along the softmax (T) axis, so it cancels
    # exactly in softmax and has been removed from the kernel entirely.

    # Softmax stats in f32; normalization is deferred past the bmm so the
    # scale hits the lane-dense (Lblk, C) output, not the lane-sparse weights.
    m = jnp.max(scores, axis=-1, keepdims=True)
    e = jnp.exp(scores - m)
    denom = jnp.sum(e, axis=-1, keepdims=True)                      # (Bblk,Lblk,1)

    out = jnp.einsum("blt,btc->blc",
                     e.astype(jnp.bfloat16), wf.astype(jnp.bfloat16),
                     preferred_element_type=jnp.float32)            # MXU, f32 accum
    out = out * pl.reciprocal(denom, approx=True)                   # EUP, lane-dense
    o_ref[...] = out.astype(o_ref.dtype)


def pvam_forward(x, wfc_t, bfc, pos_emb, watt, batt=None, *, bblk=None, lblk=None):
    """PVAM forward. x: (B, T, C); returns (B, L, C) f32, L = pos_emb.shape[0].

    `batt` (atten_fc bias) is accepted for API parity but never used: it is a
    scalar added uniformly along the softmax axis, so it cancels exactly.
    """
    B, T, C = x.shape
    L = pos_emb.shape[0]

    device_kind = jax.devices()[0].device_kind.lower()
    is_v5 = "v5" in device_kind
    two_tc = ("v7" in device_kind) or ("7x" in device_kind)

    # bf16 elementwise only where the VPU/EUP support it natively (v6e/v7x);
    # on v5e it would just add converts with no throughput win.
    ew_dtype = jnp.float32 if is_v5 else jnp.bfloat16
    ew_bytes = jnp.dtype(ew_dtype).itemsize

    # --- Tile selection: biggest tiles that fit VMEM. Keep >= 2 batch steps
    # on v7x so both TensorCores get work; single fat step on 1-TC chips. ---
    if bblk is None:
        bblk = B // 2 if (two_tc and B >= 2 and B % 2 == 0) else B
    if lblk is None:
        lblk = L
    if B % bblk != 0:
        bblk = 1
    if (L % lblk != 0) or (lblk % 8 != 0 and lblk != L):
        lblk = L  # full L extent is always a legal block

    def footprint(bb, lb):
        return (2 * bb * T * C * 2                   # x block (bf16), double-buffered
                + 2 * lb * C * 4                     # pos chunk
                + 2 * (C * C * 2 + 2 * C * 4)        # weights, double-buffered
                + 2 * bb * lb * C * 4                # output block
                + bb * T * C * 4                     # wf scratch (f32)
                + 3 * bb * lb * T * C * ew_bytes)    # tanh/product intermediates

    def legal_l(lb):
        return lb >= 1 and L % lb == 0 and (lb % 8 == 0 or lb == L)

    vmem_budget = (40 if two_tc else 80) << 20       # v7x: 64 MiB physical VMEM
    while footprint(bblk, lblk) > vmem_budget:
        if lblk % 2 == 0 and lblk > 8 and legal_l(lblk // 2):
            lblk //= 2
        elif bblk % 2 == 0 and bblk > 1:
            bblk //= 2
        else:
            break

    grid = (B // bblk, L // lblk)

    # MXU operands in bf16 (native rate on v5e/v6e/v7x); accumulators stay f32.
    # Pre-casting x also halves its HBM->VMEM DMA bytes.
    x_in = x.astype(jnp.bfloat16)
    wfc_in = wfc_t.astype(jnp.bfloat16)
    bfc_in = bfc.astype(jnp.float32).reshape(1, C)
    pos_in = pos_emb.astype(jnp.float32)
    watt_in = watt.astype(jnp.float32).reshape(1, C)

    kernel = functools.partial(pvam_kernel, ew_dtype=ew_dtype)

    flops = (2 * B * T * C * C          # word_fc matmul
             + 3 * B * L * T * C        # broadcast add + watt mul + reduce
             + 2 * B * L * T * C)       # attention bmm
    transcendentals = B * L * T * C + B * L * T + B * L   # tanh + exp + rcp
    bytes_accessed = (x_in.size * 2 + wfc_in.size * 2 + bfc_in.size * 4
                      + pos_in.size * 4 + watt_in.size * 4 + B * L * C * 4)
    cost = pl.CostEstimate(flops=flops, transcendentals=transcendentals,
                           bytes_accessed=bytes_accessed)

    # TODO(synk): pipeline_mode=pl.Buffered(1) on the grid-invariant weight
    # specs would drop their redundant second buffer (matters on v7x's smaller
    # VMEM at large C); left at the default for maximally portable lowering.
    grid_spec = pltpu.PrefetchScalarGridSpec(
        num_scalar_prefetch=0,
        grid=grid,
        in_specs=[
            pl.BlockSpec((bblk, T, C), lambda b, l: (b, 0, 0)),    # x
            pl.BlockSpec((C, C), lambda b, l: (0, 0)),             # word_fc W^T
            pl.BlockSpec((1, C), lambda b, l: (0, 0)),             # word_fc bias
            pl.BlockSpec((lblk, C), lambda b, l: (l, 0)),          # pos-emb chunk
            pl.BlockSpec((1, C), lambda b, l: (0, 0)),             # atten_fc weight
        ],
        out_specs=pl.BlockSpec((bblk, lblk, C), lambda b, l: (b, l, 0)),
        scratch_shapes=[pltpu.VMEM((bblk, T, C), jnp.float32)],    # cached word_fc
    )

    vmem_limit = min(max(2 * footprint(bblk, lblk) + (16 << 20), 32 << 20),
                     (48 << 20) if two_tc else (100 << 20))

    # TODO(synk): output could be emitted in bf16 to halve writeback if the
    # downstream consumer accepts it; kept f32 to match the PyTorch module.
    return pl.pallas_call(
        kernel,
        out_shape=jax.ShapeDtypeStruct((B, L, C), jnp.float32),
        grid_spec=grid_spec,
        compiler_params=pltpu.CompilerParams(
            dimension_semantics=("parallel", "arbitrary"),
            vmem_limit_bytes=int(vmem_limit)),
        cost_estimate=cost,
    )(x_in, wfc_in, bfc_in, pos_in, watt_in)


def pvam_reference(x, wfc_t, bfc, pos_emb, watt, batt):
    """Pure-JAX f32 reference mirroring the PyTorch forward (incl. batt)."""
    wf = jnp.einsum("btc,cd->btd", x, wfc_t) + bfc                  # (B, T, C)
    add = jnp.tanh(wf[:, None, :, :] + pos_emb[None, :, None, :])   # (B, L, T, C)
    scores = jnp.einsum("bltc,c->blt", add, watt[0]) + batt[0, 0]   # (B, L, T)
    attn = jax.nn.softmax(scores, axis=2)
    return jnp.einsum("blt,btc->blc", attn, wf)                     # (B, L, C)


if __name__ == "__main__":
    # Small shapes, but lane-dense C (multiple of 128) and an even batch so the
    # "parallel" axis can be split across two TensorCores on v7x.
    B, T, C = 4, 16, 128
    L = 16  # max_len_labels

    key = jax.random.PRNGKey(0)
    k_x, k_wfc, k_bfc, k_pos, k_watt, k_batt = jax.random.split(key, 6)

    x = jax.random.normal(k_x, (B, T, C), dtype=jnp.float32)

    # word_fc: Linear(C, C). Torch stores weight (out, in); kernel takes W^T.
    wfc = 0.1 * jax.random.normal(k_wfc, (C, C), dtype=jnp.float32)
    wfc_t = wfc.T
    bfc = 0.1 * jax.random.normal(k_bfc, (1, C), dtype=jnp.float32)

    # word_pos_embedding_layer: Embedding(L, C); indices are arange(L), so the
    # whole table is consumed in order — no gather needed.
    pos_emb = 0.1 * jax.random.normal(k_pos, (L, C), dtype=jnp.float32)

    # atten_fc: Linear(C, 1). Torch weight (1, C) -> row vector; bias cancels.
    watt = 0.1 * jax.random.normal(k_watt, (1, C), dtype=jnp.float32)
    batt = 0.1 * jax.random.normal(k_batt, (1, 1), dtype=jnp.float32)

    out = pvam_forward(x, wfc_t, bfc, pos_emb, watt, batt)
    out = jax.block_until_ready(out)

    ref = pvam_reference(x, wfc_t, bfc, pos_emb, watt, batt)
    assert out.shape == (B, L, C), out.shape
    max_err = float(jnp.max(jnp.abs(out - ref)))
    # bf16 MXU operands + bf16 tanh/add chain (on v6e/v7x) + approximate EUP
    # reciprocal => loosened tolerance against the pure-f32 reference.
    assert jnp.allclose(out, ref, atol=5e-2, rtol=5e-2), (
        f"mismatch vs reference, max abs err {max_err}")

    print("KERNEL_OK")
</pallas_src>

<mosaic_0001>
module attributes {stable_mosaic.version = 11 : i64} {
  func.func @pvam_kernel(%arg0: i32, %arg1: i32, %arg2: memref<4x16x128xbf16, #tpu.memory_space<vmem>>, %arg3: memref<128x128xbf16, #tpu.memory_space<vmem>>, %arg4: memref<1x128xf32, #tpu.memory_space<vmem>>, %arg5: memref<16x128xf32, #tpu.memory_space<vmem>>, %arg6: memref<1x128xf32, #tpu.memory_space<vmem>>, %arg7: memref<4x16x128xf32, #tpu.memory_space<vmem>>, %arg8: memref<4x16x128xf32, #tpu.memory_space<vmem>>) attributes {dimension_semantics = [#tpu.dimension_semantics<parallel>, #tpu.dimension_semantics<arbitrary>], iteration_bounds = array<i64: 1, 1>, scalar_prefetch = 0 : i64, scratch_operands = 1 : i64, tpu.core_type = #tpu.core_type<tc>, window_params = [{transform_indices = @transform_0, window_bounds = array<i64: 4, 16, 128>}, {pipeline_mode = #tpu.pipeline_mode<synchronous>, transform_indices = @transform_1, window_bounds = array<i64: 128, 128>}, {pipeline_mode = #tpu.pipeline_mode<synchronous>, transform_indices = @transform_2, window_bounds = array<i64: 1, 128>}, {transform_indices = @transform_3, window_bounds = array<i64: 16, 128>}, {pipeline_mode = #tpu.pipeline_mode<synchronous>, transform_indices = @transform_4, window_bounds = array<i64: 1, 128>}, {transform_indices = @transform_5, window_bounds = array<i64: 4, 16, 128>}]} {
    %c0_i32 = arith.constant 0 : i32
    %0 = arith.cmpi eq, %arg1, %c0_i32 : i32
    %1 = arith.extui %0 : i1 to i32
    %c0_i32_0 = arith.constant 0 : i32
    %2 = arith.cmpi ne, %1, %c0_i32_0 : i32
    scf.if %2 {
      %c0_13 = arith.constant 0 : index
      %c0_14 = arith.constant 0 : index
      %c0_15 = arith.constant 0 : index
      %34 = vector.load %arg2[%c0_13, %c0_14, %c0_15] : memref<4x16x128xbf16, #tpu.memory_space<vmem>>, vector<4x16x128xbf16>
      %35 = vector.shape_cast %34 : vector<4x16x128xbf16> to vector<64x128xbf16>
      %c0_16 = arith.constant 0 : index
      %c0_17 = arith.constant 0 : index
      %36 = vector.load %arg3[%c0_16, %c0_17] : memref<128x128xbf16, #tpu.memory_space<vmem>>, vector<128x128xbf16>
      %cst_18 = arith.constant dense<0.000000e+00> : vector<64x128xf32>
      %37 = tpu.matmul %35, %36, %cst_18 {dimension_numbers = #tpu.dot_dimension_numbers<[1], [0], [0], [1], [0, 0, 1, 1], [], []>} : vector<64x128xbf16>, vector<128x128xbf16>, vector<64x128xf32> -> vector<64x128xf32>
      %c0_19 = arith.constant 0 : index
      %c0_20 = arith.constant 0 : index
      %38 = vector.load %arg4[%c0_19, %c0_20] : memref<1x128xf32, #tpu.memory_space<vmem>>, vector<1x128xf32>
      %39 = vector.broadcast %38 : vector<1x128xf32> to vector<64x128xf32>
      %40 = arith.addf %37, %39 : vector<64x128xf32>
      %41 = vector.shape_cast %40 : vector<64x128xf32> to vector<4x16x128xf32>
      %c0_21 = arith.constant 0 : index
      %c0_22 = arith.constant 0 : index
      %c0_23 = arith.constant 0 : index
      %42 = vector.load %arg8[%c0_21, %c0_22, %c0_23] : memref<4x16x128xf32, #tpu.memory_space<vmem>>, vector<4x16x128xf32>
      tpu.vector_store %arg8[%c0_21, %c0_22, %c0_23], %41 {strides = array<i32>} : memref<4x16x128xf32, #tpu.memory_space<vmem>>, vector<4x16x128xf32>,
    } else {
    }
    %c0 = arith.constant 0 : index
    %c0_1 = arith.constant 0 : index
    %c0_2 = arith.constant 0 : index
    %3 = vector.load %arg8[%c0, %c0_1, %c0_2] : memref<4x16x128xf32, #tpu.memory_space<vmem>>, vector<4x16x128xf32>
    %4 = arith.truncf %3 : vector<4x16x128xf32> to vector<4x16x128xbf16>
    %c0_3 = arith.constant 0 : index
    %c0_4 = arith.constant 0 : index
    %5 = vector.load %arg5[%c0_3, %c0_4] : memref<16x128xf32, #tpu.memory_space<vmem>>, vector<16x128xf32>
    %6 = arith.truncf %5 : vector<16x128xf32> to vector<16x128xbf16>
    %c0_5 = arith.constant 0 : index
    %c0_6 = arith.constant 0 : index
    %7 = vector.load %arg6[%c0_5, %c0_6] : memref<1x128xf32, #tpu.memory_space<vmem>>, vector<1x128xf32>
    %8 = arith.truncf %7 : vector<1x128xf32> to vector<1x128xbf16>
    %9 = vector.shape_cast %8 : vector<1x128xbf16> to vector<1x1x1x128xbf16>
    %10 = vector.shape_cast %4 : vector<4x16x128xbf16> to vector<4x1x16x128xbf16>
    %11 = vector.shape_cast %6 : vector<16x128xbf16> to vector<1x16x1x128xbf16>
    %12 = vector.broadcast %10 : vector<4x1x16x128xbf16> to vector<4x16x16x128xbf16>
    %13 = vector.broadcast %11 : vector<1x16x1x128xbf16> to vector<4x16x16x128xbf16>
    %14 = arith.addf %12, %13 : vector<4x16x16x128xbf16>
    %15 = math.tanh %14 : vector<4x16x16x128xbf16>
    %16 = vector.broadcast %9 : vector<1x1x1x128xbf16> to vector<4x16x16x128xbf16>
    %17 = arith.mulf %15, %16 : vector<4x16x16x128xbf16>
    %18 = arith.extf %17 : vector<4x16x16x128xbf16> to vector<4x16x16x128xf32>
    %cst = arith.constant dense<0.000000e+00> : vector<4x16x16xf32>
    %19 = vector.multi_reduction <add>, %18, %cst [3] : vector<4x16x16x128xf32> to vector<4x16x16xf32>
    %cst_7 = arith.constant dense<0xFF800000> : vector<4x16xf32>
    %20 = vector.multi_reduction <maximumf>, %19, %cst_7 [2] : vector<4x16x16xf32> to vector<4x16xf32>
    %21 = vector.shape_cast %20 : vector<4x16xf32> to vector<4x16x1xf32>
    %22 = vector.broadcast %21 : vector<4x16x1xf32> to vector<4x16x16xf32>
    %23 = arith.subf %19, %22 : vector<4x16x16xf32>
    %24 = math.exp %23 : vector<4x16x16xf32>
    %cst_8 = arith.constant dense<0.000000e+00> : vector<4x16xf32>
    %25 = vector.multi_reduction <add>, %24, %cst_8 [2] : vector<4x16x16xf32> to vector<4x16xf32>
    %26 = vector.shape_cast %25 : vector<4x16xf32> to vector<4x16x1xf32>
    %27 = arith.truncf %24 : vector<4x16x16xf32> to vector<4x16x16xbf16>
    %28 = arith.truncf %3 : vector<4x16x128xf32> to vector<4x16x128xbf16>
    "tpu.trace_start"() <{level = 10 : i32, message = "blt,btc->blc"}> : () -> ()
    %cst_9 = arith.constant dense<0.000000e+00> : vector<4x16x128xf32>
    %29 = tpu.matmul %27, %28, %cst_9 {dimension_numbers = #tpu.dot_dimension_numbers<[2], [1], [1], [2], [0, 0, 0, 1, 1, 2], [0], [0]>} : vector<4x16x16xbf16>, vector<4x16x128xbf16>, vector<4x16x128xf32> -> vector<4x16x128xf32>
    "tpu.trace_stop"() : () -> ()
    %30 = tpu.reciprocal %26 {approx = true} : vector<4x16x1xf32> -> vector<4x16x1xf32>
    %31 = vector.broadcast %30 : vector<4x16x1xf32> to vector<4x16x128xf32>
    %32 = arith.mulf %29, %31 : vector<4x16x128xf32>
    %c0_10 = arith.constant 0 : index
    %c0_11 = arith.constant 0 : index
    %c0_12 = arith.constant 0 : index
    %33 = vector.load %arg7[%c0_10, %c0_11, %c0_12] : memref<4x16x128xf32, #tpu.memory_space<vmem>>, vector<4x16x128xf32>
    tpu.vector_store %arg7[%c0_10, %c0_11, %c0_12], %32 {strides = array<i32>} : memref<4x16x128xf32, #tpu.memory_space<vmem>>, vector<4x16x128xf32>,
    return
  }
  func.func @transform_0(%arg0: i32, %arg1: i32) -> (i32, i32, i32) {
    %c0_i32 = arith.constant 0 : i32
    %c0_i32_0 = arith.constant 0 : i32
    %c0_i32_1 = arith.constant 0 : i32
    return %arg0, %c0_i32, %c0_i32_0 : i32, i32, i32
  }
  func.func @transform_1(%arg0: i32, %arg1: i32) -> (i32, i32) {
    %c0_i32 = arith.constant 0 : i32
    %c0_i32_0 = arith.constant 0 : i32
    %c0_i32_1 = arith.constant 0 : i32
    return %c0_i32, %c0_i32_0 : i32, i32
  }
  func.func @transform_2(%arg0: i32, %arg1: i32) -> (i32, i32) {
    %c0_i32 = arith.constant 0 : i32
    %c0_i32_0 = arith.constant 0 : i32
    %c0_i32_1 = arith.constant 0 : i32
    return %c0_i32, %c0_i32_0 : i32, i32
  }
  func.func @transform_3(%arg0: i32, %arg1: i32) -> (i32, i32) {
    %c0_i32 = arith.constant 0 : i32
    %c0_i32_0 = arith.constant 0 : i32
    return %arg1, %c0_i32 : i32, i32
  }
  func.func @transform_4(%arg0: i32, %arg1: i32) -> (i32, i32) {
    %c0_i32 = arith.constant 0 : i32
    %c0_i32_0 = arith.constant 0 : i32
    %c0_i32_1 = arith.constant 0 : i32
    return %c0_i32, %c0_i32_0 : i32, i32
  }
  func.func @transform_5(%arg0: i32, %arg1: i32) -> (i32, i32, i32) {
    %c0_i32 = arith.constant 0 : i32
    %c0_i32_0 = arith.constant 0 : i32
    return %arg0, %arg1, %c0_i32 : i32, i32, i32
  }
}

</mosaic_0001>

<bundles_post_ra>
// kernel: tpu_custom_call.1
= control target key start
LH: loop header
LB: loop body
LE: loop exit
PB: predicated region body
PF: predicated region fallthrough
CT: control target
= control target key end

     0   :  { %10 = vsyncpa [#allocation4], 0  ;;  %s9196_s0 = inlined_call_operand.hbm [shape: bf16[4,16,128], index: 0, kind: input, shape index: {}]   ;;  %s9197_s1 = inlined_call_operand.hbm [shape: bf16[128,128], index: 1, kind: input, shape index: {}]   ;;  %s9198_s2 = inlined_call_operand.vmem [shape: f32[1,128], index: 2, kind: input, shape index: {}]   ;;  %s9199_s3 = inlined_call_operand.hbm [shape: f32[16,128], index: 3, kind: input, shape index: {}]   ;;  %s9200_s4 = inlined_call_operand.vmem [shape: f32[1,128], index: 4, kind: input, shape index: {}]   ;;  %s9201_s5 = inlined_call_operand.hbm [shape: f32[4,16,128], index: 5, kind: output, shape index: {}]  }
   0x1   :  { %11 = vsyncpa [#allocation7], 0 }
   0x2   :  { %12 = vsyncpa [#allocation5], 0  ;;  %s5893_s18 = smov [#allocation6]   ;;  %s5894_s20 = smov [#allocation3]  }
   0x3   :  { %s30_s19 = sshll.u32 %s5893_s18, 4  ;;  %s18_s21 = sshll.u32 %s5894_s20, 4  ;;  %s31_s19 = int_to_ptr.vmem [resolvable:$true] %s30_s19  ;;  %s19_s21 = int_to_ptr.vmem [resolvable:$true] %s18_s21 }
   0x4   :  { %s5815_s22 = scalar_lea.vmem %s31_s19, 1024  ;;  %p5820_p1 = scmp.lt.s32.totalorder %s31_s19, %s31_s19 }
   0x5   :  { %p5816_p0 = scmp.ne.s32.totalorder %s31_s19, %s5815_s22  ;;  %p5821_p2 = scmp.lt.s32.totalorder %s5815_s22, %s5815_s22 }
   0x7   :  { %p5822_p3 = por %p5821_p2, %p5820_p1 }
   0x9   :  { %p5823_p4 = pnand %p5822_p3, %p5816_p0 }
   0xb   :  { %5826 = shalt.err (!%p5823_p4)
}
   0xc   :  { %s5895_s23 = smov 64   ;;  %s5896_s24 = smov 4  }
   0xd   :  { %36 = dma.hbm_to_vmem [thread:$0]  %s9197_s1, 1024, %s31_s19, [#allocation7], %s5895_s23, %s5895_s23, %s5896_s24  }
   0xe   :  { %s5835_s27 = scalar_lea.vmem %s19_s21, 512  ;;  %p5840_p6 = scmp.lt.s32.totalorder %s19_s21, %s19_s21 }
   0xf   :  { %p5836_p5 = scmp.ne.s32.totalorder %s19_s21, %s5835_s27  ;;  %p5841_p7 = scmp.lt.s32.totalorder %s5835_s27, %s5835_s27 }
  0x11   :  { %p5842_p8 = por %p5841_p7, %p5840_p6 }
  0x13   :  { %p5843_p9 = pnand %p5842_p8, %p5836_p5 }
  0x15   :  { %5846 = shalt.err (!%p5843_p9)
}
  0x16   :  { %24 = dma.hbm_to_vmem [thread:$0]  %s9196_s0, 512, %s19_s21, [#allocation4], %s5895_s23, %s5895_s23, %s5896_s24  }
  0x17   :  { %s5897_s30 = smov [#allocation8]  }
  0x18   :  { %s44_s6 = sshll.u32 %s5897_s30, 4  ;;  %s45_s6 = int_to_ptr.vmem [resolvable:$true] %s44_s6 }
  0x19   :  { %s5855_s7 = scalar_lea.vmem %s45_s6, 256  ;;  %p5860_p11 = scmp.lt.s32.totalorder %s45_s6, %s45_s6 }
  0x1a   :  { %p5856_p10 = scmp.ne.s32.totalorder %s45_s6, %s5855_s7  ;;  %p5861_p12 = scmp.lt.s32.totalorder %s5855_s7, %s5855_s7 }
  0x1c   :  { %p5862_p13 = por %p5861_p12, %p5860_p11 }
  0x1e   :  { %p5863_p0 = pnand %p5862_p13, %p5856_p10 }
  0x20   :  { %5866 = shalt.err (!%p5863_p0)
}
  0x21   :  { %s5898_s1 = smov 128   ;;  %s5899_s8 = smov 8  }
  0x22   :  { %50 = dma.hbm_to_vmem [thread:$0]  %s9199_s3, 256, %s45_s6, [#allocation7], %s5898_s1, %s5898_s1, %s5899_s8  }
  0x23   :  { %5887 = dma.done.wait [#allocation4], 512  }
  0x24   :  { %5888 = vsyncadd [#allocation4], 4294966784 }
  0x25   :  { %5889 = dma.done.wait [#allocation7], 1280  }
  0x26   :  { %5890 = vsyncadd [#allocation7], 4294966016  ;;  %v5395_v0 = vld [vmem:[#allocation6 + $0x38] sm:$0xff]   ;;  %v5396_v1 = vld [vmem:[#allocation6 + $0x30] sm:$0xff]   ;;  %v9202_v12 = vmov 0.0   ;;  %v265_v15 = vlaneseq  ;;  %vm1240_vm0 = vcmask 130112  }
  0x27   :  { %5333 = vmatprep.subr.bf16.mxu0 %v5395_v0  ;;  %v5397_v2 = vld [vmem:[#allocation6 + $0x28] sm:$0xff]   ;;  %v5398_v3 = vld [vmem:[#allocation6 + $0x20] sm:$0xff]   ;;  %v5399_v5 = vld [vmem:[#allocation6 + $0x18] sm:$0xff]   ;;  %5357 = vmatprep.subr.bf16.mxu1 %v9202_v12  ;;  %v5901_v13 = vmov 1966171168   ;;  %vm1809_vm1 = vcmask 1041409  }
  0x28   :  { %5334 = vmatpush3.bf16.msra.mxu0 %v5395_v0  ;;  %v5403_v4 = vld [vmem:[#allocation3] sm:$0xff]   ;;  %v5400_v6 = vld [vmem:[#allocation6 + $0x10] sm:$0xff]   ;;  %v5401_v7 = vld [vmem:[#allocation6 + $0x8] sm:$0xff]   ;;  %v263_v14 = vunpack.c.l.s4 %v5901_v13  ;;  %v5949_v17 = vshrl.u32 %v265_v15, 7  ;;  %vm1811_vm2 = vcmask 1042434   ;;  %vm1813_vm3 = vcmask 1043459  }
  0x29   :  { %5335 = vmatprep.subr.bf16.mxu0 %v5396_v1  ;;  %5349 = vmatprep.mubr.bf16.mxu0 %v5403_v4  ;;  %v5402_v8 = vld [vmem:[#allocation6] sm:$0xff]   ;;  %v5404_v9 = vld [vmem:[#allocation3 + $0x8] sm:$0xff]   ;;  %v5405_v10 = vld [vmem:[#allocation3 + $0x10] sm:$0xff]   ;;  %vm1815_vm4 = vcmask 1044484   ;;  %vm1817_vm5 = vcmask 1045509   ;;  %vm1819_vm6 = vcmask 1046534  }
  0x2a   :  { %v5406_v11 = vld [vmem:[#allocation3 + $0x18] sm:$0xff]   ;;  %v264_v16 = vunpack.c.0.s8 %v263_v14  ;;  %9393 = vst [vmem:[#allocation13_spill] sm:$0xff] %v5949_v17  ;;  %v255_v18 = vld [vmem:[#allocation8] sm:$0xff]  ;;  %v256_v19 = vld [vmem:[#allocation8 + $0x8] sm:$0xff]  ;;  %v5953_v32 = vsub.s32 0, %v5949_v17  ;;  %vm1821_vm7 = vcmask 1047559  }
  0x2b   :  { %v257_v20 = vpack.c.bf16 %v256_v19, %v255_v18  ;;  %v5300_v24 = vpack.c.bf16 %v256_v19, %v256_v19  ;;  %vm1880_vm8 = vcmask 130048   ;;  %vm5903_vm9 = vmmov 0  }
  0x2c   :  { %5336 = vmatpush3.bf16.msra.mxu0 %v5396_v1  ;;  %v267_v21 = vsub.s32 %v264_v16, %v5949_v17  ;;  %9394 = vst [vmem:[#allocation14_spill] sm:$0xff] %v5953_v32 }
  0x2d   :  { %5337 = vmatprep.subr.bf16.mxu0 %v5397_v2 }
  0x2e   :  { %v268_v22 = vrot.slane %v257_v20, %v267_v21  ;;  %v275_v28 = vrot.slane %v5300_v24, %v267_v21 }
  0x30   :  { %5338 = vmatpush3.bf16.msra.mxu0 %v5397_v2  ;;  %v276_v23 = vcombine.high %v268_v22, %v268_v22  ;;  %v284_v25 = vrot.slane %v268_v22, %v267_v21  ;;  %v277_v36 = vcombine.high %v275_v28, %v275_v28  ;;  %v291_v41 = vrot.slane %v275_v28, %v267_v21 }
  0x31   :  { %5339 = vmatprep.subr.bf16.mxu0 %v5398_v3 }
  0x32   :  { %v311_v26 = vunpack.i.h.s16 %v284_v25  ;;  %v298_v27 = vrot.slane %v276_v23, %v267_v21  ;;  %v306_v30 = vcombine.high %v284_v25, %v284_v25  ;;  %v5301_v31 = vpack.i.b16 %v284_v25, %v284_v25 }
  0x33   :  { %v305_v44 = vrot.slane %v277_v36, %v267_v21  ;;  %v307_v51 = vcombine.high %v291_v41, %v291_v41  ;;  %v319_v54 = vunpack.i.h.s16 %v291_v41  ;;  %v5305_v59 = vpack.i.b16 %v291_v41, %v291_v41 }
  0x34   :  { %5340 = vmatpush3.bf16.msra.mxu0 %v5398_v3  ;;  %v313_v29 = vunpack.i.h.s16 %v298_v27  ;;  %v327_v33 = vpack.i.b16 %v311_v26, %v311_v26  ;;  %v5302_v34 = vpack.i.b16 %v298_v27, %v298_v27  ;;  %v308_v35 = vcombine.high %v298_v27, %v298_v27  ;;  %v5971_v3 = vld [vmem:[%s9198_s2] ss:$0 sm:$0xff]  ;;  %s5904_s2 = smov [#allocation9]  }
  0x35   :  { %5341 = vmatprep.subr.bf16.mxu0 %v5399_v5  ;;  %v315_v38 = vunpack.i.h.s16 %v306_v30  ;;  %v345_v39 = vrot.slane %v5301_v31, %v5953_v32  ;;  %v5303_v46 = vpack.i.b16 %v306_v30, %v306_v30  ;;  %v309_v55 = vcombine.high %v305_v44, %v305_v44 }
  0x36   :  { %v329_v37 = vpack.i.b16 %v313_v29, %v313_v29  ;;  %v349_v40 = vrot.slane %v327_v33, %v5953_v32  ;;  %v353_v42 = vrot.slane %v5302_v34, %v5953_v32  ;;  %v317_v43 = vunpack.i.h.s16 %v308_v35 }
  0x37   :  { %v331_v47 = vpack.i.b16 %v315_v38, %v315_v38  ;;  %v407_v48 = vpack.i.b16 %v345_v39, %v345_v39  ;;  %v5304_v50 = vpack.i.b16 %v308_v35, %v308_v35  ;;  %v361_v57 = vrot.slane %v5303_v46, %v5953_v32 }
  0x38   :  { %5342 = vmatpush3.bf16.msra.mxu0 %v5399_v5  ;;  %v357_v45 = vrot.slane %v329_v37, %v5953_v32  ;;  %v414_v49 = vpack.i.b16 %v349_v40, %v349_v40  ;;  %v421_v52 = vpack.i.b16 %v353_v42, %v353_v42  ;;  %v333_v53 = vpack.i.b16 %v317_v43, %v317_v43 }
  0x39   :  { %5343 = vmatprep.subr.bf16.mxu0 %v5400_v6  ;;  %v365_v58 = vrot.slane %v331_v47, %v5953_v32  ;;  %v5306_v61 = vpack.i.b16 %v305_v44, %v305_v44  ;;  %v321_v62 = vunpack.i.h.s16 %v305_v44  ;;  %v5962_v63 = vrot.slane %v407_v48, %v5953_v32 }
  0x3a   :  { %v428_v56 = vpack.i.b16 %v357_v45, %v357_v45  ;;  %v5965_v0 = vrot.slane %v414_v49, %v5953_v32  ;;  %v369_v1 = vrot.slane %v5304_v50, %v5953_v32  ;;  %v323_v2 = vunpack.i.h.s16 %v307_v51 }
  0x3b   :  { %v5974_v5 = vrot.slane %v421_v52, %v5953_v32  ;;  %v442_v13 = vpack.i.b16 %v365_v58, %v365_v58  ;;  %v377_v14 = vrot.slane %v5305_v59, %v5953_v32  ;;  %v385_v18 = vrot.slane %v5306_v61, %v5953_v32 }
  0x3c   :  { %5344 = vmatpush3.bf16.msra.mxu0 %v5400_v6  ;;  %v373_v6 = vrot.slane %v333_v53, %v5953_v32  ;;  %v337_v19 = vpack.i.b16 %v321_v62, %v321_v62  ;;  %v5307_v20 = vpack.i.b16 %v307_v51, %v307_v51  ;;  %v5308_v21 = vpack.i.b16 %v309_v55, %v309_v55 }
  0x3d   :  { %5345 = vmatprep.subr.bf16.mxu0 %v5401_v7  ;;  %v449_v24 = vpack.i.b16 %v369_v1, %v369_v1  ;;  %v339_v25 = vpack.i.b16 %v323_v2, %v323_v2  ;;  %v463_v35 = vpack.i.b16 %v377_v14, %v377_v14  ;;  %v477_v36 = vpack.i.b16 %v385_v18, %v385_v18 }
  0x3e   :  { %v456_v28 = vpack.i.b16 %v373_v6, %v373_v6  ;;  %v389_v37 = vrot.slane %v337_v19, %v5953_v32  ;;  %v393_v38 = vrot.slane %v5307_v20, %v5953_v32  ;;  %v401_v39 = vrot.slane %v5308_v21, %v5953_v32 }
  0x3f   :  { %v397_v44 = vrot.slane %v339_v25, %v5953_v32  ;;  %v6010_v46 = vrot.slane %v442_v13, %v5953_v32  ;;  %v6019_v52 = vrot.slane %v449_v24, %v5953_v32  ;;  %v6031_v58 = vrot.slane %v477_v36, %v5953_v32 }
  0x40   :  { %5346 = vmatpush3.bf16.msra.mxu0 %v5401_v7  ;;  %v335_v7 = vpack.i.b16 %v319_v54, %v319_v54  ;;  %v6022_v53 = vrot.slane %v456_v28, %v5953_v32  ;;  %v484_v54 = vpack.i.b16 %v389_v37, %v389_v37 }
  0x41   :  { %5347 = vmatprep.subr.bf16.mxu0 %v5402_v8  ;;  %v498_v59 = vpack.i.b16 %v397_v44, %v397_v44 }
  0x42   :  { %v381_v29 = vrot.slane %v335_v7, %v5953_v32 }
  0x44   :  { %5348 = vmatpush3.bf16.msra.mxu0 %v5402_v8  ;;  %v325_v8 = vunpack.i.h.s16 %v309_v55  ;;  %v470_v47 = vpack.i.b16 %v381_v29, %v381_v29  ;;  %v491_v55 = vpack.i.b16 %v393_v38, %v393_v38 }
  0x46   :  { %v341_v30 = vpack.i.b16 %v325_v8, %v325_v8  ;;  %v6036_v62 = vrot.slane %v470_v47, %v5953_v32 }
  0x47   :  { %5350 = vmatmul.mubr.bf16.vlgmr.msra.gmra.mxu0 %v5404_v9  ;;  %v258_v9 = vld [vmem:[%s9200_s4] sm:$0x1]  ;;  %s5274_s4 = sshll.u32 %s5904_s2, 4  ;;  %s5275_s4 = int_to_ptr.vmem [resolvable:$true] %s5274_s4 }
  0x48   :  { %5353 = vmatprep.mubr.bf16.mxu0 %v5405_v10  ;;  %v5981_v10 = vrot.slane %v428_v56, %v5953_v32  ;;  %v5987_v27 = vpack.c.bf16 %v258_v9, %v258_v9  ;;  %v405_v48 = vrot.slane %v341_v30, %v5953_v32  ;;  %v6047_v9 = vrot.slane %v484_v54, %v5953_v32  ;;  %s5867_s13 = scalar_lea.vmem %s5275_s4, 1024  ;;  %p5872_p2 = scmp.lt.s32.totalorder %s5275_s4, %s5275_s4 }
  0x49   :  { %p5868_p1 = scmp.ne.s32.totalorder %s5275_s4, %s5867_s13  ;;  %p5873_p3 = scmp.lt.s32.totalorder %s5867_s13, %s5867_s13 }
  0x4a   :  { %v647_v50 = vpack.i.b16 %v5987_v27, %v5987_v27  ;;  %v512_v1 = vpack.i.b16 %v405_v48, %v405_v48 }
  0x4b   :  { %p5874_p4 = por %p5873_p3, %p5872_p2 }
  0x4c   :  { %v6066_v21 = vrot.slane %v512_v1, %v5953_v32 }
  0x4d   :  { %p5875_p5 = pnand %p5874_p4, %p5868_p1 }
  0x4f   :  { %5354 = vmatmul.mubr.bf16.gmra.mxu0 %v5406_v11  ;;  %v435_v11 = vpack.i.b16 %v361_v57, %v361_v57  ;;  %v6028_v57 = vrot.slane %v463_v35, %v5953_v32 }
  0x51   :  { %v6007_v45 = vrot.slane %v435_v11, %v5953_v32  ;;  %v6050_v11 = vrot.slane %v491_v55, %v5953_v32 }
 0x107   :  { %v5351_v60 = vpop.f32.mrf.mxu0 }
 0x108   :  { %v213_v22 = vadd.f32 %v5351_v60, %v5971_v3  ;;  %v505_v60 = vpack.i.b16 %v401_v39, %v401_v39 }
 0x109   :  { %v204_v4 = vpop.f32.mrf.mxu0 }
 0x10a   :  { %v205_v31 = vadd.f32 %v5971_v3, %v204_v4  ;;  %v6060_v18 = vrot.slane %v505_v60, %v5953_v32 }
 0x10b   :  { %v5352_v16 = vpop.f32.mrf.mxu0 }
 0x10c   :  { %v216_v23 = vadd.f32 %v5352_v16, %v5971_v3  ;;  %v6057_v16 = vrot.slane %v498_v59, %v5953_v32 }
 0x10d   :  { %v207_v26 = vpop.f32.mrf.mxu0 }
 0x10e   :  { %v5991_v33 = vpack.c.bf16 %v216_v23, %v213_v22  ;;  %v208_v34 = vadd.f32 %v5971_v3, %v207_v26 }
 0x10f   :  { %v5997_v40 = vpop.f32.mrf.mxu0 }
 0x110   :  { %9395 = vst [vmem:[#allocation15_spill] sm:$0xff] %v5991_v33  ;;  %v5999_v41 = vpack.c.bf16 %v208_v34, %v205_v31  ;;  %v534_v42 = vadd.bf16 %v5962_v63, %v5991_v33  ;;  %v535_v43 = vadd.bf16 %v5965_v0, %v5991_v33  ;;  %v536_v51 = vadd.bf16 %v5974_v5, %v5991_v33 }
 0x111   :  { %v220_v49 = vpop.f32.mrf.mxu0  ;;  %v537_v61 = vadd.bf16 %v5981_v10, %v5991_v33  ;;  %v538_v25 = vadd.bf16 %v6007_v45, %v5991_v33  ;;  %v6088_v34 = vrot.slane %v647_v50, %v5953_v32  ;;  %v539_v35 = vadd.bf16 %v6010_v46, %v5991_v33 }
 0x112   :  { %5358 = vmatpush3.bf16.msra.mxu1 %v5999_v41  ;;  %5407 = vtanh.bf16 %v534_v42  ;;  %v520_v2 = vadd.bf16 %v5974_v5, %v5999_v41  ;;  %v521_v4 = vadd.bf16 %v5981_v10, %v5999_v41  ;;  %v522_v6 = vadd.bf16 %v6007_v45, %v5999_v41 }
 0x113   :  { %5409 = vtanh.bf16 %v535_v43  ;;  %v6024_v56 = vpop.f32.mrf.mxu0  ;;  %5363 = vmatprep.subr.bf16.mxu1 %v9202_v12  ;;  %v523_v7 = vadd.bf16 %v6010_v46, %v5999_v41  ;;  %v524_v13 = vadd.bf16 %v6019_v52, %v5999_v41  ;;  %v525_v14 = vadd.bf16 %v6022_v53, %v5999_v41 }
 0x114   :  { %5411 = vtanh.bf16 %v536_v51  ;;  %v221_v19 = vadd.f32 %v5971_v3, %v220_v49  ;;  %v526_v20 = vadd.bf16 %v6028_v57, %v5999_v41  ;;  %v527_v23 = vadd.bf16 %v6036_v62, %v5999_v41 }
 0x115   :  { %v223_v8 = vpop.f32.mrf.mxu0  ;;  %v528_v24 = vadd.bf16 %v6031_v58, %v5999_v41  ;;  %5413 = vtanh.bf16 %v537_v61  ;;  %v529_v26 = vadd.bf16 %v6047_v9, %v5999_v41  ;;  %v530_v27 = vadd.bf16 %v6050_v11, %v5999_v41 }
 0x116   :  { %v224_v22 = vadd.f32 %v5971_v3, %v223_v8  ;;  %v531_v29 = vadd.bf16 %v6057_v16, %v5999_v41  ;;  %v532_v30 = vadd.bf16 %v6060_v18, %v5999_v41  ;;  %v533_v31 = vadd.bf16 %v6066_v21, %v5999_v41 }
 0x117   :  { %5415 = vtanh.bf16 %v538_v25  ;;  %v540_v39 = vadd.bf16 %v6019_v52, %v5991_v33  ;;  %v541_v48 = vadd.bf16 %v6022_v53, %v5991_v33  ;;  %v542_v55 = vadd.bf16 %v6028_v57, %v5991_v33 }
 0x118   :  { %v6079_v28 = vpack.c.bf16 %v224_v22, %v221_v19  ;;  %5417 = vtanh.bf16 %v539_v35  ;;  %v543_v8 = vadd.bf16 %v6036_v62, %v5991_v33 }
 0x119   :  { %5419 = vtanh.bf16 %v540_v39 }
 0x11a   :  { %9396 = vst [vmem:[#allocation16_spill] sm:$0xff] %v6079_v28  ;;  %5421 = vtanh.bf16 %v541_v48 }
 0x11b   :  { %5423 = vtanh.bf16 %v542_v55 }
 0x11c   :  { %5425 = vtanh.bf16 %v543_v8 }
 0x120   :  { %v5408_v36 = vpop.eup %5407 }
 0x121   :  { %v5410_v37 = vpop.eup %5409  ;;  %v669_v38 = vmul.bf16 %v5408_v36, %v6088_v34  ;;  %v544_v36 = vadd.bf16 %v6031_v58, %v5991_v33 }
 0x122   :  { %v670_v44 = vmul.bf16 %v5410_v37, %v6088_v34  ;;  %v5412_v47 = vpop.eup %5411 }
 0x123   :  { %v750_v42 = vunpack.c.h.bf16 %v669_v38  ;;  %v749_v43 = vunpack.c.l.bf16 %v669_v38  ;;  %v671_v51 = vmul.bf16 %v5412_v47, %v6088_v34  ;;  %v5414_v54 = vpop.eup %5413  ;;  %5427 = vtanh.bf16 %v544_v36 }
 0x124   :  { %v752_v49 = vunpack.c.h.bf16 %v670_v44  ;;  %v751_v50 = vunpack.c.l.bf16 %v670_v44  ;;  %v672_v61 = vmul.bf16 %v5414_v54, %v6088_v34 }
 0x125   :  { %911 = vadd.xlane.f32.xlu1 %v750_v42  ;;  %909 = vadd.xlane.f32.xlu0 %v749_v43  ;;  %v754_v59 = vunpack.c.h.bf16 %v671_v51  ;;  %v753_v60 = vunpack.c.l.bf16 %v671_v51  ;;  %v5416_v1 = vpop.eup %5415  ;;  %v545_v43 = vadd.bf16 %v6047_v9, %v5991_v33 }
 0x126   :  { %v756_v19 = vunpack.c.h.bf16 %v672_v61  ;;  %v755_v22 = vunpack.c.l.bf16 %v672_v61  ;;  %v673_v25 = vmul.bf16 %v5416_v1, %v6088_v34  ;;  %v5418_v35 = vpop.eup %5417 }
 0x127   :  { %v674_v39 = vmul.bf16 %v5418_v35, %v6088_v34  ;;  %v5420_v42 = vpop.eup %5419  ;;  %5429 = vtanh.bf16 %v545_v43 }
 0x128   :  { %v758_v37 = vunpack.c.h.bf16 %v673_v25  ;;  %v757_v38 = vunpack.c.l.bf16 %v673_v25  ;;  %v675_v48 = vmul.bf16 %v5420_v42, %v6088_v34 }
 0x129   :  { %915 = vadd.xlane.f32.xlu1 %v752_v49  ;;  %913 = vadd.xlane.f32.xlu0 %v751_v50  ;;  %v760_v44 = vunpack.c.h.bf16 %v674_v39  ;;  %v759_v47 = vunpack.c.l.bf16 %v674_v39  ;;  %v5422_v49 = vpop.eup %5421  ;;  %v546_v50 = vadd.bf16 %v6050_v11, %v5991_v33 }
 0x12a   :  { %v762_v51 = vunpack.c.h.bf16 %v675_v48  ;;  %v761_v54 = vunpack.c.l.bf16 %v675_v48  ;;  %v676_v55 = vmul.bf16 %v5422_v49, %v6088_v34  ;;  %v518_v48 = vadd.bf16 %v5962_v63, %v5999_v41 }
 0x12b   :  { %5431 = vtanh.bf16 %v546_v50 }
 0x12c   :  { %v764_v61 = vunpack.c.h.bf16 %v676_v55  ;;  %v763_v1 = vunpack.c.l.bf16 %v676_v55 }
 0x12d   :  { %919 = vadd.xlane.f32.xlu1 %v754_v59  ;;  %917 = vadd.xlane.f32.xlu0 %v753_v60  ;;  %v5424_v59 = vpop.eup %5423  ;;  %v547_v60 = vadd.bf16 %v6057_v16, %v5991_v33 }
 0x12e   :  { %v677_v8 = vmul.bf16 %v5424_v59, %v6088_v34 }
 0x12f   :  { %5433 = vtanh.bf16 %v547_v60 }
 0x130   :  { %v766_v25 = vunpack.c.h.bf16 %v677_v8  ;;  %v765_v35 = vunpack.c.l.bf16 %v677_v8 }
 0x131   :  { %923 = vadd.xlane.f32.xlu1 %v756_v19  ;;  %921 = vadd.xlane.f32.xlu0 %v755_v22  ;;  %v5426_v19 = vpop.eup %5425  ;;  %v548_v22 = vadd.bf16 %v6060_v18, %v5991_v33 }
 0x132   :  { %v678_v36 = vmul.bf16 %v5426_v19, %v6088_v34 }
 0x133   :  { %5435 = vtanh.bf16 %v548_v22 }
 0x134   :  { %v768_v39 = vunpack.c.h.bf16 %v678_v36  ;;  %v767_v42 = vunpack.c.l.bf16 %v678_v36 }
 0x135   :  { %927 = vadd.xlane.f32.xlu1 %v758_v37  ;;  %925 = vadd.xlane.f32.xlu0 %v757_v38  ;;  %v5428_v37 = vpop.eup %5427  ;;  %v549_v38 = vadd.bf16 %v6066_v21, %v5991_v33 }
 0x136   :  { %v679_v43 = vmul.bf16 %v5428_v37, %v6088_v34 }
 0x137   :  { %5437 = vtanh.bf16 %v549_v38 }
 0x138   :  { %v770_v49 = vunpack.c.h.bf16 %v679_v43  ;;  %v769_v50 = vunpack.c.l.bf16 %v679_v43 }
 0x139   :  { %931 = vadd.xlane.f32.xlu1 %v760_v44  ;;  %929 = vadd.xlane.f32.xlu0 %v759_v47  ;;  %v5430_v44 = vpop.eup %5429  ;;  %v519_v47 = vadd.bf16 %v5965_v0, %v5999_v41 }
 0x13b   :  { %5439 = vtanh.bf16 %v519_v47 }
 0x13c   :  { %5441 = vtanh.bf16 %v518_v48 }
 0x13d   :  { %935 = vadd.xlane.f32.xlu1 %v762_v51  ;;  %933 = vadd.xlane.f32.xlu0 %v761_v54  ;;  %v680_v51 = vmul.bf16 %v5430_v44, %v6088_v34  ;;  %v5432_v54 = vpop.eup %5431  ;;  %5443 = vtanh.bf16 %v520_v2 }
 0x13e   :  { %v681_v60 = vmul.bf16 %v5432_v54, %v6088_v34  ;;  %5445 = vtanh.bf16 %v521_v4 }
 0x13f   :  { %v772_v55 = vunpack.c.h.bf16 %v680_v51  ;;  %v771_v59 = vunpack.c.l.bf16 %v680_v51  ;;  %5447 = vtanh.bf16 %v522_v6 }
 0x140   :  { %v773_v8 = vunpack.c.l.bf16 %v681_v60  ;;  %5449 = vtanh.bf16 %v523_v7 }
 0x141   :  { %939 = vadd.xlane.f32.xlu1 %v764_v61  ;;  %937 = vadd.xlane.f32.xlu0 %v763_v1  ;;  %v5434_v61 = vpop.eup %5433  ;;  %v774_v1 = vunpack.c.h.bf16 %v681_v60  ;;  %5451 = vtanh.bf16 %v524_v13 }
 0x142   :  { %v682_v19 = vmul.bf16 %v5434_v61, %v6088_v34  ;;  %v5436_v22 = vpop.eup %5435  ;;  %5453 = vtanh.bf16 %v525_v14 }
 0x143   :  { %v683_v36 = vmul.bf16 %v5436_v22, %v6088_v34  ;;  %5455 = vtanh.bf16 %v526_v20 }
 0x144   :  { %5457 = vtanh.bf16 %v527_v23 }
 0x145   :  { %943 = vadd.xlane.f32.xlu1 %v766_v25  ;;  %941 = vadd.xlane.f32.xlu0 %v765_v35  ;;  %v776_v25 = vunpack.c.h.bf16 %v682_v19  ;;  %v775_v35 = vunpack.c.l.bf16 %v682_v19  ;;  %v5438_v37 = vpop.eup %5437  ;;  %5459 = vtanh.bf16 %v528_v24 }
 0x146   :  { %v684_v43 = vmul.bf16 %v5438_v37, %v6088_v34  ;;  %5461 = vtanh.bf16 %v529_v26  ;;  %v229_v26 = vadd.f32 %v5997_v40, %v5971_v3 }
 0x147   :  { %5463 = vtanh.bf16 %v530_v27 }
 0x148   :  { %v780_v2 = vunpack.c.h.bf16 %v684_v43  ;;  %v779_v47 = vunpack.c.l.bf16 %v684_v43  ;;  %5465 = vtanh.bf16 %v531_v29 }
 0x149   :  { %947 = vadd.xlane.f32.xlu1 %v768_v39  ;;  %945 = vadd.xlane.f32.xlu0 %v767_v42  ;;  %v5440_v38 = vpop.eup %5439  ;;  %v778_v39 = vunpack.c.h.bf16 %v683_v36  ;;  %v777_v42 = vunpack.c.l.bf16 %v683_v36  ;;  %5467 = vtanh.bf16 %v532_v30 }
 0x14a   :  { %v5442_v44 = vpop.eup %5441  ;;  %v654_v48 = vmul.bf16 %v5440_v38, %v6088_v34  ;;  %5469 = vtanh.bf16 %v533_v31 }
 0x14b   :  { %v5444_v51 = vpop.eup %5443 }
 0x14c   :  { %v719_v4 = vunpack.c.l.bf16 %v654_v48  ;;  %v720_v6 = vunpack.c.h.bf16 %v654_v48 }
 0x14d   :  { %951 = vadd.xlane.f32.xlu1 %v770_v49  ;;  %949 = vadd.xlane.f32.xlu0 %v769_v50  ;;  %v653_v49 = vmul.bf16 %v5442_v44, %v6088_v34 }
 0x14f   :  { %v717_v50 = vunpack.c.l.bf16 %v653_v49  ;;  %v718_v54 = vunpack.c.h.bf16 %v653_v49  ;;  %v232_v49 = vadd.f32 %v6024_v56, %v5971_v3 }
 0x151   :  { %955 = vadd.xlane.f32.xlu1 %v772_v55  ;;  %953 = vadd.xlane.f32.xlu0 %v771_v59  ;;  %v655_v55 = vmul.bf16 %v5444_v51, %v6088_v34  ;;  %v5446_v59 = vpop.eup %5445 }
 0x152   :  { %v656_v61 = vmul.bf16 %v5446_v59, %v6088_v34 }
 0x153   :  { %v722_v7 = vunpack.c.h.bf16 %v655_v55  ;;  %v721_v60 = vunpack.c.l.bf16 %v655_v55 }
 0x154   :  { %v724_v13 = vunpack.c.h.bf16 %v656_v61 }
 0x155   :  { %959 = vadd.xlane.f32.xlu1 %v774_v1  ;;  %957 = vadd.xlane.f32.xlu0 %v773_v8  ;;  %v5448_v1 = vpop.eup %5447  ;;  %v723_v8 = vunpack.c.l.bf16 %v656_v61 }
 0x156   :  { %v657_v19 = vmul.bf16 %v5448_v1, %v6088_v34  ;;  %v5450_v22 = vpop.eup %5449 }
 0x157   :  { %v5452_v36 = vpop.eup %5451 }
 0x158   :  { %v726_v14 = vunpack.c.h.bf16 %v657_v19  ;;  %v659_v38 = vmul.bf16 %v5452_v36, %v6088_v34 }
 0x159   :  { %963 = vadd.xlane.f32.xlu1 %v776_v25  ;;  %961 = vadd.xlane.f32.xlu0 %v775_v35  ;;  %v725_v25 = vunpack.c.l.bf16 %v657_v19  ;;  %v658_v35 = vmul.bf16 %v5450_v22, %v6088_v34 }
 0x15a   :  { %v730_v23 = vunpack.c.h.bf16 %v659_v38 }
 0x15b   :  { %v728_v20 = vunpack.c.h.bf16 %v658_v35  ;;  %v727_v37 = vunpack.c.l.bf16 %v658_v35 }
 0x15d   :  { %967 = vadd.xlane.f32.xlu1 %v778_v39  ;;  %965 = vadd.xlane.f32.xlu0 %v777_v42  ;;  %v5454_v39 = vpop.eup %5453  ;;  %v729_v42 = vunpack.c.l.bf16 %v659_v38 }
 0x15e   :  { %v660_v43 = vmul.bf16 %v5454_v39, %v6088_v34  ;;  %v5456_v44 = vpop.eup %5455 }
 0x15f   :  { %v5458_v48 = vpop.eup %5457 }
 0x160   :  { %v732_v24 = vunpack.c.h.bf16 %v660_v43  ;;  %v662_v27 = vmul.bf16 %v5458_v48, %v6088_v34  ;;  %v5460_v51 = vpop.eup %5459 }
 0x161   :  { %971 = vadd.xlane.f32.xlu1 %v780_v2  ;;  %969 = vadd.xlane.f32.xlu0 %v779_v47  ;;  %v731_v2 = vunpack.c.l.bf16 %v660_v43  ;;  %v661_v47 = vmul.bf16 %v5456_v44, %v6088_v34  ;;  %v663_v3 = vmul.bf16 %v5460_v51, %v6088_v34  ;;  %v5462_v56 = vpop.eup %5461 }
 0x162   :  { %v736_v40 = vunpack.c.h.bf16 %v662_v27 }
 0x163   :  { %v738_v55 = vunpack.c.h.bf16 %v663_v3  ;;  %v737_v59 = vunpack.c.l.bf16 %v663_v3 }
 0x165   :  { %849 = vadd.xlane.f32.xlu1 %v719_v4  ;;  %845 = vadd.xlane.f32.xlu0 %v717_v50  ;;  %v734_v4 = vunpack.c.h.bf16 %v661_v47  ;;  %v733_v50 = vunpack.c.l.bf16 %v661_v47 }
 0x169   :  { %851 = vadd.xlane.f32.xlu1 %v720_v6  ;;  %847 = vadd.xlane.f32.xlu0 %v718_v54  ;;  %v6182_v6 = vpack.c.bf16 %v232_v49, %v229_v26  ;;  %v735_v54 = vunpack.c.l.bf16 %v662_v27 }
 0x16b   :  { %9397 = vst [vmem:[#allocation17_spill] sm:$0xff] %v6182_v6  ;;  %v566_v29 = vadd.bf16 %v5962_v63, %v6182_v6  ;;  %v567_v30 = vadd.bf16 %v5965_v0, %v6182_v6  ;;  %v568_v31 = vadd.bf16 %v5974_v5, %v6182_v6  ;;  %v570_v38 = vadd.bf16 %v6007_v45, %v6182_v6 }
 0x16c   :  { %v571_v44 = vadd.bf16 %v6010_v46, %v6182_v6  ;;  %v572_v26 = vadd.bf16 %v6019_v52, %v6182_v6  ;;  %v573_v51 = vadd.bf16 %v6022_v53, %v6182_v6 }
 0x16d   :  { %855 = vadd.xlane.f32.xlu1 %v722_v7  ;;  %853 = vadd.xlane.f32.xlu0 %v721_v60  ;;  %v664_v7 = vmul.bf16 %v5462_v56, %v6088_v34  ;;  %v5464_v60 = vpop.eup %5463  ;;  %5471 = vtanh.bf16 %v566_v29  ;;  %v574_v29 = vadd.bf16 %v6028_v57, %v6182_v6 }
 0x16e   :  { %v5466_v41 = vpop.eup %5465  ;;  %5473 = vtanh.bf16 %v567_v30 }
 0x16f   :  { %v740_v61 = vunpack.c.h.bf16 %v664_v7  ;;  %v739_v1 = vunpack.c.l.bf16 %v664_v7  ;;  %v666_v22 = vmul.bf16 %v5466_v41, %v6088_v34  ;;  %5475 = vtanh.bf16 %v568_v31 }
 0x171   :  { %859 = vadd.xlane.f32.xlu1 %v724_v13  ;;  %857 = vadd.xlane.f32.xlu0 %v723_v8  ;;  %v665_v13 = vmul.bf16 %v5464_v60, %v6088_v34  ;;  %v744_v35 = vunpack.c.h.bf16 %v666_v22  ;;  %v743_v36 = vunpack.c.l.bf16 %v666_v22 }
 0x173   :  { %v742_v8 = vunpack.c.h.bf16 %v665_v13  ;;  %v741_v19 = vunpack.c.l.bf16 %v665_v13 }
 0x175   :  { %863 = vadd.xlane.f32.xlu1 %v726_v14  ;;  %861 = vadd.xlane.f32.xlu0 %v725_v25  ;;  %v5468_v14 = vpop.eup %5467  ;;  %v569_v25 = vadd.bf16 %v5981_v10, %v6182_v6 }
 0x177   :  { %5477 = vtanh.bf16 %v569_v25 }
 0x178   :  { %5479 = vtanh.bf16 %v570_v38 }
 0x179   :  { %867 = vadd.xlane.f32.xlu1 %v728_v20  ;;  %865 = vadd.xlane.f32.xlu0 %v727_v37  ;;  %v667_v20 = vmul.bf16 %v5468_v14, %v6088_v34  ;;  %v5470_v37 = vpop.eup %5469  ;;  %5481 = vtanh.bf16 %v571_v44  ;;  %v576_v14 = vadd.bf16 %v6031_v58, %v6182_v6 }
 0x17a   :  { %5483 = vtanh.bf16 %v572_v26 }
 0x17b   :  { %v746_v39 = vunpack.c.h.bf16 %v667_v20  ;;  %v5472_v43 = vpop.eup %5471  ;;  %5485 = vtanh.bf16 %v573_v51  ;;  %v579_v51 = vadd.bf16 %v6057_v16, %v6182_v6 }
 0x17c   :  { %v701_v47 = vmul.bf16 %v5472_v43, %v6088_v34  ;;  %v5474_v48 = vpop.eup %5473  ;;  %5487 = vtanh.bf16 %v574_v29 }
 0x17d   :  { %871 = vadd.xlane.f32.xlu1 %v730_v23  ;;  %869 = vadd.xlane.f32.xlu0 %v729_v42  ;;  %v745_v23 = vunpack.c.l.bf16 %v667_v20  ;;  %v668_v42 = vmul.bf16 %v5470_v37, %v6088_v34  ;;  %v5476_v27 = vpop.eup %5475 }
 0x17e   :  { %v814_v49 = vunpack.c.h.bf16 %v701_v47  ;;  %v703_v3 = vmul.bf16 %v5476_v27, %v6088_v34 }
 0x181   :  { %875 = vadd.xlane.f32.xlu1 %v732_v24  ;;  %873 = vadd.xlane.f32.xlu0 %v731_v2  ;;  %v748_v24 = vunpack.c.h.bf16 %v668_v42  ;;  %v747_v2 = vunpack.c.l.bf16 %v668_v42 }
 0x185   :  { %879 = vadd.xlane.f32.xlu1 %v734_v4  ;;  %877 = vadd.xlane.f32.xlu0 %v733_v50  ;;  %v813_v4 = vunpack.c.l.bf16 %v701_v47  ;;  %v702_v50 = vmul.bf16 %v5474_v48, %v6088_v34  ;;  %v5478_v56 = vpop.eup %5477  ;;  %v578_v47 = vadd.bf16 %v6050_v11, %v6182_v6 }
 0x186   :  { %v704_v7 = vmul.bf16 %v5478_v56, %v6088_v34  ;;  %v5480_v60 = vpop.eup %5479 }
 0x187   :  { %v705_v31 = vmul.bf16 %v5480_v60, %v6088_v34 }
 0x188   :  { %v820_v13 = vunpack.c.h.bf16 %v704_v7  ;;  %v819_v41 = vunpack.c.l.bf16 %v704_v7 }
 0x189   :  { %883 = vadd.xlane.f32.xlu1 %v736_v40  ;;  %881 = vadd.xlane.f32.xlu0 %v735_v54  ;;  %v816_v40 = vunpack.c.h.bf16 %v702_v50  ;;  %v815_v54 = vunpack.c.l.bf16 %v702_v50  ;;  %v822_v25 = vunpack.c.h.bf16 %v705_v31 }
 0x18d   :  { %887 = vadd.xlane.f32.xlu1 %v738_v55  ;;  %885 = vadd.xlane.f32.xlu0 %v737_v59  ;;  %v818_v55 = vunpack.c.h.bf16 %v703_v3  ;;  %v817_v59 = vunpack.c.l.bf16 %v703_v3 }
 0x191   :  { %891 = vadd.xlane.f32.xlu1 %v740_v61  ;;  %889 = vadd.xlane.f32.xlu0 %v739_v1  ;;  %v575_v1 = vadd.bf16 %v6036_v62, %v6182_v6 }
 0x193   :  { %5489 = vtanh.bf16 %v575_v1 }
 0x194   :  { %5491 = vtanh.bf16 %v576_v14 }
 0x195   :  { %895 = vadd.xlane.f32.xlu1 %v742_v8  ;;  %893 = vadd.xlane.f32.xlu0 %v741_v19  ;;  %v5482_v8 = vpop.eup %5481 }
 0x196   :  { %v5484_v20 = vpop.eup %5483 }
 0x197   :  { %v707_v43 = vmul.bf16 %v5484_v20, %v6088_v34  ;;  %v5486_v44 = vpop.eup %5485 }
 0x199   :  { %899 = vadd.xlane.f32.xlu1 %v744_v35  ;;  %897 = vadd.xlane.f32.xlu0 %v743_v36  ;;  %v821_v35 = vunpack.c.l.bf16 %v705_v31  ;;  %v706_v36 = vmul.bf16 %v5482_v8, %v6088_v34  ;;  %v826_v48 = vunpack.c.h.bf16 %v707_v43  ;;  %v825_v26 = vunpack.c.l.bf16 %v707_v43 }
 0x19a   :  { %v581_v8 = vadd.bf16 %v6066_v21, %v6182_v6 }
 0x19b   :  { %v823_v42 = vunpack.c.l.bf16 %v706_v36 }
 0x19d   :  { %903 = vadd.xlane.f32.xlu1 %v746_v39  ;;  %901 = vadd.xlane.f32.xlu0 %v745_v23  ;;  %v577_v39 = vadd.bf16 %v6047_v9, %v6182_v6  ;;  %v824_v23 = vunpack.c.h.bf16 %v706_v36 }
 0x19f   :  { %5493 = vtanh.bf16 %v577_v39 }
 0x1a0   :  { %5495 = vtanh.bf16 %v578_v47 }
 0x1a1   :  { %907 = vadd.xlane.f32.xlu1 %v748_v24  ;;  %905 = vadd.xlane.f32.xlu0 %v747_v2  ;;  %5497 = vtanh.bf16 %v579_v51 }
 0x1a5   :  { %1039 = vadd.xlane.f32.xlu1 %v814_v49  ;;  %1037 = vadd.xlane.f32.xlu0 %v813_v4  ;;  %v708_v49 = vmul.bf16 %v5486_v44, %v6088_v34  ;;  %v5488_v4 = vpop.eup %5487 }
 0x1a6   :  { %v709_v3 = vmul.bf16 %v5488_v4, %v6088_v34  ;;  %v5490_v56 = vpop.eup %5489 }
 0x1a7   :  { %v710_v1 = vmul.bf16 %v5490_v56, %v6088_v34  ;;  %v552_v56 = vadd.bf16 %v5974_v5, %v6079_v28 }
 0x1a8   :  { %v830_v7 = vunpack.c.h.bf16 %v709_v3  ;;  %v829_v60 = vunpack.c.l.bf16 %v709_v3 }
 0x1a9   :  { %1043 = vadd.xlane.f32.xlu1 %v816_v40  ;;  %1041 = vadd.xlane.f32.xlu0 %v815_v54  ;;  %v828_v40 = vunpack.c.h.bf16 %v708_v49  ;;  %v827_v54 = vunpack.c.l.bf16 %v708_v49  ;;  %v832_v14 = vunpack.c.h.bf16 %v710_v1  ;;  %v551_v49 = vadd.bf16 %v5965_v0, %v6079_v28 }
 0x1ad   :  { %1047 = vadd.xlane.f32.xlu1 %v818_v55  ;;  %1045 = vadd.xlane.f32.xlu0 %v817_v59  ;;  %v580_v59 = vadd.bf16 %v6060_v18, %v6182_v6 }
 0x1ae   :  { %v6218_v30 = vpop.xlane.xlu1 %911  ;;  %v6220_v61 = vpop.xlane.xlu0 %909 }
 0x1af   :  { %9398 = vst [vmem:[#allocation18_spill] sm:$0xff] %v6218_v30  ;;  %9399 = vst [vmem:[#allocation19_spill] sm:$0xff] %v6220_v61  ;;  %5499 = vtanh.bf16 %v580_v59 }
 0x1b0   :  { %5501 = vtanh.bf16 %v581_v8  ;;  %v553_v8 = vadd.bf16 %v5981_v10, %v6079_v28 }
 0x1b1   :  { %1051 = vadd.xlane.f32.xlu1 %v820_v13  ;;  %1049 = vadd.xlane.f32.xlu0 %v819_v41  ;;  %v5492_v13 = vpop.eup %5491 }
 0x1b2   :  { %v6225_v19 = vpop.xlane.xlu1 %915  ;;  %v6227_v22 = vpop.xlane.xlu0 %913 }
 0x1b3   :  { %9400 = vst [vmem:[#allocation20_spill] sm:$0xff] %v6225_v19  ;;  %9401 = vst [vmem:[#allocation21_spill] sm:$0xff] %v6227_v22  ;;  %v5494_v36 = vpop.eup %5493 }
 0x1b4   :  { %v712_v44 = vmul.bf16 %v5494_v36, %v6088_v34  ;;  %v5496_v47 = vpop.eup %5495 }
 0x1b5   :  { %1055 = vadd.xlane.f32.xlu1 %v822_v25  ;;  %1053 = vadd.xlane.f32.xlu0 %v821_v35  ;;  %v831_v25 = vunpack.c.l.bf16 %v710_v1  ;;  %v711_v35 = vmul.bf16 %v5492_v13, %v6088_v34 }
 0x1b6   :  { %v6232_v37 = vpop.xlane.xlu1 %919  ;;  %v6234_v38 = vpop.xlane.xlu0 %917  ;;  %v836_v4 = vunpack.c.h.bf16 %v712_v44  ;;  %v835_v51 = vunpack.c.l.bf16 %v712_v44 }
 0x1b7   :  { %9402 = vst [vmem:[#allocation22_spill] sm:$0xff] %v6232_v37  ;;  %9403 = vst [vmem:[#allocation23_spill] sm:$0xff] %v6234_v38  ;;  %v833_v43 = vunpack.c.l.bf16 %v711_v35 }
 0x1b9   :  { %1059 = vadd.xlane.f32.xlu1 %v824_v23  ;;  %1057 = vadd.xlane.f32.xlu0 %v823_v42  ;;  %v550_v23 = vadd.bf16 %v5962_v63, %v6079_v28  ;;  %v834_v42 = vunpack.c.h.bf16 %v711_v35  ;;  %v5498_v63 = vpop.eup %5497 }
 0x1ba   :  { %v6239_v24 = vpop.xlane.xlu1 %923  ;;  %v6241_v2 = vpop.xlane.xlu0 %921 }
 0x1bb   :  { %9404 = vst [vmem:[#allocation24_spill] sm:$0xff] %v6239_v24  ;;  %9405 = vst [vmem:[#allocation25_spill] sm:$0xff] %v6241_v2  ;;  %5503 = vtanh.bf16 %v550_v23 }
 0x1bc   :  { %5505 = vtanh.bf16 %v551_v49 }
 0x1bd   :  { %1063 = vadd.xlane.f32.xlu1 %v826_v48  ;;  %1061 = vadd.xlane.f32.xlu0 %v825_v26  ;;  %v5500_v0 = vpop.eup %5499  ;;  %5507 = vtanh.bf16 %v552_v56 }
 0x1be   :  { %v6246_v50 = vpop.xlane.xlu1 %927  ;;  %v6248_v27 = vpop.xlane.xlu0 %925  ;;  %v715_v35 = vmul.bf16 %v5500_v0, %v6088_v34  ;;  %5509 = vtanh.bf16 %v553_v8 }
 0x1bf   :  { %9406 = vst [vmem:[#allocation26_spill] sm:$0xff] %v6248_v27  ;;  %v5502_v5 = vpop.eup %5501 }
 0x1c0   :  { %v841_v44 = vunpack.c.l.bf16 %v715_v35 }
 0x1c1   :  { %1067 = vadd.xlane.f32.xlu1 %v828_v40  ;;  %1065 = vadd.xlane.f32.xlu0 %v827_v54  ;;  %v713_v40 = vmul.bf16 %v5496_v47, %v6088_v34  ;;  %v716_v47 = vmul.bf16 %v5502_v5, %v6088_v34  ;;  %v557_v5 = vadd.bf16 %v6022_v53, %v6079_v28 }
 0x1c2   :  { %v6253_v29 = vpop.xlane.xlu1 %931  ;;  %v6255_v55 = vpop.xlane.xlu0 %929 }
 0x1c3   :  { %9407 = vst [vmem:[#allocation27_spill] sm:$0xff] %v6253_v29  ;;  %9408 = vst [vmem:[#allocation28_spill] sm:$0xff] %v6255_v55  ;;  %v838_v59 = vunpack.c.h.bf16 %v713_v40 }
 0x1c5   :  { %1071 = vadd.xlane.f32.xlu1 %v830_v7  ;;  %1069 = vadd.xlane.f32.xlu0 %v829_v60  ;;  %v837_v7 = vunpack.c.l.bf16 %v713_v40  ;;  %v714_v60 = vmul.bf16 %v5498_v63, %v6088_v34  ;;  %v844_v40 = vunpack.c.h.bf16 %v716_v47  ;;  %v843_v63 = vunpack.c.l.bf16 %v716_v47 }
 0x1c6   :  { %v6260_v41 = vpop.xlane.xlu1 %935  ;;  %v6262_v31 = vpop.xlane.xlu0 %933  ;;  %v558_v47 = vadd.bf16 %v6028_v57, %v6079_v28 }
 0x1c9   :  { %1075 = vadd.xlane.f32.xlu1 %v832_v14  ;;  %1073 = vadd.xlane.f32.xlu0 %v831_v25  ;;  %v840_v14 = vunpack.c.h.bf16 %v714_v60  ;;  %v839_v25 = vunpack.c.l.bf16 %v714_v60  ;;  %v5504_v10 = vpop.eup %5503  ;;  %v556_v60 = vadd.bf16 %v6019_v52, %v6079_v28 }
 0x1ca   :  { %v6267_v20 = vpop.xlane.xlu1 %939  ;;  %v6269_v39 = vpop.xlane.xlu0 %937  ;;  %v685_v56 = vmul.bf16 %v5504_v10, %v6088_v34 }
 0x1cc   :  { %v782_v0 = vunpack.c.h.bf16 %v685_v56  ;;  %v781_v8 = vunpack.c.l.bf16 %v685_v56 }
 0x1cd   :  { %1079 = vadd.xlane.f32.xlu1 %v834_v42  ;;  %1077 = vadd.xlane.f32.xlu0 %v833_v43  ;;  %v554_v42 = vadd.bf16 %v6007_v45, %v6079_v28  ;;  %v842_v43 = vunpack.c.h.bf16 %v715_v35  ;;  %v5506_v45 = vpop.eup %5505 }
 0x1ce   :  { %v6274_v48 = vpop.xlane.xlu1 %943  ;;  %v6276_v26 = vpop.xlane.xlu0 %941 }
 0x1cf   :  { %9409 = vst [vmem:[#allocation29_spill] sm:$0xff] %v6274_v48  ;;  %9410 = vst [vmem:[#allocation30_spill] sm:$0xff] %v6276_v26  ;;  %5511 = vtanh.bf16 %v554_v42 }
 0x1d1   :  { %1083 = vadd.xlane.f32.xlu1 %v836_v4  ;;  %1081 = vadd.xlane.f32.xlu0 %v835_v51  ;;  %v555_v51 = vadd.bf16 %v6010_v46, %v6079_v28  ;;  %v5508_v46 = vpop.eup %5507 }
 0x1d2   :  { %v6281_v54 = vpop.xlane.xlu1 %947  ;;  %v6283_v3 = vpop.xlane.xlu0 %945 }
 0x1d3   :  { %9411 = vst [vmem:[#allocation31_spill] sm:$0xff] %v6281_v54  ;;  %9412 = vst [vmem:[#allocation32_spill] sm:$0xff] %v6283_v3  ;;  %5513 = vtanh.bf16 %v555_v51  ;;  %v5510_v52 = vpop.eup %5509 }
 0x1d4   :  { %5515 = vtanh.bf16 %v556_v60  ;;  %v688_v56 = vmul.bf16 %v5510_v52, %v6088_v34  ;;  %v560_v60 = vadd.bf16 %v6031_v58, %v6079_v28 }
 0x1d5   :  { %1087 = vadd.xlane.f32.xlu1 %v838_v59  ;;  %1085 = vadd.xlane.f32.xlu0 %v837_v7  ;;  %5517 = vtanh.bf16 %v557_v5 }
 0x1d6   :  { %v6288_v1 = vpop.xlane.xlu1 %951  ;;  %v6290_v13 = vpop.xlane.xlu0 %949  ;;  %5519 = vtanh.bf16 %v558_v47 }
 0x1d7   :  { %9413 = vst [vmem:[#allocation33_spill] sm:$0xff] %v6288_v1  ;;  %9414 = vst [vmem:[#allocation34_spill] sm:$0xff] %v6290_v13 }
 0x1d9   :  { %1091 = vadd.xlane.f32.xlu1 %v840_v14  ;;  %1089 = vadd.xlane.f32.xlu0 %v839_v25  ;;  %v686_v14 = vmul.bf16 %v5506_v45, %v6088_v34  ;;  %v559_v45 = vadd.bf16 %v6036_v62, %v6079_v28 }
 0x1da   :  { %v6295_v36 = vpop.xlane.xlu1 %955  ;;  %v6297_v23 = vpop.xlane.xlu0 %953 }
 0x1db   :  { %9415 = vst [vmem:[#allocation35_spill] sm:$0xff] %v6295_v36  ;;  %9416 = vst [vmem:[#allocation36_spill] sm:$0xff] %v6297_v23  ;;  %v784_v42 = vunpack.c.h.bf16 %v686_v14  ;;  %5521 = vtanh.bf16 %v559_v45 }
 0x1dc   :  { %5523 = vtanh.bf16 %v560_v60 }
 0x1dd   :  { %1095 = vadd.xlane.f32.xlu1 %v842_v43  ;;  %1093 = vadd.xlane.f32.xlu0 %v841_v44  ;;  %v783_v43 = vunpack.c.l.bf16 %v686_v14  ;;  %v687_v44 = vmul.bf16 %v5508_v46, %v6088_v34  ;;  %v5512_v53 = vpop.eup %5511  ;;  %v788_v14 = vunpack.c.h.bf16 %v688_v56  ;;  %v787_v46 = vunpack.c.l.bf16 %v688_v56 }
 0x1de   :  { %v6302_v49 = vpop.xlane.xlu1 %959  ;;  %v6304_v4 = vpop.xlane.xlu0 %957  ;;  %v689_v5 = vmul.bf16 %v5512_v53, %v6088_v34 }
 0x1e0   :  { %v790_v58 = vunpack.c.h.bf16 %v689_v5 }
 0x1e1   :  { %1099 = vadd.xlane.f32.xlu1 %v844_v40  ;;  %1097 = vadd.xlane.f32.xlu0 %v843_v63  ;;  %v786_v40 = vunpack.c.h.bf16 %v687_v44  ;;  %v785_v63 = vunpack.c.l.bf16 %v687_v44  ;;  %v789_v44 = vunpack.c.l.bf16 %v689_v5 }
 0x1e2   :  { %v6309_v59 = vpop.xlane.xlu1 %963  ;;  %v6311_v7 = vpop.xlane.xlu0 %961 }
 0x1e5   :  { %975 = vadd.xlane.f32.xlu1 %v782_v0  ;;  %973 = vadd.xlane.f32.xlu0 %v781_v8  ;;  %v561_v8 = vadd.bf16 %v6047_v9, %v6079_v28  ;;  %v562_v9 = vadd.bf16 %v6050_v11, %v6079_v28 }
 0x1e6   :  { %v6316_v25 = vpop.xlane.xlu1 %967  ;;  %v6318_v35 = vpop.xlane.xlu0 %965 }
 0x1e7   :  { %5525 = vtanh.bf16 %v561_v8 }
 0x1e8   :  { %5527 = vtanh.bf16 %v562_v9 }
 0x1e9   :  { %979 = vadd.xlane.f32.xlu1 %v784_v42  ;;  %977 = vadd.xlane.f32.xlu0 %v783_v43  ;;  %v5514_v42 = vpop.eup %5513 }
 0x1ea   :  { %v6325_v10 = vpop.xlane.xlu1 %971  ;;  %v6327_v51 = vpop.xlane.xlu0 %969  ;;  %v690_v52 = vmul.bf16 %v5514_v42, %v6088_v34 }
 0x1eb   :  { %9417 = vst [vmem:[#allocation37_spill] sm:$0xff] %v6327_v51  ;;  %v5516_v47 = vpop.eup %5515 }
 0x1ec   :  { %v792_v53 = vunpack.c.h.bf16 %v690_v52  ;;  %v791_v45 = vunpack.c.l.bf16 %v690_v52  ;;  %v691_v60 = vmul.bf16 %v5516_v47, %v6088_v34  ;;  %v5518_v8 = vpop.eup %5517 }
 0x1ed   :  { %983 = vadd.xlane.f32.xlu1 %v786_v40  ;;  %981 = vadd.xlane.f32.xlu0 %v785_v63  ;;  %v1230_v40 = vand.u32 127, %v265_v15  ;;  %v564_v15 = vadd.bf16 %v6060_v18, %v6079_v28  ;;  %v5520_v5 = vpop.eup %5519  ;;  %v692_v52 = vmul.bf16 %v5518_v8, %v6088_v34 }
 0x1ee   :  { %v6334_v57 = vpop.xlane.xlu1 %849  ;;  %v6336_v0 = vpop.xlane.xlu0 %845 }
 0x1ef   :  { %9418 = vst [vmem:[#allocation38_spill] sm:$0xff] %v6334_v57  ;;  %9419 = vst [vmem:[#allocation39_spill] sm:$0xff] %v6336_v0  ;;  %v1235_v42 = vadd.s32 4294967288, %v1230_v40  ;;  %v5522_v9 = vpop.eup %5521  ;;  %v795_v8 = vunpack.c.l.bf16 %v692_v52 }
 0x1f0   :  { %v5524_v18 = vpop.eup %5523 }
 0x1f1   :  { %987 = vadd.xlane.f32.xlu1 %v788_v14  ;;  %985 = vadd.xlane.f32.xlu0 %v787_v46  ;;  %v563_v14 = vadd.bf16 %v6057_v16, %v6079_v28  ;;  %v565_v16 = vadd.bf16 %v6066_v21, %v6079_v28  ;;  %v6371_v12 = vsub.s32 %v1235_v42, %v5949_v17 }
 0x1f2   :  { %v6341_v62 = vpop.xlane.xlu1 %851  ;;  %v6343_v43 = vpop.xlane.xlu0 %847 }
 0x1f3   :  { %9420 = vst [vmem:[#allocation40_spill] sm:$0xff] %v6341_v62  ;;  %9421 = vst [vmem:[#allocation41_spill] sm:$0xff] %v6343_v43  ;;  %5529 = vtanh.bf16 %v563_v14 }
 0x1f4   :  { %5531 = vtanh.bf16 %v564_v15  ;;  %9425 = vst [vmem:[#allocation45_spill] sm:$0xff] %v6371_v12  ;;  %v694_v15 = vmul.bf16 %v5522_v9, %v6088_v34  ;;  %v1402_v9 = vrot.slane %v6232_v37, %v6371_v12 }
 0x1f5   :  { %991 = vadd.xlane.f32.xlu1 %v790_v58  ;;  %989 = vadd.xlane.f32.xlu0 %v789_v44  ;;  %v794_v58 = vunpack.c.h.bf16 %v691_v60  ;;  %v793_v44 = vunpack.c.l.bf16 %v691_v60  ;;  %v796_v60 = vunpack.c.h.bf16 %v692_v52  ;;  %v5526_v14 = vpop.eup %5525  ;;  %5533 = vtanh.bf16 %v565_v16 }
 0x1f6   :  { %v6349_v63 = vpop.xlane.xlu1 %855  ;;  %v6351_v56 = vpop.xlane.xlu0 %853  ;;  %v695_v52 = vmul.bf16 %v5524_v18, %v6088_v34  ;;  %v6385_v28 = vmul.bf16 %v5526_v14, %v6088_v34  ;;  %v1393_v16 = vrot.slane %v6225_v19, %v6371_v12  ;;  %v1411_v18 = vrot.slane %v6239_v24, %v6371_v12 }
 0x1f7   :  { %v800_v37 = vunpack.c.h.bf16 %v694_v15  ;;  %v799_v19 = vunpack.c.l.bf16 %v694_v15 }
 0x1f8   :  { %v801_v24 = vunpack.c.l.bf16 %v695_v52  ;;  %v804_v32 = vunpack.c.h.bf16 %v6385_v28 }
 0x1f9   :  { %995 = vadd.xlane.f32.xlu1 %v792_v53  ;;  %993 = vadd.xlane.f32.xlu0 %v791_v45  ;;  %v693_v45 = vmul.bf16 %v5520_v5, %v6088_v34  ;;  %v1384_v5 = vrot.slane %v6218_v30, %v6371_v12 }
 0x1fa   :  { %v6356_v11 = vpop.xlane.xlu1 %859  ;;  %v6358_v46 = vpop.xlane.xlu0 %857 }
 0x1fb   :  { %9422 = vst [vmem:[#allocation42_spill] sm:$0xff] %v6356_v11  ;;  %9423 = vst [vmem:[#allocation43_spill] sm:$0xff] %v6358_v46  ;;  %v798_v6 = vunpack.c.h.bf16 %v693_v45  ;;  %v797_v42 = vunpack.c.l.bf16 %v693_v45 }
 0x1fd   :  { %999 = vadd.xlane.f32.xlu1 %v794_v58  ;;  %997 = vadd.xlane.f32.xlu0 %v793_v44  ;;  %v6374_v58 = vsub.s32 %v1230_v40, %v5949_v17  ;;  %v1420_v17 = vrot.slane %v6246_v50, %v6371_v12 }
 0x1fe   :  { %v6365_v47 = vpop.xlane.xlu1 %863  ;;  %v6367_v53 = vpop.xlane.xlu0 %861 }
 0x1ff   :  { %9424 = vst [vmem:[#allocation44_spill] sm:$0xff] %v6367_v53  ;;  %9426 = vst [vmem:[#allocation46_spill] sm:$0xff] %v6374_v58  ;;  %v1380_v40 = vrot.slane %v6220_v61, %v6374_v58  ;;  %v1398_v45 = vrot.slane %v6234_v38, %v6374_v58  ;;  %v1407_v14 = vrot.slane %v6241_v2, %v6374_v58  ;;  %v802_v61 = vunpack.c.h.bf16 %v695_v52 }
 0x200   :  { %v1465_v52 = vrot.slane %v6281_v54, %v6371_v12  ;;  %v1479_v54 = vrot.slane %v6297_v23, %v6374_v58 }
 0x201   :  { %1003 = vadd.xlane.f32.xlu1 %v796_v60  ;;  %1001 = vadd.xlane.f32.xlu0 %v795_v8  ;;  %v1389_v60 = vrot.slane %v6227_v22, %v6374_v58  ;;  %v5528_v8 = vpop.eup %5527  ;;  %v1385_v38 = vsel %vm1240_vm0, %v1384_v5, %v1380_v40  ;;  %v1412_v2 = vsel %vm1240_vm0, %v1411_v18, %v1407_v14 }
 0x202   :  { %v6376_v21 = vpop.xlane.xlu1 %867  ;;  %v6378_v44 = vpop.xlane.xlu0 %865  ;;  %v6407_v30 = vmul.bf16 %v5528_v8, %v6088_v34  ;;  %v1416_v5 = vrot.slane %v6248_v27, %v6374_v58  ;;  %v1461_v40 = vrot.slane %v6283_v3, %v6374_v58  ;;  %v1470_v8 = vrot.slane %v6290_v13, %v6374_v58 }
 0x203   :  { %9427 = vst [vmem:[#allocation47_spill] sm:$0xff] %v6378_v44  ;;  %v5530_v15 = vpop.eup %5529  ;;  %v1456_v18 = vrot.slane %v6274_v48, %v6371_v12  ;;  %v1452_v14 = vrot.slane %v6276_v26, %v6374_v58  ;;  %v1483_v3 = vrot.slane %v6295_v36, %v6371_v12 }
 0x204   :  { %v806_v13 = vunpack.c.h.bf16 %v6407_v30  ;;  %v1421_v26 = vsel %vm1240_vm0, %v1420_v17, %v1416_v5  ;;  %v1466_v36 = vsel %vm1240_vm0, %v1465_v52, %v1461_v40  ;;  %v1438_v40 = vrot.slane %v6260_v41, %v6371_v12 }
 0x205   :  { %1007 = vadd.xlane.f32.xlu1 %v798_v6  ;;  %1005 = vadd.xlane.f32.xlu0 %v797_v42  ;;  %v1394_v6 = vsel %vm1240_vm0, %v1393_v16, %v1389_v60  ;;  %v1403_v42 = vsel %vm1240_vm0, %v1402_v9, %v1398_v45  ;;  %v1474_v9 = vrot.slane %v6288_v1, %v6371_v12  ;;  %v5532_v45 = vpop.eup %5531  ;;  %v803_v1 = vunpack.c.l.bf16 %v6385_v28 }
 0x206   :  { %v6401_v33 = vpop.xlane.xlu1 %871  ;;  %v6403_v22 = vpop.xlane.xlu0 %869  ;;  %v1457_v17 = vsel %vm1240_vm0, %v1456_v18, %v1452_v14  ;;  %v1497_v18 = vrot.slane %v6311_v7, %v6374_v58  ;;  %v1258_v14 = vrot.slane %v6349_v63, %v6371_v12 }
 0x207   :  { %v1837_v5 = vsel %vm1809_vm1, %v1466_v36, %v1457_v17  ;;  %v1245_v17 = vrot.slane %v6334_v57, %v6374_v58  ;;  %v1276_v57 = vrot.slane %v6365_v47, %v6371_v12 }
 0x209   :  { %1011 = vadd.xlane.f32.xlu1 %v800_v37  ;;  %1009 = vadd.xlane.f32.xlu0 %v799_v19  ;;  %v1429_v19 = vrot.slane %v6253_v29, %v6371_v12  ;;  %v1425_v37 = vrot.slane %v6255_v55, %v6374_v58  ;;  %v1830_v55 = vsel %vm1809_vm1, %v1394_v6, %v1385_v38  ;;  %v5534_v38 = vpop.eup %5533 }
 0x20a   :  { %v6421_v16 = vpop.xlane.xlu1 %875  ;;  %v6423_v60 = vpop.xlane.xlu0 %873  ;;  %v6445_v29 = vmul.bf16 %v5530_v15, %v6088_v34  ;;  %v1831_v48 = vsel %vm1811_vm2, %v1403_v42, %v1830_v55  ;;  %v1475_v6 = vsel %vm1240_vm0, %v1474_v9, %v1470_v8  ;;  %v6459_v15 = vmul.bf16 %v5532_v45, %v6088_v34 }
 0x20b   :  { %v1832_v28 = vsel %vm1813_vm3, %v1412_v2, %v1831_v48  ;;  %v1484_v55 = vsel %vm1240_vm0, %v1483_v3, %v1479_v54  ;;  %v1492_v42 = vrot.slane %v6302_v49, %v6371_v12  ;;  %v1838_v54 = vsel %vm1811_vm2, %v1475_v6, %v1837_v5 }
 0x20c   :  { %v808_v2 = vunpack.c.h.bf16 %v6445_v29  ;;  %v807_v48 = vunpack.c.l.bf16 %v6445_v29  ;;  %v1833_v52 = vsel %vm1815_vm4, %v1421_v26, %v1832_v28  ;;  %v1434_v29 = vrot.slane %v6262_v31, %v6374_v58 }
 0x20d   :  { %1015 = vadd.xlane.f32.xlu1 %v802_v61  ;;  %1013 = vadd.xlane.f32.xlu0 %v801_v24  ;;  %v805_v61 = vunpack.c.l.bf16 %v6407_v30  ;;  %v1430_v24 = vsel %vm1240_vm0, %v1429_v19, %v1425_v37  ;;  %v1488_v30 = vrot.slane %v6304_v4, %v6374_v58  ;;  %v6479_v37 = vmul.bf16 %v5534_v38, %v6088_v34 }
 0x20e   :  { %v6450_v27 = vpop.xlane.xlu1 %879  ;;  %v6452_v23 = vpop.xlane.xlu0 %877  ;;  %v1447_v26 = vrot.slane %v6267_v20, %v6371_v12  ;;  %v1839_v36 = vsel %vm1813_vm3, %v1484_v55, %v1838_v54  ;;  %v1501_v34 = vrot.slane %v6309_v59, %v6371_v12  ;;  %v1249_v8 = vrot.slane %v6341_v62, %v6371_v12 }
 0x20f   :  { %v1493_v9 = vsel %vm1240_vm0, %v1492_v42, %v1488_v30  ;;  %v1239_v45 = vrot.slane %v6343_v43, %v6371_v12  ;;  %v1254_v38 = vrot.slane %v6351_v56, %v6374_v58  ;;  %v810_v28 = vunpack.c.h.bf16 %v6459_v15 }
 0x210   :  { %v1506_v6 = vrot.slane %v6318_v35, %v6374_v58  ;;  %v1234_v55 = vrot.slane %v6336_v0, %v6374_v58  ;;  %v1267_v5 = vrot.slane %v6356_v11, %v6371_v12  ;;  %v1250_v54 = vsel %vm1240_vm0, %v1249_v8, %v1245_v17 }
 0x211   :  { %1019 = vadd.xlane.f32.xlu1 %v804_v32  ;;  %1017 = vadd.xlane.f32.xlu0 %v803_v1  ;;  %v6482_v32 = vsel %vm1817_vm5, %v1430_v24, %v1833_v52  ;;  %v1443_v1 = vrot.slane %v6269_v39, %v6374_v58  ;;  %v1510_v24 = vrot.slane %v6316_v25, %v6371_v12  ;;  %v809_v8 = vunpack.c.l.bf16 %v6459_v15 }
 0x212   :  { %v6474_v3 = vpop.xlane.xlu1 %883  ;;  %v6476_v19 = vpop.xlane.xlu0 %881  ;;  %v1263_v52 = vrot.slane %v6358_v46, %v6374_v58  ;;  %v1241_v62 = vsel %vm1240_vm0, %v1239_v45, %v1234_v55  ;;  %v1272_v43 = vrot.slane %v6367_v53, %v6374_v58  ;;  %v1259_v0 = vsel %vm1240_vm0, %v1258_v14, %v1254_v38 }
 0x213   :  { %v1281_v11 = vrot.slane %v6378_v44, %v6374_v58  ;;  %v1502_v45 = vsel %vm1240_vm0, %v1501_v34, %v1497_v18  ;;  %v1840_v53 = vsel %vm1815_vm4, %v1493_v9, %v1839_v36  ;;  %v1439_v14 = vsel %vm1240_vm0, %v1438_v40, %v1434_v29 }
 0x214   :  { %v1448_v38 = vsel %vm1240_vm0, %v1447_v26, %v1443_v1  ;;  %v1810_v46 = vsel %vm1809_vm1, %v1250_v54, %v1241_v62  ;;  %v1268_v44 = vsel %vm1240_vm0, %v1267_v5, %v1263_v52  ;;  %v1290_v15 = vrot.slane %v6403_v22, %v6374_v58 }
 0x215   :  { %1023 = vadd.xlane.f32.xlu1 %v806_v13  ;;  %1021 = vadd.xlane.f32.xlu0 %v805_v61  ;;  %v1519_v13 = vrot.slane %v6325_v10, %v6371_v12  ;;  %v1515_v61 = vrot.slane %v6327_v51, %v6374_v58  ;;  %v1285_v51 = vrot.slane %v6376_v21, %v6371_v12  ;;  %v812_v1 = vunpack.c.h.bf16 %v6479_v37 }
 0x216   :  { %v6513_v42 = vpop.xlane.xlu1 %887  ;;  %v6515_v30 = vpop.xlane.xlu0 %885  ;;  %v1277_v34 = vsel %vm1240_vm0, %v1276_v57, %v1272_v43  ;;  %v1511_v36 = vsel %vm1240_vm0, %v1510_v24, %v1506_v6  ;;  %v1303_v62 = vrot.slane %v6421_v16, %v6371_v12  ;;  %v1299_v26 = vrot.slane %v6423_v60, %v6374_v58 }
 0x217   :  { %9428 = vst [vmem:[#allocation48_spill] sm:$0xff] %v6515_v30  ;;  %v1520_v40 = vsel %vm1240_vm0, %v1519_v13, %v1515_v61  ;;  %v1286_v29 = vsel %vm1240_vm0, %v1285_v51, %v1281_v11  ;;  %v811_v43 = vunpack.c.l.bf16 %v6479_v37  ;;  %v1841_v51 = vsel %vm1817_vm5, %v1502_v45, %v1840_v53 }
 0x218   :  { %v1835_v11 = vsel %vm1819_vm6, %v1439_v14, %v6482_v32  ;;  %v1842_v9 = vsel %vm1819_vm6, %v1511_v36, %v1841_v51  ;;  %v1321_v37 = vrot.slane %v6474_v3, %v6371_v12  ;;  %v1317_v53 = vrot.slane %v6476_v19, %v6374_v58 }
 0x219   :  { %1027 = vadd.xlane.f32.xlu1 %v808_v2  ;;  %1025 = vadd.xlane.f32.xlu0 %v807_v48  ;;  %v1294_v2 = vrot.slane %v6401_v33, %v6371_v12  ;;  %v1812_v48 = vsel %vm1811_vm2, %v1259_v0, %v1810_v46  ;;  %v1836_v18 = vsel %vm1821_vm7, %v1448_v38, %v1835_v11 }
 0x21a   :  { %v6538_v17 = vpop.xlane.xlu1 %891  ;;  %v6540_v55 = vpop.xlane.xlu0 %889  ;;  %v1814_v0 = vsel %vm1813_vm3, %v1268_v44, %v1812_v48  ;;  %v1843_v44 = vsel %vm1821_vm7, %v1520_v40, %v1842_v9  ;;  %v1304_v32 = vsel %vm1240_vm0, %v1303_v62, %v1299_v26  ;;  %v1330_v13 = vrot.slane %v6513_v42, %v6371_v12 }
 0x21b   :  { %9429 = vst [vmem:[#allocation49_spill] sm:$0xff] %v6540_v55  ;;  %v1816_v24 = vsel %vm1815_vm4, %v1277_v34, %v1814_v0  ;;  %v1326_v61 = vrot.slane %v6515_v30, %v6374_v58  ;;  %v1887_v54 = vsel %vm1880_vm8, %v1836_v18, -inf  ;;  %v1312_v45 = vrot.slane %v6450_v27, %v6371_v12 }
 0x21c   :  { %v1818_v6 = vsel %vm1817_vm5, %v1286_v29, %v1816_v24  ;;  %v1308_v14 = vrot.slane %v6452_v23, %v6374_v58  ;;  %v1339_v38 = vrot.slane %v6538_v17, %v6371_v12  ;;  %v1890_v34 = vsel %vm1880_vm8, %v1843_v44, -inf }
 0x21d   :  { %1031 = vadd.xlane.f32.xlu1 %v810_v28  ;;  %1029 = vadd.xlane.f32.xlu0 %v809_v8  ;;  %v1295_v28 = vsel %vm1240_vm0, %v1294_v2, %v1290_v15  ;;  %v1335_v2 = vrot.slane %v6540_v55, %v6374_v58  ;;  %v1322_v40 = vsel %vm1240_vm0, %v1321_v37, %v1317_v53 }
 0x21e   :  { %v6562_v46 = vpop.xlane.xlu1 %895  ;;  %v6564_v57 = vpop.xlane.xlu0 %893  ;;  %v1820_v8 = vsel %vm1819_vm6, %v1295_v28, %v1818_v6  ;;  %v1331_v26 = vsel %vm1240_vm0, %v1330_v13, %v1326_v61 }
 0x21f   :  { %9430 = vst [vmem:[#allocation50_spill] sm:$0xff] %v6564_v57  ;;  %v1348_v15 = vrot.slane %v6562_v46, %v6371_v12  ;;  %v1344_v48 = vrot.slane %v6564_v57, %v6374_v58  ;;  %v1822_v36 = vsel %vm1821_vm7, %v1304_v32, %v1820_v8  ;;  %v1340_v51 = vsel %vm1240_vm0, %v1339_v38, %v1335_v2 }
 0x220   :  { %v1881_v24 = vsel %vm1880_vm8, %v1822_v36, -inf }
 0x221   :  { %1035 = vadd.xlane.f32.xlu1 %v812_v1  ;;  %1033 = vadd.xlane.f32.xlu0 %v811_v43  ;;  %v1313_v43 = vsel %vm1240_vm0, %v1312_v45, %v1308_v14  ;;  %v1349_v28 = vsel %vm1240_vm0, %v1348_v15, %v1344_v48 }
 0x222   :  { %v6585_v5 = vpop.xlane.xlu1 %899  ;;  %v6587_v52 = vpop.xlane.xlu0 %897  ;;  %v1823_v18 = vsel %vm1809_vm1, %v1322_v40, %v1313_v43 }
 0x223   :  { %9431 = vst [vmem:[#allocation51_spill] sm:$0xff] %v6587_v52  ;;  %v1357_v29 = vrot.slane %v6585_v5, %v6371_v12  ;;  %v1353_v62 = vrot.slane %v6587_v52, %v6374_v58  ;;  %v1824_v44 = vsel %vm1811_vm2, %v1331_v26, %v1823_v18 }
 0x224   :  { %v1825_v37 = vsel %vm1813_vm3, %v1340_v51, %v1824_v44 }
 0x225   :  { %1891 = vmax.xlane.f32.xlu1 %v1890_v34  ;;  %1888 = vmax.xlane.f32.xlu0 %v1887_v54  ;;  %v1358_v6 = vsel %vm1240_vm0, %v1357_v29, %v1353_v62  ;;  %v1826_v8 = vsel %vm1815_vm4, %v1349_v28, %v1825_v37 }
 0x226   :  { %v6611_v1 = vpop.xlane.xlu1 %903  ;;  %v6613_v0 = vpop.xlane.xlu0 %901  ;;  %v1827_v45 = vsel %vm1817_vm5, %v1358_v6, %v1826_v8 }
 0x227   :  { %9432 = vst [vmem:[#allocation52_spill] sm:$0xff] %v6613_v0  ;;  %v1366_v11 = vrot.slane %v6611_v1, %v6371_v12  ;;  %v1362_v9 = vrot.slane %v6613_v0, %v6374_v58 }
 0x229   :  { %1882 = vmax.xlane.f32.xlu0 %v1881_v24  ;;  %v1367_v13 = vsel %vm1240_vm0, %v1366_v11, %v1362_v9 }
 0x22a   :  { %v6627_v53 = vpop.xlane.xlu1 %907  ;;  %v6629_v32 = vpop.xlane.xlu0 %905  ;;  %v1828_v38 = vsel %vm1819_vm6, %v1367_v13, %v1827_v45 }
 0x22b   :  { %9433 = vst [vmem:[#allocation53_spill] sm:$0xff] %v6629_v32  ;;  %v1375_v61 = vrot.slane %v6627_v53, %v6371_v12  ;;  %v1371_v54 = vrot.slane %v6629_v32, %v6374_v58 }
 0x22d   :  { %v1376_v14 = vsel %vm1240_vm0, %v1375_v61, %v1371_v54 }
 0x22e   :  { %v6640_v2 = vpop.xlane.xlu1 %1039  ;;  %v6642_v15 = vpop.xlane.xlu0 %1037  ;;  %v1829_v48 = vsel %vm1821_vm7, %v1376_v14, %v1828_v38 }
 0x22f   :  { %9434 = vst [vmem:[#allocation54_spill] sm:$0xff] %v6640_v2  ;;  %9435 = vst [vmem:[#allocation55_spill] sm:$0xff] %v6642_v15  ;;  %v1884_v34 = vsel %vm1880_vm8, %v1829_v48, -inf  ;;  %v1672_v37 = vrot.slane %v6640_v2, %v6371_v12  ;;  %v1668_v13 = vrot.slane %v6642_v15, %v6374_v58 }
 0x230   :  { %1885 = vmax.xlane.f32.xlu1 %v1884_v34 }
 0x232   :  { %v6646_v36 = vpop.xlane.xlu1 %1043  ;;  %v6648_v40 = vpop.xlane.xlu0 %1041 }
 0x233   :  { %9436 = vst [vmem:[#allocation56_spill] sm:$0xff] %v6646_v36  ;;  %9437 = vst [vmem:[#allocation57_spill] sm:$0xff] %v6648_v40  ;;  %v1681_v9 = vrot.slane %v6646_v36, %v6371_v12  ;;  %v1677_v18 = vrot.slane %v6648_v40, %v6374_v58 }
 0x235   :  { %v1682_v14 = vsel %vm1240_vm0, %v1681_v9, %v1677_v18 }
 0x236   :  { %v6650_v29 = vpop.xlane.xlu1 %1047  ;;  %v6652_v62 = vpop.xlane.xlu0 %1045 }
 0x237   :  { %9438 = vst [vmem:[#allocation58_spill] sm:$0xff] %v6650_v29  ;;  %9439 = vst [vmem:[#allocation59_spill] sm:$0xff] %v6652_v62  ;;  %v1690_v28 = vrot.slane %v6650_v29, %v6371_v12  ;;  %v1686_v24 = vrot.slane %v6652_v62, %v6374_v58  ;;  %v9499_v29 = vld [vmem:[#allocation14_spill] sm:$0xff] }
 0x239   :  { %v1691_v34 = vsel %vm1240_vm0, %v1690_v28, %v1686_v24 }
 0x23a   :  { %v6654_v26 = vpop.xlane.xlu1 %1051  ;;  %v6656_v43 = vpop.xlane.xlu0 %1049 }
 0x23b   :  { %9440 = vst [vmem:[#allocation60_spill] sm:$0xff] %v6654_v26  ;;  %9441 = vst [vmem:[#allocation61_spill] sm:$0xff] %v6656_v43  ;;  %v1699_v61 = vrot.slane %v6654_v26, %v6371_v12  ;;  %v1695_v54 = vrot.slane %v6656_v43, %v6374_v58  ;;  %v1673_v43 = vsel %vm1240_vm0, %v1672_v37, %v1668_v13  ;;  %v9498_v26 = vld [vmem:[#allocation13_spill] sm:$0xff] }
 0x23c   :  { %v1858_v18 = vsel %vm1809_vm1, %v1682_v14, %v1673_v43  ;;  %v6962_v36 = vsub.s32 2, %v9498_v26 }
 0x23d   :  { %v1700_v15 = vsel %vm1240_vm0, %v1699_v61, %v1695_v54  ;;  %v1859_v28 = vsel %vm1811_vm2, %v1691_v34, %v1858_v18 }
 0x23e   :  { %v6658_v51 = vpop.xlane.xlu1 %1055  ;;  %v6660_v11 = vpop.xlane.xlu0 %1053 }
 0x23f   :  { %9442 = vst [vmem:[#allocation62_spill] sm:$0xff] %v6658_v51  ;;  %9443 = vst [vmem:[#allocation63_spill] sm:$0xff] %v6660_v11  ;;  %v1708_v8 = vrot.slane %v6658_v51, %v6371_v12  ;;  %v1704_v45 = vrot.slane %v6660_v11, %v6374_v58 }
 0x242   :  { %v6670_v44 = vpop.xlane.xlu1 %1059  ;;  %v6672_v6 = vpop.xlane.xlu0 %1057 }
 0x243   :  { %9444 = vst [vmem:[#allocation64_spill] sm:$0xff] %v6670_v44  ;;  %9445 = vst [vmem:[#allocation65_spill] sm:$0xff] %v6672_v6  ;;  %v1717_v38 = vrot.slane %v6670_v44, %v6371_v12  ;;  %v1713_v48 = vrot.slane %v6672_v6, %v6374_v58  ;;  %v1709_v6 = vsel %vm1240_vm0, %v1708_v8, %v1704_v45 }
 0x244   :  { %v1860_v44 = vsel %vm1813_vm3, %v1700_v15, %v1859_v28 }
 0x245   :  { %v1718_v24 = vsel %vm1240_vm0, %v1717_v38, %v1713_v48  ;;  %v1861_v54 = vsel %vm1815_vm4, %v1709_v6, %v1860_v44 }
 0x246   :  { %v6692_v62 = vpop.xlane.xlu1 %1063  ;;  %v6694_v40 = vpop.xlane.xlu0 %1061  ;;  %v1862_v8 = vsel %vm1817_vm5, %v1718_v24, %v1861_v54 }
 0x247   :  { %9446 = vst [vmem:[#allocation66_spill] sm:$0xff] %v6692_v62  ;;  %9447 = vst [vmem:[#allocation67_spill] sm:$0xff] %v6694_v40  ;;  %v1726_v11 = vrot.slane %v6692_v62, %v6371_v12  ;;  %v1722_v9 = vrot.slane %v6694_v40, %v6374_v58 }
 0x249   :  { %v1727_v13 = vsel %vm1240_vm0, %v1726_v11, %v1722_v9 }
 0x24a   :  { %v6707_v51 = vpop.xlane.xlu1 %1067  ;;  %v6709_v37 = vpop.xlane.xlu0 %1065  ;;  %v1863_v15 = vsel %vm1819_vm6, %v1727_v13, %v1862_v8 }
 0x24b   :  { %9448 = vst [vmem:[#allocation68_spill] sm:$0xff] %v6707_v51  ;;  %9449 = vst [vmem:[#allocation69_spill] sm:$0xff] %v6709_v37  ;;  %v1735_v61 = vrot.slane %v6707_v51, %v6371_v12  ;;  %v1731_v43 = vrot.slane %v6709_v37, %v6374_v58 }
 0x24d   :  { %v1736_v45 = vsel %vm1240_vm0, %v1735_v61, %v1731_v43 }
 0x24e   :  { %v6720_v14 = vpop.xlane.xlu1 %1071  ;;  %v6722_v38 = vpop.xlane.xlu0 %1069  ;;  %v1864_v11 = vsel %vm1821_vm7, %v1736_v45, %v1863_v15 }
 0x24f   :  { %9450 = vst [vmem:[#allocation70_spill] sm:$0xff] %v6720_v14  ;;  %9451 = vst [vmem:[#allocation71_spill] sm:$0xff] %v6722_v38  ;;  %v1899_v48 = vsel %vm1880_vm8, %v1864_v11, -inf  ;;  %v1744_v11 = vrot.slane %v6720_v14, %v6371_v12 }
 0x250   :  { %1900 = vmax.xlane.f32.xlu0 %v1899_v48  ;;  %v1740_v48 = vrot.slane %v6722_v38, %v6374_v58 }
 0x252   :  { %v6726_v34 = vpop.xlane.xlu1 %1075  ;;  %v6728_v9 = vpop.xlane.xlu0 %1073 }
 0x253   :  { %9452 = vst [vmem:[#allocation72_spill] sm:$0xff] %v6726_v34  ;;  %9453 = vst [vmem:[#allocation73_spill] sm:$0xff] %v6728_v9  ;;  %v1753_v61 = vrot.slane %v6726_v34, %v6371_v12  ;;  %v1749_v43 = vrot.slane %v6728_v9, %v6374_v58 }
 0x256   :  { %v6730_v44 = vpop.xlane.xlu1 %1079  ;;  %v6732_v6 = vpop.xlane.xlu0 %1077 }
 0x257   :  { %9454 = vst [vmem:[#allocation74_spill] sm:$0xff] %v6730_v44  ;;  %9455 = vst [vmem:[#allocation75_spill] sm:$0xff] %v6732_v6  ;;  %v1762_v54 = vrot.slane %v6730_v44, %v6371_v12  ;;  %v1758_v8 = vrot.slane %v6732_v6, %v6374_v58  ;;  %v1754_v44 = vsel %vm1240_vm0, %v1753_v61, %v1749_v43 }
 0x259   :  { %v1763_v14 = vsel %vm1240_vm0, %v1762_v54, %v1758_v8 }
 0x25a   :  { %v6734_v18 = vpop.xlane.xlu1 %1083  ;;  %v6736_v28 = vpop.xlane.xlu0 %1081 }
 0x25b   :  { %9456 = vst [vmem:[#allocation76_spill] sm:$0xff] %v6734_v18  ;;  %9457 = vst [vmem:[#allocation77_spill] sm:$0xff] %v6736_v28  ;;  %v1771_v37 = vrot.slane %v6734_v18, %v6371_v12  ;;  %v1767_v9 = vrot.slane %v6736_v28, %v6374_v58  ;;  %v1745_v28 = vsel %vm1240_vm0, %v1744_v11, %v1740_v48 }
 0x25c   :  { %v1865_v43 = vsel %vm1809_vm1, %v1754_v44, %v1745_v28 }
 0x25d   :  { %v1866_v54 = vsel %vm1811_vm2, %v1763_v14, %v1865_v43  ;;  %v5902_v43 = vmov 0  }
 0x25e   :  { %v6738_v24 = vpop.xlane.xlu1 %1087  ;;  %v6740_v13 = vpop.xlane.xlu0 %1085  ;;  %5394 = vset.pattern.permute.xlu0 %v5902_v43  ;;  %5393 = vset.pattern.permute.xlu1 %v5902_v43 }
 0x25f   :  { %9458 = vst [vmem:[#allocation78_spill] sm:$0xff] %v6738_v24  ;;  %9459 = vst [vmem:[#allocation79_spill] sm:$0xff] %v6740_v13  ;;  %v1780_v40 = vrot.slane %v6738_v24, %v6371_v12  ;;  %v1776_v6 = vrot.slane %v6740_v13, %v6374_v58  ;;  %v1772_v24 = vsel %vm1240_vm0, %v1771_v37, %v1767_v9 }
 0x262   :  { %v6750_v45 = vpop.xlane.xlu1 %1091  ;;  %v6752_v15 = vpop.xlane.xlu0 %1089 }
 0x263   :  { %9460 = vst [vmem:[#allocation80_spill] sm:$0xff] %v6750_v45  ;;  %9461 = vst [vmem:[#allocation81_spill] sm:$0xff] %v6752_v15  ;;  %v1789_v34 = vrot.slane %v6750_v45, %v6371_v12  ;;  %v1785_v38 = vrot.slane %v6752_v15, %v6374_v58  ;;  %v1781_v15 = vsel %vm1240_vm0, %v1780_v40, %v1776_v6 }
 0x264   :  { %v1867_v45 = vsel %vm1813_vm3, %v1772_v24, %v1866_v54 }
 0x265   :  { %v1790_v8 = vsel %vm1240_vm0, %v1789_v34, %v1785_v38  ;;  %v1868_v40 = vsel %vm1815_vm4, %v1781_v15, %v1867_v45 }
 0x266   :  { %v6772_v18 = vpop.xlane.xlu1 %1095  ;;  %v6774_v51 = vpop.xlane.xlu0 %1093  ;;  %v1869_v14 = vsel %vm1817_vm5, %v1790_v8, %v1868_v40 }
 0x267   :  { %9462 = vst [vmem:[#allocation82_spill] sm:$0xff] %v6772_v18  ;;  %9463 = vst [vmem:[#allocation83_spill] sm:$0xff] %v6774_v51  ;;  %v1798_v13 = vrot.slane %v6772_v18, %v6371_v12  ;;  %v1794_v61 = vrot.slane %v6774_v51, %v6374_v58 }
 0x269   :  { %v1799_v37 = vsel %vm1240_vm0, %v1798_v13, %v1794_v61 }
 0x26a   :  { %v6787_v62 = vpop.xlane.xlu1 %1099  ;;  %v6789_v11 = vpop.xlane.xlu0 %1097  ;;  %v1870_v34 = vsel %vm1819_vm6, %v1799_v37, %v1869_v14 }
 0x26b   :  { %9464 = vst [vmem:[#allocation84_spill] sm:$0xff] %v6787_v62  ;;  %9465 = vst [vmem:[#allocation85_spill] sm:$0xff] %v6789_v11  ;;  %v1807_v9 = vrot.slane %v6787_v62, %v6371_v12  ;;  %v1803_v44 = vrot.slane %v6789_v11, %v6374_v58 }
 0x26d   :  { %v1808_v38 = vsel %vm1240_vm0, %v1807_v9, %v1803_v44 }
 0x26e   :  { %v6800_v6 = vpop.xlane.xlu1 %975  ;;  %v6802_v28 = vpop.xlane.xlu0 %973  ;;  %v1871_v24 = vsel %vm1821_vm7, %v1808_v38, %v1870_v34 }
 0x26f   :  { %9466 = vst [vmem:[#allocation86_spill] sm:$0xff] %v6800_v6  ;;  %9467 = vst [vmem:[#allocation87_spill] sm:$0xff] %v6802_v28  ;;  %v1902_v13 = vsel %vm1880_vm8, %v1871_v24, -inf  ;;  %v1524_v43 = vrot.slane %v6802_v28, %v6374_v58 }
 0x270   :  { %1903 = vmax.xlane.f32.xlu1 %v1902_v13  ;;  %v1528_v13 = vrot.slane %v6800_v6, %v6371_v12 }
 0x272   :  { %v6806_v48 = vpop.xlane.xlu1 %979  ;;  %v6808_v61 = vpop.xlane.xlu0 %977 }
 0x273   :  { %9468 = vst [vmem:[#allocation88_spill] sm:$0xff] %v6806_v48  ;;  %9469 = vst [vmem:[#allocation89_spill] sm:$0xff] %v6808_v61  ;;  %v1537_v44 = vrot.slane %v6806_v48, %v6371_v12  ;;  %v1533_v40 = vrot.slane %v6808_v61, %v6374_v58 }
 0x276   :  { %v6810_v45 = vpop.xlane.xlu1 %983  ;;  %v6812_v15 = vpop.xlane.xlu0 %981 }
 0x277   :  { %9470 = vst [vmem:[#allocation90_spill] sm:$0xff] %v6810_v45  ;;  %9471 = vst [vmem:[#allocation91_spill] sm:$0xff] %v6812_v15  ;;  %v1546_v14 = vrot.slane %v6810_v45, %v6371_v12  ;;  %v1542_v38 = vrot.slane %v6812_v15, %v6374_v58  ;;  %v1538_v45 = vsel %vm1240_vm0, %v1537_v44, %v1533_v40 }
 0x279   :  { %v1547_v6 = vsel %vm1240_vm0, %v1546_v14, %v1542_v38 }
 0x27a   :  { %v6814_v54 = vpop.xlane.xlu1 %987  ;;  %v6816_v8 = vpop.xlane.xlu0 %985 }
 0x27b   :  { %9472 = vst [vmem:[#allocation92_spill] sm:$0xff] %v6814_v54  ;;  %9473 = vst [vmem:[#allocation93_spill] sm:$0xff] %v6816_v8  ;;  %v1555_v11 = vrot.slane %v6814_v54, %v6371_v12  ;;  %v1551_v61 = vrot.slane %v6816_v8, %v6374_v58  ;;  %v1529_v8 = vsel %vm1240_vm0, %v1528_v13, %v1524_v43 }
 0x27c   :  { %v1844_v40 = vsel %vm1809_vm1, %v1538_v45, %v1529_v8 }
 0x27d   :  { %v1845_v14 = vsel %vm1811_vm2, %v1547_v6, %v1844_v40 }
 0x27e   :  { %v6818_v37 = vpop.xlane.xlu1 %991  ;;  %v6820_v9 = vpop.xlane.xlu0 %989 }
 0x27f   :  { %9474 = vst [vmem:[#allocation94_spill] sm:$0xff] %v6818_v37  ;;  %9475 = vst [vmem:[#allocation95_spill] sm:$0xff] %v6820_v9  ;;  %v1564_v51 = vrot.slane %v6818_v37, %v6371_v12  ;;  %v1560_v15 = vrot.slane %v6820_v9, %v6374_v58  ;;  %v1556_v37 = vsel %vm1240_vm0, %v1555_v11, %v1551_v61 }
 0x282   :  { %v6830_v34 = vpop.xlane.xlu1 %995  ;;  %v6832_v24 = vpop.xlane.xlu0 %993 }
 0x283   :  { %9476 = vst [vmem:[#allocation96_spill] sm:$0xff] %v6830_v34  ;;  %9477 = vst [vmem:[#allocation97_spill] sm:$0xff] %v6832_v24  ;;  %v1573_v48 = vrot.slane %v6830_v34, %v6371_v12  ;;  %v1569_v28 = vrot.slane %v6832_v24, %v6374_v58  ;;  %v1565_v24 = vsel %vm1240_vm0, %v1564_v51, %v1560_v15 }
 0x284   :  { %v1846_v34 = vsel %vm1813_vm3, %v1556_v37, %v1845_v14 }
 0x285   :  { %v1574_v38 = vsel %vm1240_vm0, %v1573_v48, %v1569_v28  ;;  %v1847_v51 = vsel %vm1815_vm4, %v1565_v24, %v1846_v34 }
 0x286   :  { %v6852_v54 = vpop.xlane.xlu1 %999  ;;  %v6854_v62 = vpop.xlane.xlu0 %997  ;;  %v1848_v6 = vsel %vm1817_vm5, %v1574_v38, %v1847_v51 }
 0x287   :  { %9478 = vst [vmem:[#allocation98_spill] sm:$0xff] %v6852_v54  ;;  %9479 = vst [vmem:[#allocation99_spill] sm:$0xff] %v6854_v62  ;;  %v1582_v9 = vrot.slane %v6852_v54, %v6371_v12  ;;  %v1578_v44 = vrot.slane %v6854_v62, %v6374_v58 }
 0x289   :  { %v1583_v11 = vsel %vm1240_vm0, %v1582_v9, %v1578_v44 }
 0x28a   :  { %v6867_v18 = vpop.xlane.xlu1 %1003  ;;  %v6869_v13 = vpop.xlane.xlu0 %1001  ;;  %v1849_v48 = vsel %vm1819_vm6, %v1583_v11, %v1848_v6 }
 0x28b   :  { %9480 = vst [vmem:[#allocation100_spill] sm:$0xff] %v6867_v18  ;;  %9481 = vst [vmem:[#allocation101_spill] sm:$0xff] %v6869_v13  ;;  %v1591_v61 = vrot.slane %v6867_v18, %v6371_v12  ;;  %v1587_v45 = vrot.slane %v6869_v13, %v6374_v58 }
 0x28d   :  { %v1592_v28 = vsel %vm1240_vm0, %v1591_v61, %v1587_v45 }
 0x28e   :  { %v6880_v15 = vpop.xlane.xlu0 %1005  ;;  %v1850_v8 = vsel %vm1821_vm7, %v1592_v28, %v1849_v48  ;;  %v6884_v9 = vpop.xlane.xlu1 %1007 }
 0x28f   :  { %9482 = vst [vmem:[#allocation102_spill] sm:$0xff] %v6880_v15  ;;  %v1893_v37 = vsel %vm1880_vm8, %v1850_v8, -inf  ;;  %9483 = vst [vmem:[#allocation103_spill] sm:$0xff] %v6884_v9  ;;  %v1600_v62 = vrot.slane %v6884_v9, %v6371_v12  ;;  %v1596_v18 = vrot.slane %v6880_v15, %v6374_v58 }
 0x290   :  { %1894 = vmax.xlane.f32.xlu0 %v1893_v37 }
 0x292   :  { %v6886_v43 = vpop.xlane.xlu0 %1009  ;;  %v6888_v44 = vpop.xlane.xlu1 %1011 }
 0x293   :  { %9484 = vst [vmem:[#allocation104_spill] sm:$0xff] %v6886_v43  ;;  %9485 = vst [vmem:[#allocation105_spill] sm:$0xff] %v6888_v44  ;;  %v1609_v48 = vrot.slane %v6888_v44, %v6371_v12  ;;  %v1605_v8 = vrot.slane %v6886_v43, %v6374_v58 }
 0x295   :  { %v1610_v9 = vsel %vm1240_vm0, %v1609_v48, %v1605_v8  ;;  %v1601_v8 = vsel %vm1240_vm0, %v1600_v62, %v1596_v18 }
 0x296   :  { %v6890_v34 = vpop.xlane.xlu0 %1013  ;;  %v6894_v40 = vpop.xlane.xlu1 %1015 }
 0x297   :  { %9486 = vst [vmem:[#allocation106_spill] sm:$0xff] %v6890_v34  ;;  %9488 = vst [vmem:[#allocation108_spill] sm:$0xff] %v6894_v40  ;;  %v1618_v37 = vrot.slane %v6894_v40, %v6371_v12  ;;  %v1614_v13 = vrot.slane %v6890_v34, %v6374_v58 }
 0x299   :  { %v1619_v0 = vsel %vm1240_vm0, %v1618_v37, %v1614_v13  ;;  %v1851_v13 = vsel %vm1809_vm1, %v1610_v9, %v1601_v8 }
 0x29a   :  { %v6892_v24 = vpop.xlane.xlu0 %1017  ;;  %v6898_v38 = vpop.xlane.xlu1 %1019 }
 0x29b   :  { %9487 = vst [vmem:[#allocation107_spill] sm:$0xff] %v6892_v24  ;;  %9490 = vst [vmem:[#allocation110_spill] sm:$0xff] %v6898_v38  ;;  %v1627_v54 = vrot.slane %v6898_v38, %v6371_v12  ;;  %v1623_v44 = vrot.slane %v6892_v24, %v6374_v58  ;;  %v6942_v24 = vsub.s32 1, %v9498_v26 }
 0x29e   :  { %v6896_v14 = vpop.xlane.xlu0 %1021  ;;  %v6902_v61 = vpop.xlane.xlu1 %1023 }
 0x29f   :  { %9489 = vst [vmem:[#allocation109_spill] sm:$0xff] %v6896_v14  ;;  %9492 = vst [vmem:[#allocation112_spill] sm:$0xff] %v6902_v61  ;;  %v1636_v43 = vrot.slane %v6902_v61, %v6371_v12  ;;  %v1632_v34 = vrot.slane %v6896_v14, %v6374_v58 }
 0x2a1   :  { %v1637_v37 = vsel %vm1240_vm0, %v1636_v43, %v1632_v34  ;;  %v6974_v34 = vsub.s32 3, %v9498_v26 }
 0x2a2   :  { %v6900_v11 = vpop.xlane.xlu0 %1025  ;;  %v6906_v51 = vpop.xlane.xlu1 %1027 }
 0x2a3   :  { %9491 = vst [vmem:[#allocation111_spill] sm:$0xff] %v6900_v11  ;;  %9494 = vst [vmem:[#allocation114_spill] sm:$0xff] %v6906_v51  ;;  %v1645_v15 = vrot.slane %v6906_v51, %v6371_v12  ;;  %v1641_v38 = vrot.slane %v6900_v11, %v6374_v58  ;;  %v1628_v51 = vsel %vm1240_vm0, %v1627_v54, %v1623_v44  ;;  %v9500_v54 = vld [vmem:[#allocation18_spill] sm:$0xff] }
 0x2a6   :  { %v6904_v45 = vpop.xlane.xlu0 %1029  ;;  %v6910_v28 = vpop.xlane.xlu1 %1031 }
 0x2a7   :  { %9493 = vst [vmem:[#allocation113_spill] sm:$0xff] %v6904_v45  ;;  %9496 = vst [vmem:[#allocation116_spill] sm:$0xff] %v6910_v28  ;;  %v1654_v61 = vrot.slane %v6910_v28, %v6371_v12  ;;  %v1650_v14 = vrot.slane %v6904_v45, %v6374_v58  ;;  %v1852_v28 = vsel %vm1811_vm2, %v1619_v0, %v1851_v13 }
 0x2a8   :  { %v1646_v45 = vsel %vm1240_vm0, %v1645_v15, %v1641_v38  ;;  %v1853_v62 = vsel %vm1813_vm3, %v1628_v51, %v1852_v28  ;;  %v9502_v28 = vld [vmem:[#allocation20_spill] sm:$0xff] }
 0x2a9   :  { %v1854_v0 = vsel %vm1815_vm4, %v1637_v37, %v1853_v62 }
 0x2aa   :  { %v6908_v6 = vpop.xlane.xlu0 %1033  ;;  %v6934_v40 = vpop.xlane.xlu1 %1035  ;;  %v1855_v15 = vsel %vm1817_vm5, %v1646_v45, %v1854_v0  ;;  %v9506_v0 = vld [vmem:[#allocation24_spill] sm:$0xff] }
 0x2ab   :  { %9495 = vst [vmem:[#allocation115_spill] sm:$0xff] %v6908_v6  ;;  %9497 = vst [vmem:[#allocation117_spill] sm:$0xff] %v6934_v40  ;;  %v1663_v11 = vrot.slane %v6934_v40, %v6371_v12  ;;  %v1659_v52 = vrot.slane %v6908_v6, %v6374_v58  ;;  %v1655_v12 = vsel %vm1240_vm0, %v1654_v61, %v1650_v14  ;;  %v9501_v58 = vld [vmem:[#allocation19_spill] sm:$0xff] }
 0x2ac   :  { %v1856_v38 = vsel %vm1819_vm6, %v1655_v12, %v1855_v15  ;;  %v9504_v12 = vld [vmem:[#allocation22_spill] sm:$0xff] }
 0x2ad   :  { %v1664_v43 = vsel %vm1240_vm0, %v1663_v11, %v1659_v52  ;;  %v6982_v52 = vsub.s32 4, %v9498_v26  ;;  %v9503_v11 = vld [vmem:[#allocation21_spill] sm:$0xff] }
 0x2ae   :  { %v6928_v32 = vpop.xlane.xlu0 %1888  ;;  %v1857_v14 = vsel %vm1821_vm7, %v1664_v43, %v1856_v38 }
 0x2af   :  { %v1980_v48 = vrot.slane %v6928_v32, %v9499_v29  ;;  %v1984_v18 = vrot.slane %v6928_v32, %v6942_v24  ;;  %v1988_v51 = vrot.slane %v6928_v32, %v6962_v36  ;;  %v1896_v45 = vsel %vm1880_vm8, %v1857_v14, -inf }
 0x2b0   :  { %1897 = vmax.xlane.f32.xlu1 %v1896_v45 }
 0x2b1   :  { %v2266_v44 = vsub.f32 %v9500_v54, %v1980_v48  ;;  %v2265_v9 = vsub.f32 %v9501_v58, %v1980_v48  ;;  %v2268_v8 = vsub.f32 %v9502_v28, %v1984_v18  ;;  %v2267_v61 = vsub.f32 %v9503_v11, %v1984_v18 }
 0x2b2   :  { %v1992_v48 = vrot.slane %v6928_v32, %v6974_v34  ;;  %v2270_v37 = vsub.f32 %v9504_v12, %v1988_v51  ;;  %v6990_v54 = vsub.s32 5, %v9498_v26  ;;  %v1996_v18 = vrot.slane %v6928_v32, %v6982_v52  ;;  %v9508_v12 = vld [vmem:[#allocation26_spill] sm:$0xff] }
 0x2b3   :  { %v2427_v13 = vmul.f32 1.442695, %v2266_v44  ;;  %v2425_v58 = vmul.f32 1.442695, %v2265_v9  ;;  %v2431_v62 = vmul.f32 1.442695, %v2268_v8 }
 0x2b4   :  { %v9505_v44 = vld [vmem:[#allocation23_spill] sm:$0xff]  ;;  %v2429_v43 = vmul.f32 1.442695, %v2267_v61  ;;  %v2272_v15 = vsub.f32 %v9506_v0, %v1992_v48  ;;  %v2435_v38 = vmul.f32 1.442695, %v2270_v37  ;;  %v6997_v28 = vsub.s32 6, %v9498_v26  ;;  %v7003_v61 = vpop.xlane.xlu0 %1882 }
 0x2b5   :  { %5535 = vpow2.f32 %v2427_v13  ;;  %v2269_v9 = vsub.f32 %v9505_v44, %v1988_v51  ;;  %v9507_v13 = vld [vmem:[#allocation25_spill] sm:$0xff]  ;;  %v2274_v51 = vsub.f32 %v6246_v50, %v1996_v18  ;;  %v2273_v37 = vsub.f32 %v9508_v12, %v1996_v18 }
 0x2b6   :  { %5537 = vpow2.f32 %v2425_v58  ;;  %v2271_v8 = vsub.f32 %v9507_v13, %v1992_v48  ;;  %v2000_v58 = vrot.slane %v6928_v32, %v6990_v54  ;;  %v2439_v11 = vmul.f32 1.442695, %v2272_v15  ;;  %v9510_v15 = vld [vmem:[#allocation28_spill] sm:$0xff] }
 0x2b7   :  { %5539 = vpow2.f32 %v2431_v62  ;;  %v2433_v14 = vmul.f32 1.442695, %v2269_v9  ;;  %v2004_v45 = vrot.slane %v6928_v32, %v6997_v28  ;;  %v1924_v48 = vrot.slane %v7003_v61, %v6962_v36  ;;  %v9509_v9 = vld [vmem:[#allocation27_spill] sm:$0xff] }
 0x2b8   :  { %5541 = vpow2.f32 %v2429_v43  ;;  %v2437_v62 = vmul.f32 1.442695, %v2271_v8  ;;  %v7011_v44 = vsub.s32 7, %v9498_v26  ;;  %v2276_v43 = vsub.f32 %v9509_v9, %v2000_v58 }
 0x2b9   :  { %5543 = vpow2.f32 %v2435_v38  ;;  %v2443_v50 = vmul.f32 1.442695, %v2274_v51  ;;  %v2275_v38 = vsub.f32 %v9510_v15, %v2000_v58  ;;  %v2278_v18 = vsub.f32 %v6260_v41, %v2004_v45  ;;  %v7027_v58 = vpop.xlane.xlu1 %1891 }
 0x2ba   :  { %5545 = vpow2.f32 %v2433_v14  ;;  %v2441_v8 = vmul.f32 1.442695, %v2273_v37  ;;  %v2237_v14 = vsub.f32 %v6351_v56, %v1924_v48  ;;  %v2008_v26 = vrot.slane %v6928_v32, %v7011_v44 }
 0x2bb   :  { %5547 = vpow2.f32 %v2439_v11  ;;  %v2447_v11 = vmul.f32 1.442695, %v2276_v43  ;;  %v2238_v51 = vsub.f32 %v6349_v63, %v1924_v48  ;;  %v2445_v9 = vmul.f32 1.442695, %v2275_v38 }
 0x2bc   :  { %5549 = vpow2.f32 %v2437_v62  ;;  %v2451_v41 = vmul.f32 1.442695, %v2278_v18  ;;  %v2277_v37 = vsub.f32 %v6262_v31, %v2004_v45  ;;  %v2369_v56 = vmul.f32 1.442695, %v2237_v14  ;;  %v9512_v14 = vld [vmem:[#allocation30_spill] sm:$0xff] }
 0x2bd   :  { %5551 = vpow2.f32 %v2443_v50  ;;  %v2012_v32 = vrot.slane %v7027_v58, %v9499_v29  ;;  %v2280_v63 = vsub.f32 %v6267_v20, %v2008_v26  ;;  %v2371_v48 = vmul.f32 1.442695, %v2238_v51  ;;  %v9511_v20 = vld [vmem:[#allocation29_spill] sm:$0xff] }
 0x2be   :  { %5553 = vpow2.f32 %v2441_v8  ;;  %v2279_v31 = vsub.f32 %v6269_v39, %v2008_v26  ;;  %v2449_v45 = vmul.f32 1.442695, %v2277_v37  ;;  %v2016_v15 = vrot.slane %v7027_v58, %v6942_v24 }
 0x2bf   :  { %5555 = vpow2.f32 %v2447_v11  ;;  %v2282_v38 = vsub.f32 %v9511_v20, %v2012_v32  ;;  %v2455_v18 = vmul.f32 1.442695, %v2280_v63  ;;  %v2281_v11 = vsub.f32 %v9512_v14, %v2012_v32  ;;  %v9514_v63 = vld [vmem:[#allocation32_spill] sm:$0xff]  ;;  %v9515_v20 = vld [vmem:[#allocation33_spill] sm:$0xff] }
 0x2c0   :  { %5557 = vpow2.f32 %v2445_v9  ;;  %v2453_v39 = vmul.f32 1.442695, %v2279_v31  ;;  %v2020_v51 = vrot.slane %v7027_v58, %v6962_v36  ;;  %v9513_v9 = vld [vmem:[#allocation31_spill] sm:$0xff] }
 0x2c1   :  { %5559 = vpow2.f32 %v2451_v41  ;;  %v2284_v41 = vsub.f32 %v9513_v9, %v2016_v15  ;;  %v2459_v37 = vmul.f32 1.442695, %v2282_v38  ;;  %v2457_v32 = vmul.f32 1.442695, %v2281_v11  ;;  %v9516_v11 = vld [vmem:[#allocation34_spill] sm:$0xff] }
 0x2c2   :  { %v7014_v0 = vpop.eup %5535  ;;  %5561 = vpow2.f32 %v2369_v56  ;;  %v2286_v14 = vsub.f32 %v9515_v20, %v2020_v51 }
 0x2c3   :  { %v7017_v13 = vpop.eup %5537  ;;  %2845 = vperm.xlu0 %5394, %v7014_v0   ;;  %5563 = vpow2.f32 %v2371_v48  ;;  %v2283_v48 = vsub.f32 %v9514_v63, %v2016_v15  ;;  %v2463_v38 = vmul.f32 1.442695, %v2284_v41  ;;  %v9517_v41 = vld [vmem:[#allocation35_spill] sm:$0xff] }
 0x2c4   :  { %v7025_v12 = vpop.eup %5539  ;;  %2842 = vperm.xlu1 %5393, %v7017_v13   ;;  %5565 = vpow2.f32 %v2449_v45  ;;  %v2024_v45 = vrot.slane %v7027_v58, %v6974_v34  ;;  %v2467_v40 = vmul.f32 1.442695, %v2286_v14 }
 0x2c5   :  { %v7032_v62 = vpop.eup %5541  ;;  %5567 = vpow2.f32 %v2455_v18  ;;  %v2461_v63 = vmul.f32 1.442695, %v2283_v48 }
 0x2c6   :  { %v7037_v43 = vpop.eup %5543  ;;  %5569 = vpow2.f32 %v2453_v39  ;;  %v2285_v39 = vsub.f32 %v9516_v11, %v2020_v51  ;;  %v2288_v20 = vsub.f32 %v9517_v41, %v2024_v45  ;;  %v2032_v51 = vrot.slane %v7027_v58, %v6990_v54 }
 0x2c7   :  { %2851 = vperm.xlu0 %5394, %v7025_v12   ;;  %v7042_v50 = vpop.eup %5545  ;;  %5571 = vpow2.f32 %v2459_v37  ;;  %v2028_v37 = vrot.slane %v7027_v58, %v6982_v52 }
 0x2c8   :  { %2848 = vperm.xlu1 %5393, %v7032_v62   ;;  %v7047_v8 = vpop.eup %5547  ;;  %5573 = vpow2.f32 %v2457_v32  ;;  %v9518_v32 = vld [vmem:[#allocation36_spill] sm:$0xff]  ;;  %v2465_v11 = vmul.f32 1.442695, %v2285_v39 }
 0x2c9   :  { %v7052_v26 = vpop.eup %5549  ;;  %5575 = vpow2.f32 %v2463_v38  ;;  %v2287_v48 = vsub.f32 %v9518_v32, %v2024_v45  ;;  %v2290_v55 = vsub.f32 %v6302_v49, %v2028_v37  ;;  %v2471_v38 = vmul.f32 1.442695, %v2288_v20 }
 0x2ca   :  { %v7057_v56 = vpop.eup %5551  ;;  %5577 = vpow2.f32 %v2461_v63  ;;  %v2289_v45 = vsub.f32 %v6304_v4, %v2028_v37  ;;  %v2036_v49 = vrot.slane %v7027_v58, %v6997_v28  ;;  %v7112_v37 = vpack.c.bf16 %v7014_v0, %v7017_v13 }
 0x2cb   :  { %2857 = vperm.xlu0 %5394, %v7037_v43   ;;  %v7062_v31 = vpop.eup %5553  ;;  %5579 = vpow2.f32 %v2467_v40  ;;  %v2469_v39 = vmul.f32 1.442695, %v2287_v48  ;;  %v2292_v40 = vsub.f32 %v6309_v59, %v2032_v51  ;;  %v2475_v20 = vmul.f32 1.442695, %v2290_v55 }
 0x2cc   :  { %2854 = vperm.xlu1 %5393, %v7042_v50   ;;  %v7067_v18 = vpop.eup %5555  ;;  %5581 = vpow2.f32 %v2465_v11  ;;  %v2473_v4 = vmul.f32 1.442695, %v2289_v45  ;;  %9520 = vst [vmem:[#allocation14_spill] sm:$0xff] %v7112_v37  ;;  %v2040_v59 = vrot.slane %v7027_v58, %v7011_v44  ;;  %v2294_v55 = vsub.f32 %v6316_v25, %v2036_v49 }
 0x2cd   :  { %v7070_v9 = vpop.eup %5557  ;;  %5583 = vpow2.f32 %v2471_v38  ;;  %v2479_v11 = vmul.f32 1.442695, %v2292_v40  ;;  %v7128_v0 = vpack.c.bf16 %v7037_v43, %v7042_v50  ;;  %v2293_v13 = vsub.f32 %v6318_v35, %v2036_v49  ;;  %v9523_v43 = vld [vmem:[#allocation37_spill] sm:$0xff]  ;;  %v9524_v49 = vld [vmem:[#allocation39_spill] sm:$0xff] }
 0x2ce   :  { %v7073_v15 = vpop.eup %5559  ;;  %5585 = vpow2.f32 %v2469_v39  ;;  %v2483_v45 = vmul.f32 1.442695, %v2294_v55  ;;  %v2295_v50 = vsub.f32 %v9523_v43, %v2040_v59  ;;  %v9525_v55 = vld [vmem:[#allocation41_spill] sm:$0xff] }
 0x2cf   :  { %2863 = vperm.xlu0 %5394, %v7047_v8   ;;  %v7076_v6 = vpop.eup %5561  ;;  %5587 = vpow2.f32 %v2475_v20  ;;  %9522 = vst [vmem:[#allocation19_spill] sm:$0xff] %v7128_v0  ;;  %v2481_v35 = vmul.f32 1.442695, %v2293_v13 }
 0x2d0   :  { %2860 = vperm.xlu1 %5393, %v7052_v26   ;;  %v7081_v57 = vpop.eup %5563  ;;  %5589 = vpow2.f32 %v2473_v4  ;;  %v2485_v4 = vmul.f32 1.442695, %v2295_v50  ;;  %v9526_v50 = vld [vmem:[#allocation38_spill] sm:$0xff] }
 0x2d1   :  { %v7088_v2 = vpop.eup %5565  ;;  %v7093_v14 = vpack.c.bf16 %v7081_v57, %v7076_v6  ;;  %5591 = vpow2.f32 %v2479_v11 }
 0x2d2   :  { %v7095_v41 = vpop.eup %5567 }
 0x2d3   :  { %2869 = vperm.xlu0 %5394, %v7057_v56   ;;  %9519 = vst [vmem:[#allocation13_spill] sm:$0xff] %v7093_v14  ;;  %v7100_v63 = vpop.eup %5569  ;;  %v2291_v14 = vsub.f32 %v6311_v7, %v2032_v51  ;;  %v7124_v7 = vpack.c.bf16 %v7025_v12, %v7032_v62  ;;  %v2296_v51 = vsub.f32 %v6325_v10, %v2040_v59 }
 0x2d4   :  { %2866 = vperm.xlu1 %5393, %v7062_v31   ;;  %v7105_v32 = vpop.eup %5571  ;;  %v1916_v12 = vrot.slane %v7003_v61, %v9499_v29  ;;  %v7146_v10 = vrot.slane %v7003_v61, %v6982_v52  ;;  %v1920_v59 = vrot.slane %v7003_v61, %v6942_v24 }
 0x2d5   :  { %v7114_v48 = vpop.eup %5573  ;;  %9521 = vst [vmem:[#allocation18_spill] sm:$0xff] %v7124_v7  ;;  %v2477_v25 = vmul.f32 1.442695, %v2291_v14  ;;  %v2487_v39 = vmul.f32 1.442695, %v2296_v51 }
 0x2d6   :  { %v7119_v38 = vpop.eup %5575  ;;  %v2233_v40 = vsub.f32 %v9524_v49, %v1916_v12  ;;  %v2234_v11 = vsub.f32 %v9525_v55, %v1916_v12  ;;  %v2242_v51 = vsub.f32 %v6365_v47, %v7146_v10  ;;  %v7165_v12 = vrot.slane %v7003_v61, %v6997_v28 }
 0x2d7   :  { %2875 = vperm.xlu0 %5394, %v7067_v18   ;;  %v7132_v58 = vpop.eup %5577  ;;  %5593 = vpow2.f32 %v2477_v25  ;;  %v7158_v25 = vrot.slane %v7003_v61, %v6990_v54  ;;  %v7171_v47 = vrot.slane %v7003_v61, %v7011_v44 }
 0x2d8   :  { %2872 = vperm.xlu1 %5393, %v7070_v9   ;;  %v7137_v62 = vpop.eup %5579  ;;  %5595 = vpow2.f32 %v2483_v45  ;;  %v2361_v45 = vmul.f32 1.442695, %v2233_v40  ;;  %v2363_v49 = vmul.f32 1.442695, %v2234_v11  ;;  %v2379_v55 = vmul.f32 1.442695, %v2242_v51 }
 0x2d9   :  { %v7142_v14 = vpop.eup %5581  ;;  %5597 = vpow2.f32 %v2481_v35  ;;  %v2235_v35 = vsub.f32 %v9526_v50, %v1920_v59  ;;  %v9527_v40 = vld [vmem:[#allocation40_spill] sm:$0xff]  ;;  %v2246_v37 = vsub.f32 %v6401_v33, %v7165_v12  ;;  %v7180_v51 = vpack.c.bf16 %v7047_v8, %v7052_v26 }
 0x2da   :  { %v7149_v20 = vpop.eup %5583  ;;  %5599 = vpow2.f32 %v2487_v39  ;;  %v2244_v39 = vsub.f32 %v6376_v21, %v7158_v25  ;;  %v7198_v26 = vpack.c.bf16 %v7073_v15, %v7088_v2 }
 0x2db   :  { %2881 = vperm.xlu0 %5394, %v7073_v15   ;;  %v5586_v13 = vpop.eup %5585  ;;  %5601 = vpow2.f32 %v2485_v4  ;;  %v2236_v4 = vsub.f32 %v9527_v40, %v1920_v59  ;;  %v2365_v11 = vmul.f32 1.442695, %v2235_v35  ;;  %v7184_v59 = vpack.c.bf16 %v7057_v56, %v7062_v31 }
 0x2dc   :  { %2878 = vperm.xlu1 %5393, %v7088_v2   ;;  %v5588_v43 = vpop.eup %5587  ;;  %5603 = vpow2.f32 %v2361_v45  ;;  %v2383_v30 = vmul.f32 1.442695, %v2244_v39  ;;  %v7176_v45 = vpop.xlane.xlu1 %1885  ;;  %v2248_v35 = vsub.f32 %v6421_v16, %v7171_v47  ;;  %9530 = vst [vmem:[#allocation22_spill] sm:$0xff] %v7198_v26  ;;  %v7202_v16 = vpack.c.bf16 %v7095_v41, %v7100_v63 }
 0x2dd   :  { %v5590_v0 = vpop.eup %5589  ;;  %5605 = vpow2.f32 %v2363_v49  ;;  %9528 = vst [vmem:[#allocation20_spill] sm:$0xff] %v7184_v59  ;;  %v2367_v33 = vmul.f32 1.442695, %v2236_v4  ;;  %v7190_v49 = vpack.c.bf16 %v7067_v18, %v7070_v9  ;;  %v7194_v8 = vrot.slane %v7176_v45, %v9499_v29 }
 0x2de   :  { %v5592_v7 = vpop.eup %5591  ;;  %5607 = vpow2.f32 %v2379_v55  ;;  %v2387_v55 = vmul.f32 1.442695, %v2246_v37  ;;  %9531 = vst [vmem:[#allocation23_spill] sm:$0xff] %v7202_v16  ;;  %v7206_v31 = vpack.c.bf16 %v7105_v32, %v7114_v48  ;;  %v2391_v9 = vmul.f32 1.442695, %v2248_v35 }
 0x2df   :  { %2887 = vperm.xlu0 %5394, %v7095_v41   ;;  %5609 = vpow2.f32 %v2365_v11  ;;  %9529 = vst [vmem:[#allocation21_spill] sm:$0xff] %v7190_v49  ;;  %v7212_v2 = vrot.slane %v7176_v45, %v6942_v24  ;;  %v2250_v15 = vsub.f32 %v6450_v27, %v7194_v8  ;;  %v7230_v37 = vpack.c.bf16 %v5588_v43, %v5590_v0 }
 0x2e0   :  { %2884 = vperm.xlu1 %5393, %v7100_v63   ;;  %5611 = vpow2.f32 %v2383_v30  ;;  %9532 = vst [vmem:[#allocation24_spill] sm:$0xff] %v7206_v31  ;;  %v1928_v30 = vrot.slane %v7003_v61, %v6974_v34  ;;  %v7220_v63 = vpack.c.bf16 %v7119_v38, %v7132_v58  ;;  %v7225_v61 = vpack.c.bf16 %v7137_v62, %v7142_v14 }
 0x2e1   :  { %5613 = vpow2.f32 %v2367_v33  ;;  %9536 = vst [vmem:[#allocation28_spill] sm:$0xff] %v7230_v37  ;;  %v7235_v40 = vrot.slane %v7176_v45, %v6962_v36  ;;  %v9542_v33 = vld [vmem:[#allocation44_spill] sm:$0xff] }
 0x2e2   :  { %5615 = vpow2.f32 %v2387_v55  ;;  %9533 = vst [vmem:[#allocation25_spill] sm:$0xff] %v7220_v63  ;;  %9534 = vst [vmem:[#allocation26_spill] sm:$0xff] %v7225_v61 }
 0x2e3   :  { %2893 = vperm.xlu0 %5394, %v7105_v32   ;;  %v7228_v32 = vpack.c.bf16 %v7149_v20, %v5586_v13  ;;  %5617 = vpow2.f32 %v2391_v9 }
 0x2e4   :  { %2890 = vperm.xlu1 %5393, %v7114_v48   ;;  %v5594_v50 = vpop.eup %5593  ;;  %v9537_v48 = vld [vmem:[#allocation43_spill] sm:$0xff] }
 0x2e5   :  { %v5596_v21 = vpop.eup %5595  ;;  %9535 = vst [vmem:[#allocation27_spill] sm:$0xff] %v7228_v32  ;;  %v2239_v27 = vsub.f32 %v9537_v48, %v1928_v30  ;;  %v7237_v4 = vpack.c.bf16 %v5592_v7, %v5594_v50 }
 0x2e6   :  { %v5598_v39 = vpop.eup %5597 }
 0x2e7   :  { %2899 = vperm.xlu0 %5394, %v7119_v38   ;;  %v5600_v56 = vpop.eup %5599  ;;  %9538 = vst [vmem:[#allocation29_spill] sm:$0xff] %v7237_v4  ;;  %v7239_v38 = vpack.c.bf16 %v5596_v21, %v5598_v39 }
 0x2e8   :  { %2896 = vperm.xlu1 %5393, %v7132_v58   ;;  %v5602_v18 = vpop.eup %5601 }
 0x2e9   :  { %v7216_v41 = vpop.eup %5603  ;;  %9539 = vst [vmem:[#allocation30_spill] sm:$0xff] %v7239_v38 }
 0x2ea   :  { %v7241_v58 = vpop.eup %5605 }
 0x2eb   :  { %2905 = vperm.xlu0 %5394, %v7137_v62   ;;  %v2252_v62 = vsub.f32 %v6474_v3, %v7212_v2  ;;  %v2254_v3 = vsub.f32 %v6513_v42, %v7235_v40 }
 0x2ec   :  { %2902 = vperm.xlu1 %5393, %v7142_v14   ;;  %v2395_v14 = vmul.f32 1.442695, %v2250_v15 }
 0x2ee   :  { %5619 = vpow2.f32 %v2395_v14 }
 0x2ef   :  { %2911 = vperm.xlu0 %5394, %v7149_v20   ;;  %v7245_v20 = vpack.c.bf16 %v5600_v56, %v5602_v18 }
 0x2f0   :  { %2908 = vperm.xlu1 %5393, %v5586_v13   ;;  %v9541_v13 = vld [vmem:[#allocation42_spill] sm:$0xff] }
 0x2f1   :  { %9540 = vst [vmem:[#allocation31_spill] sm:$0xff] %v7245_v20 }
 0x2f3   :  { %2917 = vperm.xlu0 %5394, %v5588_v43   ;;  %v2373_v43 = vmul.f32 1.442695, %v2239_v27  ;;  %v7282_v27 = vrot.slane %v7176_v45, %v6990_v54 }
 0x2f4   :  { %2914 = vperm.xlu1 %5393, %v5590_v0   ;;  %v7247_v0 = vpop.eup %5607 }
 0x2f5   :  { %v7252_v11 = vpop.eup %5609  ;;  %5621 = vpow2.f32 %v2373_v43 }
 0x2f6   :  { %v7260_v35 = vpop.eup %5611 }
 0x2f7   :  { %2923 = vperm.xlu0 %5394, %v5592_v7   ;;  %v2240_v7 = vsub.f32 %v9541_v13, %v1928_v30  ;;  %v7270_v30 = vrot.slane %v7176_v45, %v6982_v52 }
 0x2f8   :  { %2920 = vperm.xlu1 %5393, %v5594_v50   ;;  %v7256_v50 = vrot.slane %v7176_v45, %v6974_v34 }
 0x2f9   :  { %v2375_v55 = vmul.f32 1.442695, %v2240_v7  ;;  %v7294_v7 = vrot.slane %v7176_v45, %v6997_v28  ;;  %v7421_v20 = vpop.xlane.xlu1 %1903 }
 0x2fa   :  { %v2256_v42 = vsub.f32 %v6538_v17, %v7256_v50  ;;  %v2258_v17 = vsub.f32 %v6562_v46, %v7270_v30  ;;  %v2260_v46 = vsub.f32 %v6585_v5, %v7282_v27 }
 0x2fb   :  { %2929 = vperm.xlu0 %5394, %v5596_v21   ;;  %v2399_v21 = vmul.f32 1.442695, %v2252_v62  ;;  %v2262_v5 = vsub.f32 %v6611_v1, %v7294_v7 }
 0x2fc   :  { %2926 = vperm.xlu1 %5393, %v5598_v39   ;;  %v2241_v39 = vsub.f32 %v9542_v33, %v7146_v10  ;;  %v9543_v10 = vld [vmem:[#allocation47_spill] sm:$0xff]  ;;  %v2407_v62 = vmul.f32 1.442695, %v2256_v42  ;;  %v2411_v43 = vmul.f32 1.442695, %v2258_v17  ;;  %v2251_v42 = vsub.f32 %v6476_v19, %v7212_v2 }
 0x2fd   :  { %5623 = vpow2.f32 %v2399_v21  ;;  %v2243_v15 = vsub.f32 %v9543_v10, %v7158_v25  ;;  %v2245_v25 = vsub.f32 %v6403_v22, %v7165_v12  ;;  %v2247_v22 = vsub.f32 %v6423_v60, %v7171_v47 }
 0x2fe   :  { %5625 = vpow2.f32 %v2375_v55  ;;  %v2377_v48 = vmul.f32 1.442695, %v2241_v39  ;;  %v7308_v21 = vrot.slane %v7176_v45, %v7011_v44  ;;  %v2415_v33 = vmul.f32 1.442695, %v2260_v46 }
 0x2ff   :  { %2935 = vperm.xlu0 %5394, %v5600_v56   ;;  %v7266_v56 = vpop.eup %5613  ;;  %v2381_v13 = vmul.f32 1.442695, %v2243_v15  ;;  %v2389_v60 = vmul.f32 1.442695, %v2247_v22  ;;  %v2419_v1 = vmul.f32 1.442695, %v2262_v5 }
 0x300   :  { %2932 = vperm.xlu1 %5393, %v5602_v18   ;;  %v2403_v18 = vmul.f32 1.442695, %v2254_v3  ;;  %v7274_v9 = vpop.eup %5615  ;;  %v2264_v45 = vsub.f32 %v6627_v53, %v7308_v21  ;;  %v7332_v53 = vpop.xlane.xlu0 %1900  ;;  %v9544_v15 = vld [vmem:[#allocation48_spill] sm:$0xff]  ;;  %v2397_v17 = vmul.f32 1.442695, %v2251_v42  ;;  %v9546_v22 = vld [vmem:[#allocation54_spill] sm:$0xff] }
 0x301   :  { %v7286_v14 = vpop.eup %5617  ;;  %v7342_v19 = vrot.slane %v7332_v53, %v9499_v29 }
 0x302   :  { %5627 = vpow2.f32 %v2403_v18  ;;  %v7298_v3 = vpop.eup %5619 }
 0x303   :  { %2746 = vperm.xlu0 %5394, %v7216_v41   ;;  %5629 = vpow2.f32 %v2377_v48  ;;  %v7304_v12 = vpop.eup %5621  ;;  %v2253_v48 = vsub.f32 %v9544_v15, %v7235_v40 }
 0x304   :  { %2749 = vperm.xlu1 %5393, %v7241_v58   ;;  %5631 = vpow2.f32 %v2407_v62 }
 0x305   :  { %5633 = vpow2.f32 %v2381_v13  ;;  %v2401_v40 = vmul.f32 1.442695, %v2253_v48 }
 0x306   :  { %5635 = vpow2.f32 %v2411_v43  ;;  %v7354_v43 = vrot.slane %v7332_v53, %v6942_v24 }
 0x307   :  { %2773 = vperm.xlu0 %5394, %v7247_v0  }
 0x308   :  { %2752 = vperm.xlu1 %5393, %v7252_v11  }
 0x30a   :  { %v7312_v39 = vpop.eup %5623 }
 0x30b   :  { %2779 = vperm.xlu0 %5394, %v7260_v35   ;;  %v7318_v47 = vpop.eup %5625 }
 0x30c   :  { %2755 = vperm.xlu1 %5393, %v7266_v56  }
 0x30f   :  { %2785 = vperm.xlu0 %5394, %v7274_v9   ;;  %v7322_v55 = vpop.eup %5627 }
 0x310   :  { %2758 = vperm.xlu1 %5393, %v7076_v6   ;;  %v2385_v6 = vmul.f32 1.442695, %v2245_v25  ;;  %v7328_v10 = vpop.eup %5629  ;;  %v9545_v25 = vld [vmem:[#allocation49_spill] sm:$0xff] }
 0x311   :  { %v2255_v13 = vsub.f32 %v9545_v25, %v7256_v50 }
 0x312   :  { %5637 = vpow2.f32 %v2385_v6  ;;  %v2330_v6 = vsub.f32 %v9546_v22, %v7342_v19 }
 0x313   :  { %2791 = vperm.xlu0 %5394, %v7286_v14   ;;  %5639 = vpow2.f32 %v2415_v33  ;;  %v9547_v33 = vld [vmem:[#allocation50_spill] sm:$0xff] }
 0x314   :  { %2761 = vperm.xlu1 %5393, %v7081_v57   ;;  %v2249_v57 = vsub.f32 %v6452_v23, %v7194_v8  ;;  %5641 = vpow2.f32 %v2389_v60  ;;  %v2423_v23 = vmul.f32 1.442695, %v2264_v45  ;;  %v7330_v8 = vpop.eup %5631  ;;  %v2257_v50 = vsub.f32 %v9547_v33, %v7270_v30  ;;  %v9549_v30 = vld [vmem:[#allocation51_spill] sm:$0xff] }
 0x315   :  { %5643 = vpow2.f32 %v2419_v1  ;;  %v7338_v62 = vpop.eup %5633  ;;  %v2405_v60 = vmul.f32 1.442695, %v2255_v13  ;;  %v7368_v45 = vrot.slane %v7332_v53, %v6962_v36  ;;  %v9548_v1 = vld [vmem:[#allocation56_spill] sm:$0xff]  ;;  %v2259_v15 = vsub.f32 %v9549_v30, %v7282_v27  ;;  %v9550_v13 = vld [vmem:[#allocation58_spill] sm:$0xff] }
 0x316   :  { %v2393_v18 = vmul.f32 1.442695, %v2249_v57  ;;  %v7344_v2 = vpop.eup %5635  ;;  %v2332_v42 = vsub.f32 %v9548_v1, %v7354_v43  ;;  %v2409_v48 = vmul.f32 1.442695, %v2257_v50  ;;  %v9551_v27 = vld [vmem:[#allocation52_spill] sm:$0xff]  ;;  %v7398_v1 = vrot.slane %v7332_v53, %v6982_v52 }
 0x317   :  { %2797 = vperm.xlu0 %5394, %v7298_v3   ;;  %v2261_v50 = vsub.f32 %v9551_v27, %v7294_v7  ;;  %v7407_v7 = vpack.c.bf16 %v7266_v56, %v7252_v11  ;;  %v7414_v27 = vrot.slane %v7332_v53, %v6990_v54 }
 0x318   :  { %2764 = vperm.xlu1 %5393, %v7304_v12   ;;  %5645 = vpow2.f32 %v2393_v18  ;;  %v2555_v18 = vmul.f32 1.442695, %v2330_v6  ;;  %v2559_v22 = vmul.f32 1.442695, %v2332_v42  ;;  %v7388_v6 = vpack.c.bf16 %v7241_v58, %v7216_v41  ;;  %v9552_v42 = vld [vmem:[#allocation60_spill] sm:$0xff] }
 0x319   :  { %5647 = vpow2.f32 %v2423_v23  ;;  %v3876_v56 = vunpack.c.h.b16 %v7407_v7 }
 0x31a   :  { %5649 = vpow2.f32 %v2397_v17  ;;  %v7380_v17 = vrot.slane %v7332_v53, %v6974_v34  ;;  %v3873_v30 = vunpack.c.l.b16 %v7388_v6 }
 0x31b   :  { %2803 = vperm.xlu0 %5394, %v7312_v39   ;;  %5651 = vpow2.f32 %v2401_v40  ;;  %v2334_v40 = vsub.f32 %v9550_v13, %v7368_v45  ;;  %v2417_v13 = vmul.f32 1.442695, %v2261_v50 }
 0x31c   :  { %2767 = vperm.xlu1 %5393, %v7318_v47   ;;  %5653 = vpow2.f32 %v2405_v60  ;;  %v2413_v60 = vmul.f32 1.442695, %v2259_v15  ;;  %v9553_v15 = vld [vmem:[#allocation53_spill] sm:$0xff] }
 0x31d   :  { %5655 = vpow2.f32 %v2555_v18  ;;  %v2336_v18 = vsub.f32 %v9552_v42, %v7380_v17  ;;  %v2563_v58 = vmul.f32 1.442695, %v2334_v40  ;;  %v9554_v40 = vld [vmem:[#allocation62_spill] sm:$0xff] }
 0x31e   :  { %5657 = vpow2.f32 %v2409_v48  ;;  %v2263_v48 = vsub.f32 %v9553_v15, %v7308_v21  ;;  %v2338_v42 = vsub.f32 %v9554_v40, %v7398_v1 }
 0x31f   :  { %2809 = vperm.xlu0 %5394, %v7322_v55   ;;  %v7350_v46 = vpop.eup %5637  ;;  %5659 = vpow2.f32 %v2559_v22  ;;  %v2567_v11 = vmul.f32 1.442695, %v2336_v18 }
 0x320   :  { %2770 = vperm.xlu1 %5393, %v7328_v10   ;;  %v7358_v5 = vpop.eup %5639  ;;  %5661 = vpow2.f32 %v2413_v60  ;;  %v2421_v21 = vmul.f32 1.442695, %v2263_v48  ;;  %v7430_v60 = vrot.slane %v7332_v53, %v6997_v28  ;;  %v2571_v15 = vmul.f32 1.442695, %v2338_v42 }
 0x321   :  { %v7364_v57 = vpop.eup %5641  ;;  %5663 = vpow2.f32 %v2563_v58  ;;  %v9555_v58 = vld [vmem:[#allocation64_spill] sm:$0xff] }
 0x322   :  { %v7372_v23 = vpop.eup %5643  ;;  %5665 = vpow2.f32 %v2417_v13  ;;  %v2340_v18 = vsub.f32 %v9555_v58, %v7414_v27  ;;  %v7446_v13 = vrot.slane %v7332_v53, %v7011_v44  ;;  %v9562_v53 = vld [vmem:[#allocation68_spill] sm:$0xff] }
 0x323   :  { %2815 = vperm.xlu0 %5394, %v7330_v8   ;;  %5667 = vpow2.f32 %v2567_v11  ;;  %v9558_v11 = vld [vmem:[#allocation66_spill] sm:$0xff] }
 0x324   :  { %2776 = vperm.xlu1 %5393, %v7338_v62   ;;  %5669 = vpow2.f32 %v2421_v21  ;;  %v2342_v42 = vsub.f32 %v9558_v11, %v7430_v60  ;;  %v2575_v58 = vmul.f32 1.442695, %v2340_v18  ;;  %v7464_v18 = vrot.slane %v7421_v20, %v9499_v29 }
 0x325   :  { %v7382_v25 = vpop.eup %5645  ;;  %5671 = vpow2.f32 %v2571_v15 }
 0x326   :  { %v7390_v33 = vpop.eup %5647  ;;  %5673 = vpow2.f32 %v2575_v58  ;;  %v2579_v61 = vmul.f32 1.442695, %v2342_v42  ;;  %v7480_v58 = vrot.slane %v7421_v20, %v6942_v24 }
 0x327   :  { %2821 = vperm.xlu0 %5394, %v7344_v2   ;;  %v7402_v41 = vpop.eup %5649 }
 0x328   :  { %2782 = vperm.xlu1 %5393, %v7350_v46   ;;  %v7416_v22 = vpop.eup %5651  ;;  %5675 = vpow2.f32 %v2579_v61  ;;  %v9571_v61 = vld [vmem:[#allocation57_spill] sm:$0xff] }
 0x329   :  { %v7426_v50 = vpop.eup %5653 }
 0x32a   :  { %v7434_v40 = vpop.eup %5655 }
 0x32b   :  { %2827 = vperm.xlu0 %5394, %v7358_v5   ;;  %9556 = vst [vmem:[#allocation32_spill] sm:$0xff] %v7434_v40  ;;  %v7442_v48 = vpop.eup %5657 }
 0x32c   :  { %2788 = vperm.xlu1 %5393, %v7364_v57   ;;  %v7450_v4 = vpop.eup %5659 }
 0x32d   :  { %9559 = vst [vmem:[#allocation34_spill] sm:$0xff] %v7450_v4  ;;  %v7458_v21 = vpop.eup %5661 }
 0x32e   :  { %v7466_v15 = vpop.eup %5663 }
 0x32f   :  { %2833 = vperm.xlu0 %5394, %v7372_v23   ;;  %9563 = vst [vmem:[#allocation37_spill] sm:$0xff] %v7466_v15 }
 0x330   :  { %2794 = vperm.xlu1 %5393, %v7382_v25  }
 0x333   :  { %2839 = vperm.xlu0 %5394, %v7390_v33  }
 0x334   :  { %2800 = vperm.xlu1 %5393, %v7402_v41  }
 0x337   :  { %3906 = vperm.xlu0 %5394, %v3873_v30   ;;  %v7423_v30 = vpop.xlane.xlu0 %1894 }
 0x338   :  { %2806 = vperm.xlu1 %5393, %v7416_v22  }
 0x339   :  { %v7436_v38 = vpop.xlane.xlu1 %1897 }
 0x33b   :  { %3915 = vperm.xlu0 %5394, %v3876_v56  }
 0x33c   :  { %2812 = vperm.xlu1 %5393, %v7426_v50  }
 0x33e   :  { %v7439_v56 = vpop.permute.xlu0 %2845 }
 0x33f   :  { %9557 = vst [vmem:[#allocation33_spill] sm:$0xff] %v7439_v56  ;;  %3037 = vperm.xlu0 %5394, %v7434_v40   ;;  %v7452_v37 = vpop.permute.xlu1 %2842  ;;  %v2344_v40 = vsub.f32 %v9562_v53, %v7446_v13  ;;  %v7476_v53 = vpop.eup %5665 }
 0x340   :  { %9560 = vst [vmem:[#allocation35_spill] sm:$0xff] %v7452_v37  ;;  %2818 = vperm.xlu1 %5393, %v7442_v48   ;;  %v9567_v37 = vld [vmem:[#allocation70_spill] sm:$0xff] }
 0x341   :  { %v2583_v42 = vmul.f32 1.442695, %v2344_v40  ;;  %v2346_v31 = vsub.f32 %v9567_v37, %v7464_v18  ;;  %v7498_v37 = vrot.slane %v7421_v20, %v6962_v36 }
 0x342   :  { %v7455_v32 = vpop.permute.xlu0 %2851 }
 0x343   :  { %9561 = vst [vmem:[#allocation36_spill] sm:$0xff] %v7455_v32  ;;  %3043 = vperm.xlu0 %5394, %v7450_v4   ;;  %v7468_v11 = vpop.permute.xlu1 %2848  ;;  %v9566_v4 = vld [vmem:[#allocation55_spill] sm:$0xff]  ;;  %v7484_v32 = vpop.eup %5667  ;;  %5677 = vpow2.f32 %v2583_v42  ;;  %v2587_v16 = vmul.f32 1.442695, %v2346_v31  ;;  %v7515_v31 = vrot.slane %v7421_v20, %v6974_v34 }
 0x344   :  { %9564 = vst [vmem:[#allocation39_spill] sm:$0xff] %v7468_v11  ;;  %2824 = vperm.xlu1 %5393, %v7458_v21   ;;  %v2329_v56 = vsub.f32 %v9566_v4, %v7342_v19  ;;  %9568 = vst [vmem:[#allocation38_spill] sm:$0xff] %v7484_v32  ;;  %v2331_v4 = vsub.f32 %v9571_v61, %v7354_v43  ;;  %v7494_v40 = vpop.eup %5669  ;;  %v9576_v43 = vld [vmem:[#allocation59_spill] sm:$0xff]  ;;  %v3874_v61 = vunpack.c.h.b16 %v7388_v6 }
 0x345   :  { %v7502_v26 = vpop.eup %5671 }
 0x346   :  { %v7471_v63 = vpop.permute.xlu0 %2857  ;;  %v2553_v19 = vmul.f32 1.442695, %v2329_v56  ;;  %9573 = vst [vmem:[#allocation42_spill] sm:$0xff] %v7502_v26  ;;  %v2333_v56 = vsub.f32 %v9576_v43, %v7368_v45  ;;  %v2557_v42 = vmul.f32 1.442695, %v2331_v4  ;;  %v7519_v59 = vpop.eup %5673  ;;  %v9580_v45 = vld [vmem:[#allocation61_spill] sm:$0xff] }
 0x347   :  { %9565 = vst [vmem:[#allocation41_spill] sm:$0xff] %v7471_v63  ;;  %3049 = vperm.xlu0 %5394, %v7466_v15   ;;  %v7486_v11 = vpop.permute.xlu1 %2854  ;;  %v9572_v63 = vld [vmem:[#allocation72_spill] sm:$0xff]  ;;  %9578 = vst [vmem:[#allocation48_spill] sm:$0xff] %v7519_v59  ;;  %v2335_v6 = vsub.f32 %v9580_v45, %v7380_v17  ;;  %v9585_v17 = vld [vmem:[#allocation63_spill] sm:$0xff] }
 0x348   :  { %9569 = vst [vmem:[#allocation40_spill] sm:$0xff] %v7486_v11  ;;  %2830 = vperm.xlu1 %5393, %v7476_v53   ;;  %v2348_v11 = vsub.f32 %v9572_v63, %v7480_v58  ;;  %5679 = vpow2.f32 %v2553_v19  ;;  %v9577_v63 = vld [vmem:[#allocation74_spill] sm:$0xff]  ;;  %v2561_v4 = vmul.f32 1.442695, %v2333_v56  ;;  %v3875_v19 = vunpack.c.l.b16 %v7407_v7 }
 0x349   :  { %5681 = vpow2.f32 %v2587_v16  ;;  %v7531_v16 = vrot.slane %v7421_v20, %v6982_v52  ;;  %v2337_v7 = vsub.f32 %v9585_v17, %v7398_v1  ;;  %v2565_v56 = vmul.f32 1.442695, %v2335_v6  ;;  %v9591_v1 = vld [vmem:[#allocation65_spill] sm:$0xff] }
 0x34a   :  { %v7489_v15 = vpop.permute.xlu0 %2863  ;;  %v2591_v49 = vmul.f32 1.442695, %v2348_v11  ;;  %5683 = vpow2.f32 %v2557_v42  ;;  %v9581_v11 = vld [vmem:[#allocation76_spill] sm:$0xff]  ;;  %v9586_v42 = vld [vmem:[#allocation13_spill] sm:$0xff]  ;;  %v2339_v6 = vsub.f32 %v9591_v1, %v7414_v27 }
 0x34b   :  { %9570 = vst [vmem:[#allocation43_spill] sm:$0xff] %v7489_v15  ;;  %3055 = vperm.xlu0 %5394, %v7484_v32   ;;  %v7504_v15 = vpop.permute.xlu1 %2860  ;;  %v2352_v43 = vsub.f32 %v9581_v11, %v7515_v31  ;;  %v3877_v45 = vunpack.c.l.b16 %v9586_v42 }
 0x34c   :  { %9574 = vst [vmem:[#allocation44_spill] sm:$0xff] %v7504_v15  ;;  %2836 = vperm.xlu1 %5393, %v7494_v40   ;;  %v2350_v15 = vsub.f32 %v9577_v63, %v7498_v37  ;;  %5685 = vpow2.f32 %v2591_v49  ;;  %v7535_v63 = vpop.eup %5675  ;;  %v7547_v49 = vrot.slane %v7421_v20, %v6990_v54  ;;  %v2573_v1 = vmul.f32 1.442695, %v2339_v6  ;;  %v9603_v6 = vld [vmem:[#allocation69_spill] sm:$0xff] }
 0x34d   :  { %9582 = vst [vmem:[#allocation54_spill] sm:$0xff] %v7535_v63  ;;  %5687 = vpow2.f32 %v2561_v4  ;;  %v2569_v4 = vmul.f32 1.442695, %v2337_v7  ;;  %v9597_v7 = vld [vmem:[#allocation67_spill] sm:$0xff] }
 0x34e   :  { %v7507_v32 = vpop.permute.xlu0 %2869 }
 0x34f   :  { %9575 = vst [vmem:[#allocation47_spill] sm:$0xff] %v7507_v32  ;;  %3061 = vperm.xlu0 %5394, %v7502_v26   ;;  %v7521_v32 = vpop.permute.xlu1 %2866 }
 0x350   :  { %3909 = vperm.xlu1 %5393, %v3874_v61   ;;  %v2595_v61 = vmul.f32 1.442695, %v2350_v15  ;;  %v9587_v15 = vld [vmem:[#allocation78_spill] sm:$0xff] }
 0x351   :  { %v2354_v11 = vsub.f32 %v9587_v15, %v7531_v16 }
 0x352   :  { %v7523_v26 = vpop.permute.xlu0 %2875  ;;  %5689 = vpow2.f32 %v2595_v61  ;;  %v7564_v61 = vrot.slane %v7421_v20, %v6997_v28 }
 0x353   :  { %9579 = vst [vmem:[#allocation49_spill] sm:$0xff] %v7523_v26  ;;  %3067 = vperm.xlu0 %5394, %v7519_v59   ;;  %v7537_v26 = vpop.permute.xlu1 %2872  ;;  %5691 = vpow2.f32 %v2565_v56  ;;  %v2341_v56 = vsub.f32 %v9597_v7, %v7430_v60 }
 0x354   :  { %9583 = vst [vmem:[#allocation50_spill] sm:$0xff] %v7537_v26  ;;  %3912 = vperm.xlu1 %5393, %v3875_v19   ;;  %v2599_v19 = vmul.f32 1.442695, %v2352_v43  ;;  %v7551_v26 = vpop.eup %5677  ;;  %v9593_v43 = vld [vmem:[#allocation80_spill] sm:$0xff] }
 0x355   :  { %9588 = vst [vmem:[#allocation51_spill] sm:$0xff] %v7551_v26  ;;  %v7560_v17 = vpop.eup %5679  ;;  %v2356_v15 = vsub.f32 %v9593_v43, %v7547_v49 }
 0x356   :  { %v7539_v59 = vpop.permute.xlu0 %2881  ;;  %9592 = vst [vmem:[#allocation60_spill] sm:$0xff] %v7560_v17  ;;  %5693 = vpow2.f32 %v2599_v19  ;;  %v9599_v19 = vld [vmem:[#allocation82_spill] sm:$0xff] }
 0x357   :  { %9584 = vst [vmem:[#allocation56_spill] sm:$0xff] %v7539_v59  ;;  %3073 = vperm.xlu0 %5394, %v7535_v63   ;;  %v7553_v59 = vpop.permute.xlu1 %2878  ;;  %5695 = vpow2.f32 %v2569_v4  ;;  %v2358_v43 = vsub.f32 %v9599_v19, %v7564_v61  ;;  %v2343_v4 = vsub.f32 %v9603_v6, %v7446_v13 }
 0x358   :  { %9589 = vst [vmem:[#allocation58_spill] sm:$0xff] %v7553_v59  ;;  %3918 = vperm.xlu1 %5393, %v3877_v45   ;;  %v2603_v45 = vmul.f32 1.442695, %v2354_v11  ;;  %v7568_v59 = vpop.eup %5681  ;;  %v7582_v11 = vrot.slane %v7421_v20, %v7011_v44  ;;  %v2577_v20 = vmul.f32 1.442695, %v2341_v56 }
 0x359   :  { %9594 = vst [vmem:[#allocation53_spill] sm:$0xff] %v7568_v59  ;;  %v2611_v19 = vmul.f32 1.442695, %v2358_v43  ;;  %v2581_v56 = vmul.f32 1.442695, %v2343_v4 }
 0x35a   :  { %v7555_v63 = vpop.permute.xlu0 %2887  ;;  %5697 = vpow2.f32 %v2603_v45  ;;  %v9605_v45 = vld [vmem:[#allocation84_spill] sm:$0xff] }
 0x35b   :  { %9590 = vst [vmem:[#allocation52_spill] sm:$0xff] %v7555_v63  ;;  %3079 = vperm.xlu0 %5394, %v7551_v26   ;;  %v7570_v63 = vpop.permute.xlu1 %2884  ;;  %v7578_v26 = vpop.eup %5683  ;;  %5699 = vpow2.f32 %v2573_v1  ;;  %v9609_v1 = vld [vmem:[#allocation71_spill] sm:$0xff] }
 0x35c   :  { %9595 = vst [vmem:[#allocation62_spill] sm:$0xff] %v7570_v63  ;;  %3034 = vperm.xlu1 %5393, %v7560_v17   ;;  %9598 = vst [vmem:[#allocation66_spill] sm:$0xff] %v7578_v26  ;;  %v2607_v17 = vmul.f32 1.442695, %v2356_v15  ;;  %v7586_v63 = vpop.eup %5685  ;;  %v2360_v15 = vsub.f32 %v9605_v45, %v7582_v11  ;;  %v7618_v45 = vrot.slane %v7423_v30, %v6942_v24 }
 0x35d   :  { %9600 = vst [vmem:[#allocation68_spill] sm:$0xff] %v7586_v63  ;;  %v7596_v7 = vpop.eup %5687 }
 0x35e   :  { %v7573_v27 = vpop.permute.xlu0 %2893  ;;  %9604 = vst [vmem:[#allocation57_spill] sm:$0xff] %v7596_v7  ;;  %5701 = vpow2.f32 %v2607_v17  ;;  %v2345_v17 = vsub.f32 %v9609_v1, %v7464_v18  ;;  %v2615_v6 = vmul.f32 1.442695, %v2360_v15  ;;  %v9615_v18 = vld [vmem:[#allocation73_spill] sm:$0xff]  ;;  %v9617_v1 = vld [vmem:[#allocation88_spill] sm:$0xff] }
 0x35f   :  { %9596 = vst [vmem:[#allocation64_spill] sm:$0xff] %v7573_v27  ;;  %3085 = vperm.xlu0 %5394, %v7568_v59   ;;  %v7588_v27 = vpop.permute.xlu1 %2890  ;;  %v7602_v59 = vrot.slane %v7423_v30, %v9499_v29  ;;  %5703 = vpow2.f32 %v2577_v20  ;;  %v2347_v20 = vsub.f32 %v9615_v18, %v7480_v58  ;;  %v9621_v58 = vld [vmem:[#allocation75_spill] sm:$0xff] }
 0x360   :  { %9601 = vst [vmem:[#allocation55_spill] sm:$0xff] %v7588_v27  ;;  %3040 = vperm.xlu1 %5393, %v7578_v26   ;;  %v7604_v26 = vpop.eup %5689  ;;  %5705 = vpow2.f32 %v2611_v19  ;;  %v2585_v15 = vmul.f32 1.442695, %v2345_v17  ;;  %v2349_v17 = vsub.f32 %v9621_v58, %v7498_v37 }
 0x361   :  { %9606 = vst [vmem:[#allocation72_spill] sm:$0xff] %v7604_v26  ;;  %v7614_v43 = vpop.eup %5691  ;;  %5707 = vpow2.f32 %v2581_v56 }
 0x362   :  { %v7591_v60 = vpop.permute.xlu0 %2899  ;;  %9610 = vst [vmem:[#allocation61_spill] sm:$0xff] %v7614_v43  ;;  %5709 = vpow2.f32 %v2615_v6  ;;  %v2589_v6 = vmul.f32 1.442695, %v2347_v20  ;;  %v9627_v20 = vld [vmem:[#allocation77_spill] sm:$0xff]  ;;  %v2593_v58 = vmul.f32 1.442695, %v2349_v17 }
 0x363   :  { %9602 = vst [vmem:[#allocation70_spill] sm:$0xff] %v7591_v60  ;;  %3091 = vperm.xlu0 %5394, %v7586_v63   ;;  %v7606_v27 = vpop.permute.xlu1 %2896  ;;  %v9611_v63 = vld [vmem:[#allocation86_spill] sm:$0xff]  ;;  %v7622_v60 = vpop.eup %5693  ;;  %5711 = vpow2.f32 %v2585_v15  ;;  %v2351_v15 = vsub.f32 %v9627_v20, %v7515_v31  ;;  %v9633_v17 = vld [vmem:[#allocation79_spill] sm:$0xff] }
 0x364   :  { %9607 = vst [vmem:[#allocation59_spill] sm:$0xff] %v7606_v27  ;;  %3046 = vperm.xlu1 %5393, %v7596_v7   ;;  %v2298_v7 = vsub.f32 %v9611_v63, %v7602_v59  ;;  %9612 = vst [vmem:[#allocation76_spill] sm:$0xff] %v7622_v60  ;;  %v7632_v19 = vpop.eup %5695  ;;  %v7636_v63 = vrot.slane %v7423_v30, %v6962_v36 }
 0x365   :  { %9616 = vst [vmem:[#allocation78_spill] sm:$0xff] %v7632_v19  ;;  %v2597_v20 = vmul.f32 1.442695, %v2351_v15  ;;  %v9639_v15 = vld [vmem:[#allocation81_spill] sm:$0xff] }
 0x366   :  { %v7609_v13 = vpop.permute.xlu0 %2905 }
 0x367   :  { %9608 = vst [vmem:[#allocation74_spill] sm:$0xff] %v7609_v13  ;;  %3097 = vperm.xlu0 %5394, %v7604_v26   ;;  %v7624_v13 = vpop.permute.xlu1 %2902  ;;  %v2300_v26 = vsub.f32 %v9617_v1, %v7618_v45  ;;  %v9623_v1 = vld [vmem:[#allocation90_spill] sm:$0xff] }
 0x368   :  { %9613 = vst [vmem:[#allocation63_spill] sm:$0xff] %v7624_v13  ;;  %3052 = vperm.xlu1 %5393, %v7614_v43   ;;  %v2491_v43 = vmul.f32 1.442695, %v2298_v7  ;;  %v7640_v13 = vpop.eup %5697  ;;  %v7654_v7 = vrot.slane %v7423_v30, %v6974_v34 }
 0x369   :  { %9618 = vst [vmem:[#allocation65_spill] sm:$0xff] %v7640_v13  ;;  %v7650_v18 = vpop.eup %5699 }
 0x36a   :  { %v7627_v4 = vpop.permute.xlu0 %2911  ;;  %9622 = vst [vmem:[#allocation82_spill] sm:$0xff] %v7650_v18  ;;  %5713 = vpow2.f32 %v2491_v43  ;;  %v9629_v43 = vld [vmem:[#allocation92_spill] sm:$0xff] }
 0x36b   :  { %9614 = vst [vmem:[#allocation13_spill] sm:$0xff] %v7627_v4  ;;  %3103 = vperm.xlu0 %5394, %v7622_v60   ;;  %v7642_v4 = vpop.permute.xlu1 %2908  ;;  %v2302_v60 = vsub.f32 %v9623_v1, %v7636_v63  ;;  %5715 = vpow2.f32 %v2589_v6  ;;  %v2304_v1 = vsub.f32 %v9629_v43, %v7654_v7  ;;  %v2353_v6 = vsub.f32 %v9633_v17, %v7531_v16 }
 0x36c   :  { %9619 = vst [vmem:[#allocation80_spill] sm:$0xff] %v7642_v4  ;;  %3058 = vperm.xlu1 %5393, %v7632_v19   ;;  %v2495_v19 = vmul.f32 1.442695, %v2300_v26  ;;  %v7658_v4 = vpop.eup %5701  ;;  %v7672_v26 = vrot.slane %v7423_v30, %v6982_v52 }
 0x36d   :  { %9624 = vst [vmem:[#allocation69_spill] sm:$0xff] %v7658_v4  ;;  %v2601_v17 = vmul.f32 1.442695, %v2353_v6  ;;  %v9645_v6 = vld [vmem:[#allocation83_spill] sm:$0xff] }
 0x36e   :  { %v7645_v56 = vpop.permute.xlu0 %2917  ;;  %5717 = vpow2.f32 %v2495_v19  ;;  %v9635_v19 = vld [vmem:[#allocation94_spill] sm:$0xff] }
 0x36f   :  { %9620 = vst [vmem:[#allocation67_spill] sm:$0xff] %v7645_v56  ;;  %3109 = vperm.xlu0 %5394, %v7640_v13   ;;  %v7660_v56 = vpop.permute.xlu1 %2914  ;;  %v7668_v13 = vpop.eup %5703  ;;  %5719 = vpow2.f32 %v2593_v58  ;;  %v2306_v43 = vsub.f32 %v9635_v19, %v7672_v26  ;;  %v2355_v58 = vsub.f32 %v9639_v15, %v7547_v49 }
 0x370   :  { %9625 = vst [vmem:[#allocation84_spill] sm:$0xff] %v7660_v56  ;;  %3064 = vperm.xlu1 %5393, %v7650_v18   ;;  %9628 = vst [vmem:[#allocation86_spill] sm:$0xff] %v7668_v13  ;;  %v2499_v18 = vmul.f32 1.442695, %v2302_v60  ;;  %v7676_v56 = vpop.eup %5705  ;;  %v7690_v60 = vrot.slane %v7423_v30, %v6990_v54 }
 0x371   :  { %9630 = vst [vmem:[#allocation73_spill] sm:$0xff] %v7676_v56  ;;  %v2605_v15 = vmul.f32 1.442695, %v2355_v58  ;;  %v9651_v58 = vld [vmem:[#allocation85_spill] sm:$0xff] }
 0x372   :  { %v7663_v37 = vpop.permute.xlu0 %2923  ;;  %5721 = vpow2.f32 %v2499_v18  ;;  %v7708_v18 = vrot.slane %v7423_v30, %v6997_v28 }
 0x373   :  { %9626 = vst [vmem:[#allocation71_spill] sm:$0xff] %v7663_v37  ;;  %3115 = vperm.xlu0 %5394, %v7658_v4   ;;  %v7678_v37 = vpop.permute.xlu1 %2920  ;;  %v7686_v4 = vpop.eup %5707  ;;  %5723 = vpow2.f32 %v2597_v20  ;;  %v2357_v20 = vsub.f32 %v9645_v6, %v7564_v61 }
 0x374   :  { %9631 = vst [vmem:[#allocation88_spill] sm:$0xff] %v7678_v37  ;;  %3070 = vperm.xlu1 %5393, %v7668_v13   ;;  %9634 = vst [vmem:[#allocation90_spill] sm:$0xff] %v7686_v4  ;;  %v2503_v13 = vmul.f32 1.442695, %v2304_v1  ;;  %v7694_v37 = vpop.eup %5709  ;;  %v9641_v1 = vld [vmem:[#allocation96_spill] sm:$0xff] }
 0x375   :  { %9636 = vst [vmem:[#allocation77_spill] sm:$0xff] %v7694_v37  ;;  %v2308_v19 = vsub.f32 %v9641_v1, %v7690_v60 }
 0x376   :  { %v7681_v31 = vpop.permute.xlu0 %2929  ;;  %5725 = vpow2.f32 %v2503_v13  ;;  %v7726_v13 = vrot.slane %v7423_v30, %v7011_v44  ;;  %v2609_v30 = vmul.f32 1.442695, %v2357_v20 }
 0x377   :  { %9632 = vst [vmem:[#allocation75_spill] sm:$0xff] %v7681_v31  ;;  %3121 = vperm.xlu0 %5394, %v7676_v56   ;;  %v7696_v31 = vpop.permute.xlu1 %2926  ;;  %v7704_v56 = vpop.eup %5711  ;;  %5727 = vpow2.f32 %v2601_v17  ;;  %v2359_v17 = vsub.f32 %v9651_v58, %v7582_v11  ;;  %v7762_v58 = vrot.slane %v7436_v38, %v6942_v24 }
 0x378   :  { %9637 = vst [vmem:[#allocation92_spill] sm:$0xff] %v7696_v31  ;;  %3076 = vperm.xlu1 %5393, %v7686_v4   ;;  %9640 = vst [vmem:[#allocation94_spill] sm:$0xff] %v7704_v56  ;;  %v2507_v4 = vmul.f32 1.442695, %v2306_v43  ;;  %v7712_v31 = vpop.eup %5713  ;;  %v9647_v43 = vld [vmem:[#allocation98_spill] sm:$0xff] }
 0x379   :  { %9642 = vst [vmem:[#allocation81_spill] sm:$0xff] %v7712_v31  ;;  %v2310_v1 = vsub.f32 %v9647_v43, %v7708_v18  ;;  %v2613_v20 = vmul.f32 1.442695, %v2359_v17 }
 0x37a   :  { %v7699_v16 = vpop.permute.xlu0 %2935  ;;  %5729 = vpow2.f32 %v2507_v4  ;;  %v9653_v4 = vld [vmem:[#allocation100_spill] sm:$0xff] }
 0x37b   :  { %9638 = vst [vmem:[#allocation79_spill] sm:$0xff] %v7699_v16  ;;  %3127 = vperm.xlu0 %5394, %v7694_v37   ;;  %v7714_v16 = vpop.permute.xlu1 %2932  ;;  %v7722_v37 = vpop.eup %5715  ;;  %5731 = vpow2.f32 %v2605_v15  ;;  %v2515_v43 = vmul.f32 1.442695, %v2310_v1  ;;  %v9657_v15 = vld [vmem:[#allocation87_spill] sm:$0xff] }
 0x37c   :  { %9643 = vst [vmem:[#allocation96_spill] sm:$0xff] %v7714_v16  ;;  %3082 = vperm.xlu1 %5393, %v7704_v56   ;;  %9646 = vst [vmem:[#allocation83_spill] sm:$0xff] %v7722_v37  ;;  %v2511_v56 = vmul.f32 1.442695, %v2308_v19  ;;  %v7730_v16 = vpop.eup %5717  ;;  %v2312_v19 = vsub.f32 %v9653_v4, %v7726_v13  ;;  %v9659_v4 = vld [vmem:[#allocation103_spill] sm:$0xff] }
 0x37d   :  { %9648 = vst [vmem:[#allocation98_spill] sm:$0xff] %v7730_v16  ;;  %v7740_v6 = vpop.eup %5719 }
 0x37e   :  { %v7717_v49 = vpop.permute.xlu0 %2746  ;;  %9652 = vst [vmem:[#allocation85_spill] sm:$0xff] %v7740_v6  ;;  %5733 = vpow2.f32 %v2511_v56  ;;  %v2297_v56 = vsub.f32 %v9657_v15, %v7602_v59  ;;  %v9663_v59 = vld [vmem:[#allocation89_spill] sm:$0xff] }
 0x37f   :  { %9644 = vst [vmem:[#allocation118_spill] sm:$0xff] %v7717_v49  ;;  %2941 = vperm.xlu0 %5394, %v7712_v31   ;;  %v7732_v49 = vpop.permute.xlu1 %2749  ;;  %v7746_v31 = vrot.slane %v7436_v38, %v9499_v29  ;;  %5735 = vpow2.f32 %v2609_v30  ;;  %v2519_v29 = vmul.f32 1.442695, %v2312_v19  ;;  %v2299_v30 = vsub.f32 %v9663_v59, %v7618_v45  ;;  %v9665_v15 = vld [vmem:[#allocation105_spill] sm:$0xff]  ;;  %v9669_v45 = vld [vmem:[#allocation91_spill] sm:$0xff]  ;;  %v9671_v59 = vld [vmem:[#allocation108_spill] sm:$0xff] }
 0x380   :  { %9649 = vst [vmem:[#allocation119_spill] sm:$0xff] %v7732_v49  ;;  %3088 = vperm.xlu1 %5393, %v7722_v37   ;;  %v7748_v37 = vpop.eup %5721  ;;  %5737 = vpow2.f32 %v2515_v43  ;;  %v2489_v19 = vmul.f32 1.442695, %v2297_v56  ;;  %v7780_v43 = vrot.slane %v7436_v38, %v6962_v36  ;;  %v2301_v56 = vsub.f32 %v9669_v45, %v7636_v63  ;;  %v9767_v49 = vld [vmem:[#allocation41_spill] sm:$0xff] }
 0x381   :  { %9654 = vst [vmem:[#allocation100_spill] sm:$0xff] %v7748_v37  ;;  %v7758_v1 = vpop.eup %5723  ;;  %5739 = vpow2.f32 %v2613_v20  ;;  %v2493_v36 = vmul.f32 1.442695, %v2299_v30  ;;  %v9674_v30 = vld [vmem:[#allocation93_spill] sm:$0xff] }
 0x382   :  { %v7735_v61 = vpop.permute.xlu0 %2773  ;;  %9658 = vst [vmem:[#allocation87_spill] sm:$0xff] %v7758_v1  ;;  %5741 = vpow2.f32 %v2519_v29 }
 0x383   :  { %9650 = vst [vmem:[#allocation120_spill] sm:$0xff] %v7735_v61  ;;  %2947 = vperm.xlu0 %5394, %v7730_v16   ;;  %v7750_v61 = vpop.permute.xlu1 %2752  ;;  %v7766_v16 = vpop.eup %5725  ;;  %5743 = vpow2.f32 %v2489_v19  ;;  %v2303_v19 = vsub.f32 %v9674_v30, %v7654_v7 }
 0x384   :  { %9655 = vst [vmem:[#allocation121_spill] sm:$0xff] %v7750_v61  ;;  %3094 = vperm.xlu1 %5393, %v7740_v6   ;;  %v2314_v6 = vsub.f32 %v9659_v4, %v7746_v31  ;;  %9660 = vst [vmem:[#allocation103_spill] sm:$0xff] %v7766_v16  ;;  %v7776_v24 = vpop.eup %5727  ;;  %v2316_v4 = vsub.f32 %v9665_v15, %v7762_v58  ;;  %v2318_v15 = vsub.f32 %v9671_v59, %v7780_v43 }
 0x385   :  { %9664 = vst [vmem:[#allocation89_spill] sm:$0xff] %v7776_v24 }
 0x386   :  { %v7753_v11 = vpop.permute.xlu0 %2779 }
 0x387   :  { %9656 = vst [vmem:[#allocation122_spill] sm:$0xff] %v7753_v11  ;;  %2953 = vperm.xlu0 %5394, %v7748_v37   ;;  %v7768_v11 = vpop.permute.xlu1 %2755  ;;  %v7784_v37 = vpop.eup %5729 }
 0x388   :  { %9661 = vst [vmem:[#allocation123_spill] sm:$0xff] %v7768_v11  ;;  %3100 = vperm.xlu1 %5393, %v7758_v1   ;;  %v2523_v1 = vmul.f32 1.442695, %v2314_v6  ;;  %9666 = vst [vmem:[#allocation105_spill] sm:$0xff] %v7784_v37  ;;  %v7794_v29 = vpop.eup %5731  ;;  %v7798_v6 = vrot.slane %v7436_v38, %v6974_v34  ;;  %v2497_v34 = vmul.f32 1.442695, %v2301_v56 }
 0x389   :  { %9670 = vst [vmem:[#allocation91_spill] sm:$0xff] %v7794_v29  ;;  %v9679_v56 = vld [vmem:[#allocation95_spill] sm:$0xff] }
 0x38a   :  { %v7771_v17 = vpop.permute.xlu0 %2785  ;;  %5745 = vpow2.f32 %v2523_v1  ;;  %v7816_v1 = vrot.slane %v7436_v38, %v6982_v52  ;;  %v2501_v52 = vmul.f32 1.442695, %v2303_v19  ;;  %v9684_v19 = vld [vmem:[#allocation97_spill] sm:$0xff] }
 0x38b   :  { %9662 = vst [vmem:[#allocation124_spill] sm:$0xff] %v7771_v17  ;;  %2959 = vperm.xlu0 %5394, %v7766_v16   ;;  %v7786_v17 = vpop.permute.xlu1 %2758  ;;  %v7802_v16 = vpop.eup %5733  ;;  %5747 = vpow2.f32 %v2493_v36  ;;  %v2305_v36 = vsub.f32 %v9679_v56, %v7672_v26 }
 0x38c   :  { %9667 = vst [vmem:[#allocation125_spill] sm:$0xff] %v7786_v17  ;;  %3106 = vperm.xlu1 %5393, %v7776_v24   ;;  %v2527_v24 = vmul.f32 1.442695, %v2316_v4  ;;  %9672 = vst [vmem:[#allocation108_spill] sm:$0xff] %v7802_v16  ;;  %v7812_v45 = vpop.eup %5735  ;;  %v9676_v4 = vld [vmem:[#allocation110_spill] sm:$0xff] }
 0x38d   :  { %9675 = vst [vmem:[#allocation93_spill] sm:$0xff] %v7812_v45  ;;  %v2320_v59 = vsub.f32 %v9676_v4, %v7798_v6 }
 0x38e   :  { %v7789_v20 = vpop.permute.xlu0 %2791  ;;  %5749 = vpow2.f32 %v2527_v24  ;;  %v7834_v24 = vrot.slane %v7436_v38, %v6990_v54  ;;  %v2505_v54 = vmul.f32 1.442695, %v2305_v36  ;;  %v9689_v36 = vld [vmem:[#allocation99_spill] sm:$0xff] }
 0x38f   :  { %9668 = vst [vmem:[#allocation126_spill] sm:$0xff] %v7789_v20  ;;  %2965 = vperm.xlu0 %5394, %v7784_v37   ;;  %v7804_v20 = vpop.permute.xlu1 %2761  ;;  %v7820_v37 = vpop.eup %5737  ;;  %5751 = vpow2.f32 %v2497_v34  ;;  %v2307_v34 = vsub.f32 %v9684_v19, %v7690_v60 }
 0x390   :  { %9673 = vst [vmem:[#allocation127_spill] sm:$0xff] %v7804_v20  ;;  %3112 = vperm.xlu1 %5393, %v7794_v29   ;;  %v2531_v29 = vmul.f32 1.442695, %v2318_v15  ;;  %9677 = vst [vmem:[#allocation110_spill] sm:$0xff] %v7820_v37  ;;  %v7830_v30 = vpop.eup %5739  ;;  %v9681_v15 = vld [vmem:[#allocation112_spill] sm:$0xff] }
 0x391   :  { %9680 = vst [vmem:[#allocation95_spill] sm:$0xff] %v7830_v30  ;;  %v2322_v4 = vsub.f32 %v9681_v15, %v7816_v1 }
 0x392   :  { %v7807_v63 = vpop.permute.xlu0 %2797  ;;  %5753 = vpow2.f32 %v2531_v29  ;;  %v7852_v29 = vrot.slane %v7436_v38, %v6997_v28  ;;  %v2509_v28 = vmul.f32 1.442695, %v2307_v34  ;;  %v9694_v34 = vld [vmem:[#allocation101_spill] sm:$0xff] }
 0x393   :  { %2971 = vperm.xlu0 %5394, %v7802_v16   ;;  %v7822_v17 = vpop.permute.xlu1 %2764  ;;  %v7838_v16 = vpop.eup %5741  ;;  %5755 = vpow2.f32 %v2501_v52  ;;  %v2309_v52 = vsub.f32 %v9689_v36, %v7708_v18 }
 0x394   :  { %9678 = vst [vmem:[#allocation128_spill] sm:$0xff] %v7822_v17  ;;  %3118 = vperm.xlu1 %5393, %v7812_v45   ;;  %v2535_v45 = vmul.f32 1.442695, %v2320_v59  ;;  %9682 = vst [vmem:[#allocation112_spill] sm:$0xff] %v7838_v16  ;;  %v7848_v56 = vpop.eup %5743  ;;  %v9686_v59 = vld [vmem:[#allocation114_spill] sm:$0xff] }
 0x395   :  { %9685 = vst [vmem:[#allocation97_spill] sm:$0xff] %v7848_v56  ;;  %v2324_v15 = vsub.f32 %v9686_v59, %v7834_v24 }
 0x396   :  { %v7825_v7 = vpop.permute.xlu0 %2803  ;;  %5757 = vpow2.f32 %v2535_v45  ;;  %v7870_v45 = vrot.slane %v7436_v38, %v7011_v44  ;;  %v2513_v44 = vmul.f32 1.442695, %v2309_v52  ;;  %v9699_v52 = vld [vmem:[#allocation102_spill] sm:$0xff] }
 0x397   :  { %2977 = vperm.xlu0 %5394, %v7820_v37   ;;  %v7840_v17 = vpop.permute.xlu1 %2767  ;;  %v7856_v37 = vpop.eup %5745  ;;  %5759 = vpow2.f32 %v2505_v54  ;;  %v2311_v54 = vsub.f32 %v9694_v34, %v7726_v13 }
 0x398   :  { %9683 = vst [vmem:[#allocation129_spill] sm:$0xff] %v7840_v17  ;;  %3124 = vperm.xlu1 %5393, %v7830_v30   ;;  %v2539_v30 = vmul.f32 1.442695, %v2322_v4  ;;  %9687 = vst [vmem:[#allocation114_spill] sm:$0xff] %v7856_v37  ;;  %v7866_v19 = vpop.eup %5747  ;;  %v9691_v4 = vld [vmem:[#allocation116_spill] sm:$0xff] }
 0x399   :  { %9690 = vst [vmem:[#allocation99_spill] sm:$0xff] %v7866_v19  ;;  %v2326_v59 = vsub.f32 %v9691_v4, %v7852_v29  ;;  %v2517_v13 = vmul.f32 1.442695, %v2311_v54  ;;  %v9703_v54 = vld [vmem:[#allocation104_spill] sm:$0xff] }
 0x39a   :  { %v7843_v26 = vpop.permute.xlu0 %2809  ;;  %5761 = vpow2.f32 %v2539_v30  ;;  %v9696_v30 = vld [vmem:[#allocation117_spill] sm:$0xff] }
 0x39b   :  { %2983 = vperm.xlu0 %5394, %v7838_v16   ;;  %v7858_v17 = vpop.permute.xlu1 %2770  ;;  %v2543_v16 = vmul.f32 1.442695, %v2324_v15  ;;  %5763 = vpow2.f32 %v2509_v28  ;;  %v2328_v15 = vsub.f32 %v9696_v30, %v7870_v45  ;;  %v2547_v36 = vmul.f32 1.442695, %v2326_v59 }
 0x39c   :  { %9688 = vst [vmem:[#allocation130_spill] sm:$0xff] %v7858_v17  ;;  %2938 = vperm.xlu1 %5393, %v7848_v56   ;;  %v7874_v56 = vpop.eup %5749  ;;  %v2313_v28 = vsub.f32 %v9699_v52, %v7746_v31 }
 0x39d   :  { %9692 = vst [vmem:[#allocation116_spill] sm:$0xff] %v7874_v56  ;;  %v7884_v38 = vpop.eup %5751  ;;  %5765 = vpow2.f32 %v2543_v16  ;;  %v2551_v16 = vmul.f32 1.442695, %v2328_v15 }
 0x39e   :  { %v7861_v60 = vpop.permute.xlu0 %2815  ;;  %9695 = vst [vmem:[#allocation101_spill] sm:$0xff] %v7884_v38  ;;  %5767 = vpow2.f32 %v2513_v44  ;;  %v2315_v44 = vsub.f32 %v9703_v54, %v7762_v58 }
 0x39f   :  { %2989 = vperm.xlu0 %5394, %v7856_v37   ;;  %v7876_v17 = vpop.permute.xlu1 %2776  ;;  %v7888_v4 = vpop.eup %5753  ;;  %5769 = vpow2.f32 %v2547_v36 }
 0x3a0   :  { %9693 = vst [vmem:[#allocation131_spill] sm:$0xff] %v7876_v17  ;;  %2944 = vperm.xlu1 %5393, %v7866_v19   ;;  %9697 = vst [vmem:[#allocation117_spill] sm:$0xff] %v7888_v4  ;;  %v7898_v34 = vpop.eup %5755  ;;  %5771 = vpow2.f32 %v2517_v13  ;;  %v9765_v17 = vld [vmem:[#allocation24_spill] sm:$0xff] }
 0x3a1   :  { %9700 = vst [vmem:[#allocation102_spill] sm:$0xff] %v7898_v34  ;;  %5773 = vpow2.f32 %v2551_v16  ;;  %v4237_v61 = vunpack.c.h.b16 %v9765_v17 }
 0x3a2   :  { %v7879_v18 = vpop.permute.xlu0 %2821 }
 0x3a3   :  { %2995 = vperm.xlu0 %5394, %v7874_v56   ;;  %v7890_v37 = vpop.permute.xlu1 %2782  ;;  %v7900_v59 = vpop.eup %5757 }
 0x3a4   :  { %9698 = vst [vmem:[#allocation132_spill] sm:$0xff] %v7890_v37  ;;  %2950 = vperm.xlu1 %5393, %v7884_v38   ;;  %9701 = vst [vmem:[#allocation133_spill] sm:$0xff] %v7900_v59  ;;  %v7910_v31 = vpop.eup %5759  ;;  %v9764_v37 = vld [vmem:[#allocation36_spill] sm:$0xff] }
 0x3a5   :  { %9704 = vst [vmem:[#allocation104_spill] sm:$0xff] %v7910_v31 }
 0x3a6   :  { %v7893_v19 = vpop.permute.xlu0 %2827 }
 0x3a7   :  { %3001 = vperm.xlu0 %5394, %v7888_v4   ;;  %v7902_v30 = vpop.permute.xlu1 %2788  ;;  %v2521_v4 = vmul.f32 1.442695, %v2313_v28  ;;  %v7912_v36 = vpop.eup %5761 }
 0x3a8   :  { %9702 = vst [vmem:[#allocation134_spill] sm:$0xff] %v7902_v30  ;;  %2956 = vperm.xlu1 %5393, %v7898_v34   ;;  %9705 = vst [vmem:[#allocation135_spill] sm:$0xff] %v7912_v36  ;;  %v2525_v34 = vmul.f32 1.442695, %v2315_v44  ;;  %v7922_v58 = vpop.eup %5763 }
 0x3a9   :  { %5775 = vpow2.f32 %v2521_v4 }
 0x3aa   :  { %v7905_v38 = vpop.permute.xlu0 %2833  ;;  %v7924_v28 = vpop.eup %5765  ;;  %5777 = vpow2.f32 %v2525_v34 }
 0x3ab   :  { %3007 = vperm.xlu0 %5394, %v7900_v59   ;;  %v7914_v15 = vpop.permute.xlu1 %2794  ;;  %v9706_v59 = vld [vmem:[#allocation106_spill] sm:$0xff]  ;;  %9708 = vst [vmem:[#allocation136_spill] sm:$0xff] %v7924_v28 }
 0x3ac   :  { %2962 = vperm.xlu1 %5393, %v7910_v31   ;;  %v2317_v13 = vsub.f32 %v9706_v59, %v7780_v43  ;;  %9707 = vst [vmem:[#allocation106_spill] sm:$0xff] %v7922_v58  ;;  %v9710_v31 = vld [vmem:[#allocation107_spill] sm:$0xff]  ;;  %v7934_v43 = vpop.eup %5767 }
 0x3ad   :  { %9711 = vst [vmem:[#allocation107_spill] sm:$0xff] %v7934_v43  ;;  %v7936_v4 = vpop.eup %5769 }
 0x3ae   :  { %v7917_v52 = vpop.permute.xlu0 %2839  ;;  %v2529_v56 = vmul.f32 1.442695, %v2317_v13  ;;  %9712 = vst [vmem:[#allocation138_spill] sm:$0xff] %v7936_v4 }
 0x3af   :  { %3013 = vperm.xlu0 %5394, %v7912_v36   ;;  %v7926_v16 = vpop.permute.xlu1 %2800  ;;  %v2319_v36 = vsub.f32 %v9710_v31, %v7798_v6  ;;  %v7946_v6 = vpop.eup %5771 }
 0x3b0   :  { %2968 = vperm.xlu1 %5393, %v7922_v58   ;;  %v9714_v58 = vld [vmem:[#allocation109_spill] sm:$0xff]  ;;  %5779 = vpow2.f32 %v2529_v56  ;;  %v7948_v34 = vpop.eup %5773  ;;  %v3878_v56 = vunpack.c.h.b16 %v9586_v42 }
 0x3b1   :  { %9715 = vst [vmem:[#allocation109_spill] sm:$0xff] %v7946_v6  ;;  %9716 = vst [vmem:[#allocation140_spill] sm:$0xff] %v7948_v34 }
 0x3b2   :  { %v7929_v54 = vpop.permute.xlu0 %3906 }
 0x3b3   :  { %9709 = vst [vmem:[#allocation137_spill] sm:$0xff] %v7929_v54  ;;  %3019 = vperm.xlu0 %5394, %v7924_v28   ;;  %v7938_v59 = vpop.permute.xlu1 %2806  ;;  %v2321_v28 = vsub.f32 %v9714_v58, %v7816_v1  ;;  %v2533_v54 = vmul.f32 1.442695, %v2319_v36  ;;  %v7963_v36 = vpack.c.bf16 %v7318_v47, %v7304_v12  ;;  %v7977_v12 = vpack.c.bf16 %v7247_v0, %v7328_v10 }
 0x3b4   :  { %2974 = vperm.xlu1 %5393, %v7934_v43   ;;  %v9717_v43 = vld [vmem:[#allocation111_spill] sm:$0xff]  ;;  %v3798_v0 = vpack.c.bf16 %v7260_v35, %v7338_v62 }
 0x3b5   :  { %5781 = vpow2.f32 %v2533_v54  ;;  %v3880_v42 = vunpack.c.h.b16 %v7963_v36 }
 0x3b6   :  { %v7941_v44 = vpop.permute.xlu0 %3915  ;;  %v7958_v1 = vpop.eup %5775 }
 0x3b7   :  { %9713 = vst [vmem:[#allocation139_spill] sm:$0xff] %v7941_v44  ;;  %3025 = vperm.xlu0 %5394, %v7936_v4   ;;  %v7950_v31 = vpop.permute.xlu1 %2812  ;;  %v2323_v4 = vsub.f32 %v9717_v43, %v7834_v24  ;;  %v2537_v44 = vmul.f32 1.442695, %v2321_v28  ;;  %9718 = vst [vmem:[#allocation111_spill] sm:$0xff] %v7958_v1  ;;  %v7972_v54 = vpop.eup %5777 }
 0x3b8   :  { %2980 = vperm.xlu1 %5393, %v7946_v6  }
 0x3b9   :  { %5783 = vpow2.f32 %v2537_v44  ;;  %v2541_v28 = vmul.f32 1.442695, %v2323_v4 }
 0x3ba   :  { %v7953_v13 = vpop.permute.xlu0 %3037 }
 0x3bb   :  { %3031 = vperm.xlu0 %5394, %v7948_v34   ;;  %v7965_v58 = vpop.permute.xlu1 %2818  ;;  %v9719_v34 = vld [vmem:[#allocation113_spill] sm:$0xff]  ;;  %5785 = vpow2.f32 %v2541_v28 }
 0x3bc   :  { %2986 = vperm.xlu1 %5393, %v7958_v1   ;;  %v2325_v24 = vsub.f32 %v9719_v34, %v7852_v29  ;;  %9720 = vst [vmem:[#allocation113_spill] sm:$0xff] %v7972_v54  ;;  %v3882_v34 = vunpack.c.h.b16 %v7977_v12 }
 0x3bd   :  { %v7986_v44 = vpop.eup %5779 }
 0x3be   :  { %v7968_v6 = vpop.permute.xlu0 %3043  ;;  %v2545_v4 = vmul.f32 1.442695, %v2325_v24  ;;  %v3799_v24 = vpack.c.bf16 %v7274_v9, %v7350_v46 }
 0x3bf   :  { %3921 = vperm.xlu0 %5394, %v3878_v56   ;;  %v7979_v47 = vpop.permute.xlu1 %2824  ;;  %v9721_v56 = vld [vmem:[#allocation115_spill] sm:$0xff] }
 0x3c0   :  { %2992 = vperm.xlu1 %5393, %v7972_v54   ;;  %v2327_v29 = vsub.f32 %v9721_v56, %v7870_v45  ;;  %9722 = vst [vmem:[#allocation115_spill] sm:$0xff] %v7986_v44  ;;  %5787 = vpow2.f32 %v2545_v4  ;;  %v3884_v45 = vunpack.c.h.b16 %v3798_v0  ;;  %v3886_v56 = vunpack.c.h.b16 %v3799_v24 }
 0x3c2   :  { %v7982_v43 = vpop.permute.xlu0 %3049  ;;  %v7996_v1 = vpop.eup %5781 }
 0x3c3   :  { %3927 = vperm.xlu0 %5394, %v3880_v42   ;;  %v7991_v10 = vpop.permute.xlu1 %2830  ;;  %v2549_v42 = vmul.f32 1.442695, %v2327_v29  ;;  %9723 = vst [vmem:[#allocation141_spill] sm:$0xff] %v7996_v1  ;;  %v3800_v29 = vpack.c.bf16 %v7286_v14, %v7364_v57 }
 0x3c4   :  { %2998 = vperm.xlu1 %5393, %v7986_v44  }
 0x3c5   :  { %5789 = vpow2.f32 %v2549_v42  ;;  %v3888_v46 = vunpack.c.h.b16 %v3800_v29 }
 0x3c6   :  { %v7994_v54 = vpop.permute.xlu0 %3055  ;;  %v8005_v62 = vpop.eup %5783 }
 0x3c7   :  { %3933 = vperm.xlu0 %5394, %v3882_v34   ;;  %v8000_v28 = vpop.permute.xlu1 %2836  ;;  %9724 = vst [vmem:[#allocation142_spill] sm:$0xff] %v8005_v62 }
 0x3c8   :  { %3004 = vperm.xlu1 %5393, %v7996_v1   ;;  %v8014_v9 = vpop.eup %5785 }
 0x3c9   :  { %9726 = vst [vmem:[#allocation144_spill] sm:$0xff] %v8014_v9 }
 0x3ca   :  { %v8003_v35 = vpop.permute.xlu0 %3061 }
 0x3cb   :  { %3939 = vperm.xlu0 %5394, %v3884_v45   ;;  %v8009_v4 = vpop.permute.xlu1 %3909  ;;  %v3801_v45 = vpack.c.bf16 %v7298_v3, %v7382_v25 }
 0x3cc   :  { %9725 = vst [vmem:[#allocation143_spill] sm:$0xff] %v8009_v4  ;;  %3010 = vperm.xlu1 %5393, %v8005_v62   ;;  %v3802_v62 = vpack.c.bf16 %v7312_v39, %v7402_v41  ;;  %v3879_v39 = vunpack.c.l.b16 %v7963_v36 }
 0x3cd   :  { %v8023_v14 = vpop.eup %5787  ;;  %v3890_v57 = vunpack.c.h.b16 %v3801_v45 }
 0x3ce   :  { %v8012_v34 = vpop.permute.xlu0 %3067  ;;  %9728 = vst [vmem:[#allocation146_spill] sm:$0xff] %v8023_v14  ;;  %v3892_v25 = vunpack.c.h.b16 %v3802_v62 }
 0x3cf   :  { %3945 = vperm.xlu0 %5394, %v3886_v56   ;;  %v8018_v42 = vpop.permute.xlu1 %3912 }
 0x3d0   :  { %9727 = vst [vmem:[#allocation145_spill] sm:$0xff] %v8018_v42  ;;  %3016 = vperm.xlu1 %5393, %v8014_v9   ;;  %v3803_v9 = vpack.c.bf16 %v7322_v55, %v7416_v22  ;;  %v3881_v55 = vunpack.c.l.b16 %v7977_v12  ;;  %v3885_v12 = vunpack.c.l.b16 %v3799_v24  ;;  %v3889_v24 = vunpack.c.l.b16 %v3801_v45 }
 0x3d2   :  { %v8021_v1 = vpop.permute.xlu0 %3073  ;;  %v8032_v3 = vpop.eup %5789  ;;  %v3894_v41 = vunpack.c.h.b16 %v3803_v9 }
 0x3d3   :  { %3951 = vperm.xlu0 %5394, %v3888_v46   ;;  %v8027_v56 = vpop.permute.xlu1 %3918  ;;  %9730 = vst [vmem:[#allocation148_spill] sm:$0xff] %v8032_v3 }
 0x3d4   :  { %9729 = vst [vmem:[#allocation147_spill] sm:$0xff] %v8027_v56  ;;  %3022 = vperm.xlu1 %5393, %v8023_v14   ;;  %v3804_v14 = vpack.c.bf16 %v7330_v8, %v7426_v50  ;;  %v3806_v50 = vpack.c.bf16 %v7358_v5, %v7458_v21  ;;  %v3808_v5 = vpack.c.bf16 %v7390_v33, %v7494_v40  ;;  %v3893_v40 = vunpack.c.l.b16 %v3803_v9 }
 0x3d5   :  { %v4227_v9 = vunpack.c.h.b16 %v7180_v51 }
 0x3d6   :  { %v8030_v44 = vpop.permute.xlu0 %3079  ;;  %v3896_v22 = vunpack.c.h.b16 %v3804_v14 }
 0x3d7   :  { %3957 = vperm.xlu0 %5394, %v3890_v57   ;;  %v8036_v46 = vpop.permute.xlu1 %3034 }
 0x3d8   :  { %3028 = vperm.xlu1 %5393, %v8032_v3   ;;  %v3805_v3 = vpack.c.bf16 %v7344_v2, %v7442_v48  ;;  %v3807_v2 = vpack.c.bf16 %v7372_v23, %v7476_v53 }
 0x3da   :  { %v8039_v4 = vpop.permute.xlu0 %3085  ;;  %v3898_v8 = vunpack.c.h.b16 %v3805_v3 }
 0x3db   :  { %9731 = vst [vmem:[#allocation149_spill] sm:$0xff] %v8039_v4  ;;  %3963 = vperm.xlu0 %5394, %v3892_v25   ;;  %v8044_v57 = vpop.permute.xlu1 %3040  ;;  %v3883_v25 = vunpack.c.l.b16 %v3798_v0  ;;  %v3900_v4 = vunpack.c.h.b16 %v3806_v50  ;;  %v3887_v0 = vunpack.c.l.b16 %v3800_v29  ;;  %v9738_v29 = vld [vmem:[#allocation14_spill] sm:$0xff] }
 0x3dc   :  { %3924 = vperm.xlu1 %5393, %v3879_v39  }
 0x3de   :  { %v8046_v56 = vpop.permute.xlu0 %3091 }
 0x3df   :  { %9732 = vst [vmem:[#allocation150_spill] sm:$0xff] %v8046_v56  ;;  %3969 = vperm.xlu0 %5394, %v3894_v41   ;;  %v8051_v42 = vpop.permute.xlu1 %3046 }
 0x3e0   :  { %3930 = vperm.xlu1 %5393, %v3881_v55  }
 0x3e2   :  { %v8053_v36 = vpop.permute.xlu0 %3097 }
 0x3e3   :  { %9733 = vst [vmem:[#allocation151_spill] sm:$0xff] %v8053_v36  ;;  %3975 = vperm.xlu0 %5394, %v3896_v22   ;;  %v8057_v39 = vpop.permute.xlu1 %3052  ;;  %v3902_v22 = vunpack.c.h.b16 %v3807_v2 }
 0x3e4   :  { %3936 = vperm.xlu1 %5393, %v3883_v25  }
 0x3e6   :  { %v8059_v41 = vpop.permute.xlu0 %3103 }
 0x3e7   :  { %9734 = vst [vmem:[#allocation152_spill] sm:$0xff] %v8059_v41  ;;  %3981 = vperm.xlu0 %5394, %v3898_v8   ;;  %v8063_v48 = vpop.permute.xlu1 %3058  ;;  %v3904_v8 = vunpack.c.h.b16 %v3808_v5 }
 0x3e8   :  { %3942 = vperm.xlu1 %5393, %v3885_v12   ;;  %v4221_v12 = vunpack.c.h.b16 %v9738_v29 }
 0x3ea   :  { %v8065_v55 = vpop.permute.xlu0 %3109 }
 0x3eb   :  { %9735 = vst [vmem:[#allocation153_spill] sm:$0xff] %v8065_v55  ;;  %3987 = vperm.xlu0 %5394, %v3900_v4   ;;  %v8069_v21 = vpop.permute.xlu1 %3064  ;;  %v3891_v4 = vunpack.c.l.b16 %v3802_v62 }
 0x3ec   :  { %3948 = vperm.xlu1 %5393, %v3887_v0   ;;  %v9740_v0 = vld [vmem:[#allocation18_spill] sm:$0xff] }
 0x3ee   :  { %v8071_v25 = vpop.permute.xlu0 %3115 }
 0x3ef   :  { %9736 = vst [vmem:[#allocation154_spill] sm:$0xff] %v8071_v25  ;;  %3993 = vperm.xlu0 %5394, %v3902_v22   ;;  %v8073_v23 = vpop.permute.xlu1 %3070  ;;  %v4223_v22 = vunpack.c.h.b16 %v9740_v0 }
 0x3f0   :  { %3954 = vperm.xlu1 %5393, %v3889_v24   ;;  %v3895_v24 = vunpack.c.l.b16 %v3804_v14 }
 0x3f2   :  { %v8075_v53 = vpop.permute.xlu0 %3121 }
 0x3f3   :  { %9737 = vst [vmem:[#allocation155_spill] sm:$0xff] %v8075_v53  ;;  %3999 = vperm.xlu0 %5394, %v3904_v8   ;;  %v8078_v55 = vpop.permute.xlu1 %3076  ;;  %v9743_v8 = vld [vmem:[#allocation19_spill] sm:$0xff] }
 0x3f4   :  { %3960 = vperm.xlu1 %5393, %v3891_v4   ;;  %v4225_v62 = vunpack.c.h.b16 %v9743_v8  ;;  %v3897_v4 = vunpack.c.l.b16 %v3805_v3 }
 0x3f6   :  { %v8080_v33 = vpop.permute.xlu0 %3127 }
 0x3f7   :  { %9739 = vst [vmem:[#allocation14_spill] sm:$0xff] %v8080_v33  ;;  %4256 = vperm.xlu0 %5394, %v4221_v12   ;;  %v8083_v45 = vpop.permute.xlu1 %3082 }
 0x3f8   :  { %9741 = vst [vmem:[#allocation18_spill] sm:$0xff] %v8083_v45  ;;  %3966 = vperm.xlu1 %5393, %v3893_v40   ;;  %v3899_v40 = vunpack.c.l.b16 %v3806_v50 }
 0x3fa   :  { %v8085_v25 = vpop.permute.xlu0 %2941 }
 0x3fb   :  { %9742 = vst [vmem:[#allocation156_spill] sm:$0xff] %v8085_v25  ;;  %4262 = vperm.xlu0 %5394, %v4223_v22   ;;  %v8088_v53 = vpop.permute.xlu1 %3088  ;;  %v9748_v22 = vld [vmem:[#allocation20_spill] sm:$0xff] }
 0x3fc   :  { %9744 = vst [vmem:[#allocation19_spill] sm:$0xff] %v8088_v53  ;;  %3972 = vperm.xlu1 %5393, %v3895_v24   ;;  %v4229_v14 = vunpack.c.h.b16 %v9748_v22  ;;  %v3901_v24 = vunpack.c.l.b16 %v3807_v2  ;;  %v9757_v2 = vld [vmem:[#allocation23_spill] sm:$0xff] }
 0x3fe   :  { %v8090_v41 = vpop.permute.xlu0 %2947 }
 0x3ff   :  { %9745 = vst [vmem:[#allocation157_spill] sm:$0xff] %v8090_v41  ;;  %4268 = vperm.xlu0 %5394, %v4225_v62   ;;  %v8093_v12 = vpop.permute.xlu1 %3094  ;;  %v9751_v62 = vld [vmem:[#allocation21_spill] sm:$0xff] }
 0x400   :  { %9746 = vst [vmem:[#allocation158_spill] sm:$0xff] %v8093_v12  ;;  %3978 = vperm.xlu1 %5393, %v3897_v4   ;;  %v4231_v3 = vunpack.c.h.b16 %v9751_v62  ;;  %v3903_v4 = vunpack.c.l.b16 %v3808_v5  ;;  %v4222_v5 = vunpack.c.l.b16 %v9740_v0  ;;  %v9770_v0 = vld [vmem:[#allocation35_spill] sm:$0xff] }
 0x402   :  { %v8095_v33 = vpop.permute.xlu0 %2953 }
 0x403   :  { %9747 = vst [vmem:[#allocation159_spill] sm:$0xff] %v8095_v33  ;;  %4274 = vperm.xlu0 %5394, %v4227_v9   ;;  %v8098_v36 = vpop.permute.xlu1 %3100  ;;  %v9754_v9 = vld [vmem:[#allocation22_spill] sm:$0xff] }
 0x404   :  { %9749 = vst [vmem:[#allocation20_spill] sm:$0xff] %v8098_v36  ;;  %3984 = vperm.xlu1 %5393, %v3899_v40   ;;  %v4233_v50 = vunpack.c.h.b16 %v9754_v9  ;;  %v4220_v40 = vunpack.c.l.b16 %v9738_v29 }
 0x406   :  { %v8100_v45 = vpop.permute.xlu0 %2959 }
 0x407   :  { %9750 = vst [vmem:[#allocation160_spill] sm:$0xff] %v8100_v45  ;;  %4280 = vperm.xlu0 %5394, %v4229_v14   ;;  %v8103_v56 = vpop.permute.xlu1 %3106  ;;  %v4235_v14 = vunpack.c.h.b16 %v9757_v2  ;;  %v9776_v45 = vld [vmem:[#allocation49_spill] sm:$0xff] }
 0x408   :  { %9752 = vst [vmem:[#allocation21_spill] sm:$0xff] %v8103_v56  ;;  %3990 = vperm.xlu1 %5393, %v3901_v24  }
 0x40a   :  { %v8105_v12 = vpop.permute.xlu0 %2965 }
 0x40b   :  { %9753 = vst [vmem:[#allocation161_spill] sm:$0xff] %v8105_v12  ;;  %4286 = vperm.xlu0 %5394, %v4231_v3   ;;  %v8108_v53 = vpop.permute.xlu1 %3112  ;;  %v9760_v3 = vmov 0.0   ;;  %v9775_v12 = vld [vmem:[#allocation50_spill] sm:$0xff] }
 0x40c   :  { %9755 = vst [vmem:[#allocation22_spill] sm:$0xff] %v8108_v53  ;;  %3996 = vperm.xlu1 %5393, %v3903_v4   ;;  %5359 = vmatprep.mubr.msk.bf16.mxu1 %vm5903_vm9, %v9760_v3  ;;  %v9761_v4 = vld [vmem:[#allocation46_spill] sm:$0xff]  ;;  %v9762_v53 = vld [vmem:[#allocation39_spill] sm:$0xff] }
 0x40d   :  { %v3285_v56 = vrot.slane %v9762_v53, %v9761_v4  ;;  %v3276_v3 = vrot.slane %v9770_v0, %v9761_v4  ;;  %v9771_v53 = vld [vmem:[#allocation33_spill] sm:$0xff] }
 0x40e   :  { %v8110_v36 = vpop.permute.xlu0 %2971 }
 0x40f   :  { %9756 = vst [vmem:[#allocation162_spill] sm:$0xff] %v8110_v36  ;;  %4292 = vperm.xlu0 %5394, %v4233_v50   ;;  %v8114_v30 = vpop.permute.xlu1 %3118  ;;  %v9763_v50 = vld [vmem:[#allocation45_spill] sm:$0xff]  ;;  %v9773_v36 = vld [vmem:[#allocation43_spill] sm:$0xff] }
 0x410   :  { %9758 = vst [vmem:[#allocation23_spill] sm:$0xff] %v8114_v30  ;;  %4253 = vperm.xlu1 %5393, %v4220_v40   ;;  %v3289_v29 = vrot.slane %v9764_v37, %v9763_v50  ;;  %v9766_v30 = vld [vmem:[#allocation40_spill] sm:$0xff]  ;;  %v3298_v20 = vrot.slane %v9767_v49, %v9763_v50  ;;  %v3280_v27 = vrot.slane %v9771_v53, %v9763_v50 }
 0x411   :  { %v3294_v40 = vrot.slane %v9766_v30, %v9761_v4  ;;  %v9772_v37 = vld [vmem:[#allocation44_spill] sm:$0xff]  ;;  %v3307_v30 = vrot.slane %v9773_v36, %v9763_v50  ;;  %v3312_v49 = vrot.slane %v7521_v32, %v9761_v4  ;;  %v3321_v53 = vrot.slane %v9775_v12, %v9761_v4 }
 0x412   :  { %v8116_v24 = vpop.permute.xlu0 %2977  ;;  %v3290_v0 = vsel %vm1240_vm0, %v3289_v29, %v3285_v56  ;;  %v9778_v32 = vld [vmem:[#allocation56_spill] sm:$0xff]  ;;  %v3281_v56 = vsel %vm1240_vm0, %v3280_v27, %v3276_v3  ;;  %v9780_v29 = vld [vmem:[#allocation62_spill] sm:$0xff] }
 0x413   :  { %9759 = vst [vmem:[#allocation163_spill] sm:$0xff] %v8116_v24  ;;  %4298 = vperm.xlu0 %5394, %v4235_v14   ;;  %v8130_v11 = vpop.permute.xlu1 %3124  ;;  %v3303_v24 = vrot.slane %v9772_v37, %v9761_v4  ;;  %v3325_v37 = vrot.slane %v9776_v45, %v9763_v50  ;;  %v3299_v25 = vsel %vm1240_vm0, %v3298_v20, %v3294_v40  ;;  %v9781_v20 = vld [vmem:[#allocation52_spill] sm:$0xff] }
 0x414   :  { %9768 = vst [vmem:[#allocation46_spill] sm:$0xff] %v8130_v11  ;;  %4259 = vperm.xlu1 %5393, %v4222_v5   ;;  %v9774_v5 = vld [vmem:[#allocation47_spill] sm:$0xff]  ;;  %v3334_v33 = vrot.slane %v9778_v32, %v9763_v50  ;;  %v3339_v45 = vrot.slane %v9780_v29, %v9761_v4  ;;  %v3343_v40 = vrot.slane %v9781_v20, %v9763_v50  ;;  %v4226_v32 = vunpack.c.l.b16 %v7180_v51 }
 0x415   :  { %v3316_v11 = vrot.slane %v9774_v5, %v9763_v50  ;;  %v3308_v12 = vsel %vm1240_vm0, %v3307_v30, %v3303_v24  ;;  %v3719_v5 = vsel %vm1809_vm1, %v3290_v0, %v3281_v56  ;;  %v4232_v56 = vunpack.c.l.b16 %v9754_v9  ;;  %v9782_v9 = vld [vmem:[#allocation25_spill] sm:$0xff] }
 0x416   :  { %v8132_v14 = vpop.permute.xlu0 %2983  ;;  %v3344_v0 = vsel %vm1240_vm0, %v3343_v40, %v3339_v45  ;;  %v4236_v45 = vunpack.c.l.b16 %v9765_v17  ;;  %v3208_v20 = vrot.slane %v7807_v63, %v9763_v50  ;;  %v4238_v40 = vunpack.c.l.b16 %v9782_v9 }
 0x417   :  { %9769 = vst [vmem:[#allocation39_spill] sm:$0xff] %v8132_v14  ;;  %4304 = vperm.xlu0 %5394, %v4237_v61   ;;  %v4224_v14 = vunpack.c.l.b16 %v9743_v8  ;;  %v9777_v61 = vld [vmem:[#allocation58_spill] sm:$0xff]  ;;  %v8157_v41 = vpop.permute.xlu1 %2938 }
 0x418   :  { %v3330_v36 = vrot.slane %v9777_v61, %v9761_v4  ;;  %v3317_v61 = vsel %vm1240_vm0, %v3316_v11, %v3312_v49  ;;  %v4228_v11 = vunpack.c.l.b16 %v9748_v22  ;;  %v3213_v49 = vrot.slane %v7926_v16, %v9761_v4 }
 0x419   :  { %4265 = vperm.xlu1 %5393, %v4224_v14   ;;  %v3720_v14 = vsel %vm1811_vm2, %v3299_v25, %v3719_v5  ;;  %v4234_v22 = vunpack.c.l.b16 %v9757_v2  ;;  %v3222_v16 = vrot.slane %v7938_v59, %v9761_v4  ;;  %v3244_v59 = vrot.slane %v7879_v18, %v9763_v50 }
 0x41a   :  { %v8159_v8 = vpop.permute.xlu0 %2989  ;;  %v3721_v27 = vsel %vm1813_vm3, %v3308_v12, %v3720_v14  ;;  %v3335_v24 = vsel %vm1240_vm0, %v3334_v33, %v3330_v36  ;;  %v4230_v36 = vunpack.c.l.b16 %v9751_v62  ;;  %v3204_v12 = vrot.slane %v7914_v15, %v9761_v4 }
 0x41b   :  { %9779 = vst [vmem:[#allocation45_spill] sm:$0xff] %v8159_v8  ;;  %v3326_v8 = vsel %vm1240_vm0, %v3325_v37, %v3321_v53  ;;  %v8174_v3 = vpop.permute.xlu1 %2944  ;;  %v3722_v29 = vsel %vm1815_vm4, %v3317_v61, %v3721_v27  ;;  %v3231_v62 = vrot.slane %v7950_v31, %v9761_v4  ;;  %v3235_v15 = vrot.slane %v7861_v60, %v9763_v50 }
 0x41c   :  { %v3723_v51 = vsel %vm1817_vm5, %v3326_v8, %v3722_v29  ;;  %v3217_v8 = vrot.slane %v7825_v7, %v9763_v50  ;;  %v3226_v7 = vrot.slane %v7843_v26, %v9763_v50  ;;  %v3253_v61 = vrot.slane %v7893_v19, %v9763_v50 }
 0x41d   :  { %4271 = vperm.xlu1 %5393, %v4226_v32   ;;  %v3724_v25 = vsel %vm1819_vm6, %v3335_v24, %v3723_v51  ;;  %v3262_v32 = vrot.slane %v7905_v38, %v9763_v50  ;;  %v3271_v26 = vrot.slane %v7917_v52, %v9763_v50  ;;  %v3240_v60 = vrot.slane %v7965_v58, %v9761_v4 }
 0x41e   :  { %v8176_v30 = vpop.permute.xlu0 %2995  ;;  %v3725_v37 = vsel %vm1821_vm7, %v3344_v0, %v3724_v25  ;;  %v3218_v5 = vsel %vm1240_vm0, %v3217_v8, %v3213_v49  ;;  %v3209_v18 = vsel %vm1240_vm0, %v3208_v20, %v3204_v12  ;;  %v3227_v14 = vsel %vm1240_vm0, %v3226_v7, %v3222_v16 }
 0x41f   :  { %v8185_v53 = vpop.permute.xlu1 %2950  ;;  %v8206_v2 = vsel %vm1880_vm8, %v3725_v37, 0.0  ;;  %v3249_v27 = vrot.slane %v7979_v47, %v9761_v4  ;;  %v3573_v24 = vrot.slane %v8044_v57, %v9761_v4  ;;  %v3712_v19 = vsel %vm1809_vm1, %v3218_v5, %v3209_v18 }
 0x420   :  { %v3236_v38 = vsel %vm1240_vm0, %v3235_v15, %v3231_v62  ;;  %v3258_v52 = vrot.slane %v7991_v10, %v9761_v4  ;;  %v3582_v58 = vrot.slane %v8051_v42, %v9761_v4  ;;  %v3577_v29 = vrot.slane %v7968_v6, %v9763_v50 }
 0x421   :  { %4277 = vperm.xlu1 %5393, %v4228_v11   ;;  %v3267_v0 = vrot.slane %v8000_v28, %v9761_v4  ;;  %v3564_v47 = vrot.slane %v8036_v46, %v9761_v4  ;;  %v3591_v57 = vrot.slane %v8057_v39, %v9761_v4  ;;  %v3713_v10 = vsel %vm1811_vm2, %v3227_v14, %v3712_v19 }
 0x422   :  { %v8187_v33 = vpop.permute.xlu0 %3001  ;;  %v3245_v42 = vsel %vm1240_vm0, %v3244_v59, %v3240_v60  ;;  %v3586_v6 = vrot.slane %v7982_v43, %v9763_v50  ;;  %v3600_v28 = vrot.slane %v8063_v48, %v9761_v4  ;;  %v3568_v46 = vrot.slane %v7953_v13, %v9763_v50 }
 0x423   :  { %v8215_v63 = vpop.permute.xlu1 %2956  ;;  %v3254_v39 = vsel %vm1240_vm0, %v3253_v61, %v3249_v27  ;;  %v3595_v25 = vrot.slane %v7994_v54, %v9763_v50  ;;  %v3578_v49 = vsel %vm1240_vm0, %v3577_v29, %v3573_v24  ;;  %v3714_v37 = vsel %vm1813_vm3, %v3236_v38, %v3713_v10  ;;  %v9783_v27 = vld [vmem:[#allocation157_spill] sm:$0xff]  ;;  %v9786_v29 = vld [vmem:[#allocation160_spill] sm:$0xff] }
 0x424   :  { %v3604_v43 = vrot.slane %v8003_v35, %v9763_v50  ;;  %v3715_v48 = vsel %vm1815_vm4, %v3245_v42, %v3714_v37  ;;  %v3569_v13 = vsel %vm1240_vm0, %v3568_v46, %v3564_v47  ;;  %v3272_v16 = vsel %vm1240_vm0, %v3271_v26, %v3267_v0  ;;  %v9787_v47 = vld [vmem:[#allocation161_spill] sm:$0xff]  ;;  %v9788_v46 = vld [vmem:[#allocation162_spill] sm:$0xff] }
 0x425   :  { %4283 = vperm.xlu1 %5393, %v4230_v36   ;;  %v3263_v36 = vsel %vm1240_vm0, %v3262_v32, %v3258_v52  ;;  %v3596_v8 = vsel %vm1240_vm0, %v3595_v25, %v3591_v57  ;;  %v3747_v20 = vsel %vm1809_vm1, %v3578_v49, %v3569_v13  ;;  %v3609_v35 = vrot.slane %v8069_v21, %v9761_v4  ;;  %v9785_v52 = vld [vmem:[#allocation156_spill] sm:$0xff] }
 0x426   :  { %v8217_v31 = vpop.permute.xlu0 %3007  ;;  %v3605_v62 = vsel %vm1240_vm0, %v3604_v43, %v3600_v28  ;;  %v3716_v7 = vsel %vm1817_vm5, %v3254_v39, %v3715_v48  ;;  %v3618_v59 = vrot.slane %v8073_v23, %v9761_v4  ;;  %v3613_v61 = vrot.slane %v8012_v34, %v9763_v50  ;;  %v9790_v48 = vld [vmem:[#allocation39_spill] sm:$0xff] }
 0x427   :  { %v8247_v11 = vpop.permute.xlu1 %2962  ;;  %v3717_v5 = vsel %vm1819_vm6, %v3263_v36, %v3716_v7  ;;  %v3429_v21 = vrot.slane %v8174_v3, %v9761_v4  ;;  %v3622_v60 = vrot.slane %v8021_v1, %v9763_v50  ;;  %v3631_v23 = vrot.slane %v8030_v44, %v9763_v50  ;;  %v9789_v36 = vld [vmem:[#allocation163_spill] sm:$0xff] }
 0x428   :  { %v3718_v26 = vsel %vm1821_vm7, %v3272_v16, %v3717_v5  ;;  %v3438_v18 = vrot.slane %v8185_v53, %v9761_v4  ;;  %v3614_v3 = vsel %vm1240_vm0, %v3613_v61, %v3609_v35  ;;  %v3433_v24 = vrot.slane %v9783_v27, %v9763_v50  ;;  %v9784_v53 = vld [vmem:[#allocation159_spill] sm:$0xff] }
 0x429   :  { %4289 = vperm.xlu1 %5393, %v4232_v56   ;;  %v3587_v56 = vsel %vm1240_vm0, %v3586_v6, %v3582_v58  ;;  %v3420_v1 = vrot.slane %v8157_v41, %v9761_v4  ;;  %v3447_v44 = vrot.slane %v8215_v63, %v9761_v4  ;;  %v3623_v19 = vsel %vm1240_vm0, %v3622_v60, %v3618_v59  ;;  %v9792_v5 = vld [vmem:[#allocation59_spill] sm:$0xff] }
 0x42a   :  { %v8249_v51 = vpop.permute.xlu0 %3013  ;;  %v3748_v15 = vsel %vm1811_vm2, %v3587_v56, %v3747_v20  ;;  %v3442_v38 = vrot.slane %v9784_v53, %v9763_v50  ;;  %v3456_v17 = vrot.slane %v8247_v11, %v9761_v4  ;;  %v3424_v58 = vrot.slane %v9785_v52, %v9763_v50  ;;  %v9791_v20 = vld [vmem:[#allocation64_spill] sm:$0xff] }
 0x42b   :  { %v2969_v12 = vpop.permute.xlu1 %2968  ;;  %v3749_v32 = vsel %vm1813_vm3, %v3596_v8, %v3748_v15  ;;  %v3451_v0 = vrot.slane %v9786_v29, %v9763_v50  ;;  %v3434_v41 = vsel %vm1240_vm0, %v3433_v24, %v3429_v21  ;;  %v3460_v57 = vrot.slane %v9787_v47, %v9763_v50  ;;  %v9800_v47 = vld [vmem:[#allocation67_spill] sm:$0xff] }
 0x42c   :  { %v3465_v63 = vrot.slane %v2969_v12, %v9761_v4  ;;  %v3443_v10 = vsel %vm1240_vm0, %v3442_v38, %v3438_v18  ;;  %v3772_v28 = vsel %vm1880_vm8, %v3718_v26, 0.0  ;;  %v3469_v39 = vrot.slane %v9788_v46, %v9763_v50  ;;  %v9795_v18 = vld [vmem:[#allocation63_spill] sm:$0xff]  ;;  %v9801_v46 = vld [vmem:[#allocation88_spill] sm:$0xff] }
 0x42d   :  { %4295 = vperm.xlu1 %5393, %v4234_v22   ;;  %v3627_v22 = vrot.slane %v8078_v55, %v9761_v4  ;;  %v3750_v55 = vsel %vm1815_vm4, %v3605_v62, %v3749_v32  ;;  %v3425_v25 = vsel %vm1240_vm0, %v3424_v58, %v3420_v1  ;;  %v3452_v49 = vsel %vm1240_vm0, %v3451_v0, %v3447_v44  ;;  %v9793_v32 = vld [vmem:[#allocation70_spill] sm:$0xff]  ;;  %v9797_v1 = vld [vmem:[#allocation80_spill] sm:$0xff] }
 0x42e   :  { %v8271_v54 = vpop.permute.xlu0 %3019  ;;  %v3478_v43 = vrot.slane %v9789_v36, %v9763_v50  ;;  %v3751_v56 = vsel %vm1817_vm5, %v3614_v3, %v3750_v55  ;;  %v3487_v13 = vrot.slane %v9790_v48, %v9763_v50  ;;  %v3470_v12 = vsel %vm1240_vm0, %v3469_v39, %v3465_v63  ;;  %v9796_v3 = vld [vmem:[#allocation74_spill] sm:$0xff] }
 0x42f   :  { %v2975_v14 = vpop.permute.xlu1 %2974  ;;  %v3752_v16 = vsel %vm1819_vm6, %v3623_v19, %v3751_v56  ;;  %v3352_v62 = vrot.slane %v9791_v20, %v9763_v50  ;;  %v3357_v61 = vrot.slane %v9792_v5, %v9761_v4  ;;  %v3361_v21 = vrot.slane %v9793_v32, %v9763_v50  ;;  %v9798_v19 = vld [vmem:[#allocation13_spill] sm:$0xff]  ;;  %v9806_v20 = vld [vmem:[#allocation119_spill] sm:$0xff] }
 0x430   :  { %v3474_v42 = vrot.slane %v2975_v14, %v9761_v4  ;;  %v3366_v14 = vrot.slane %v9795_v18, %v9761_v4  ;;  %v3370_v27 = vrot.slane %v9796_v3, %v9763_v50  ;;  %v3375_v44 = vrot.slane %v9797_v1, %v9761_v4  ;;  %v9812_v18 = vld [vmem:[#allocation130_spill] sm:$0xff] }
 0x431   :  { %4301 = vperm.xlu1 %5393, %v4236_v45   ;;  %v3632_v45 = vsel %vm1240_vm0, %v3631_v23, %v3627_v22  ;;  %v9794_v23 = vld [vmem:[#allocation55_spill] sm:$0xff]  ;;  %v3379_v53 = vrot.slane %v9798_v19, %v9763_v50  ;;  %v3362_v29 = vsel %vm1240_vm0, %v3361_v21, %v3357_v61  ;;  %v3393_v39 = vrot.slane %v9801_v46, %v9761_v4  ;;  %v9809_v61 = vld [vmem:[#allocation129_spill] sm:$0xff] }
 0x432   :  { %v8300_v34 = vpop.permute.xlu0 %3025  ;;  %v3479_v7 = vsel %vm1240_vm0, %v3478_v43, %v3474_v42  ;;  %v3753_v22 = vsel %vm1821_vm7, %v3632_v45, %v3752_v16  ;;  %v3348_v55 = vrot.slane %v9794_v23, %v9761_v4  ;;  %v3371_v0 = vsel %vm1240_vm0, %v3370_v27, %v3366_v14  ;;  %v9803_v43 = vld [vmem:[#allocation123_spill] sm:$0xff]  ;;  %v9811_v23 = vld [vmem:[#allocation125_spill] sm:$0xff] }
 0x433   :  { %v2981_v11 = vpop.permute.xlu1 %2980  ;;  %v3787_v38 = vsel %vm1880_vm8, %v3753_v22, 0.0  ;;  %v3380_v42 = vsel %vm1240_vm0, %v3379_v53, %v3375_v44  ;;  %v9808_v22 = vld [vmem:[#allocation121_spill] sm:$0xff]  ;;  %v3163_v32 = vrot.slane %v9809_v61, %v9763_v50  ;;  %v3168_v14 = vrot.slane %v9812_v18, %v9761_v4  ;;  %v9813_v27 = vld [vmem:[#allocation79_spill] sm:$0xff]  ;;  %v9814_v44 = vld [vmem:[#allocation128_spill] sm:$0xff] }
 0x434   :  { %v3483_v37 = vrot.slane %v2981_v11, %v9761_v4  ;;  %v3141_v5 = vrot.slane %v9808_v22, %v9761_v4  ;;  %v3159_v19 = vrot.slane %v9814_v44, %v9761_v4  ;;  %v9815_v53 = vld [vmem:[#allocation131_spill] sm:$0xff]  ;;  %v9827_v44 = vld [vmem:[#allocation20_spill] sm:$0xff] }
 0x435   :  { %4307 = vperm.xlu1 %5393, %v4238_v40   ;;  %v3733_v40 = vsel %vm1809_vm1, %v3434_v41, %v3425_v25  ;;  %v9799_v41 = vld [vmem:[#allocation84_spill] sm:$0xff]  ;;  %v9802_v25 = vld [vmem:[#allocation71_spill] sm:$0xff] }
 0x436   :  { %3776 = vadd.xlane.f32.xlu0 %v8206_v2  ;;  %v8328_v6 = vpop.permute.xlu0 %3031  ;;  %v3461_v2 = vsel %vm1240_vm0, %v3460_v57, %v3456_v17  ;;  %v3734_v8 = vsel %vm1811_vm2, %v3443_v10, %v3733_v40  ;;  %v3488_v60 = vsel %vm1240_vm0, %v3487_v13, %v3483_v37  ;;  %v3384_v63 = vrot.slane %v9799_v41, %v9761_v4  ;;  %v9804_v13 = vld [vmem:[#allocation75_spill] sm:$0xff] }
 0x437   :  { %v3735_v35 = vsel %vm1813_vm3, %v3452_v49, %v3734_v8  ;;  %v8350_v15 = vpop.permute.xlu1 %2986  ;;  %v3388_v57 = vrot.slane %v9800_v47, %v9763_v50  ;;  %v3353_v10 = vsel %vm1240_vm0, %v3352_v62, %v3348_v55  ;;  %v3397_v49 = vrot.slane %v9802_v25, %v9763_v50 }
 0x438   :  { %v3736_v26 = vsel %vm1815_vm4, %v3461_v2, %v3735_v35  ;;  %v3145_v40 = vrot.slane %v9803_v43, %v9763_v50  ;;  %v3406_v8 = vrot.slane %v9804_v13, %v9763_v50  ;;  %v3136_v62 = vrot.slane %v9806_v20, %v9763_v50  ;;  %v9807_v35 = vld [vmem:[#allocation118_spill] sm:$0xff] }
 0x439   :  { %v3737_v24 = vsel %vm1817_vm5, %v3470_v12, %v3736_v26  ;;  %v3389_v48 = vsel %vm1240_vm0, %v3388_v57, %v3384_v63  ;;  %v9805_v12 = vld [vmem:[#allocation127_spill] sm:$0xff]  ;;  %v3398_v21 = vsel %vm1240_vm0, %v3397_v49, %v3393_v39  ;;  %v9810_v26 = vld [vmem:[#allocation92_spill] sm:$0xff]  ;;  %v3150_v55 = vrot.slane %v9811_v23, %v9761_v4  ;;  %v9822_v20 = vld [vmem:[#allocation126_spill] sm:$0xff] }
 0x43a   :  { %3773 = vadd.xlane.f32.xlu0 %v3772_v28  ;;  %v8352_v59 = vpop.permute.xlu0 %3921  ;;  %v3738_v17 = vsel %vm1819_vm6, %v3479_v7, %v3737_v24  ;;  %v3726_v28 = vsel %vm1809_vm1, %v3362_v29, %v3353_v10  ;;  %v3154_v16 = vrot.slane %v9805_v12, %v9763_v50  ;;  %v3132_v7 = vrot.slane %v9807_v35, %v9761_v4  ;;  %v9817_v29 = vld [vmem:[#allocation120_spill] sm:$0xff]  ;;  %v9819_v10 = vld [vmem:[#allocation122_spill] sm:$0xff] }
 0x43b   :  { %v8374_v45 = vpop.permute.xlu1 %2992  ;;  %v3739_v58 = vsel %vm1821_vm7, %v3488_v60, %v3738_v17  ;;  %v3727_v36 = vsel %vm1811_vm2, %v3371_v0, %v3726_v28  ;;  %v3402_v60 = vrot.slane %v9810_v26, %v9761_v4  ;;  %v3415_v24 = vrot.slane %v9813_v27, %v9763_v50  ;;  %v9816_v17 = vld [vmem:[#allocation96_spill] sm:$0xff]  ;;  %v9820_v28 = vld [vmem:[#allocation134_spill] sm:$0xff] }
 0x43c   :  { %v3781_v11 = vsel %vm1880_vm8, %v3739_v58, 0.0  ;;  %v3728_v56 = vsel %vm1813_vm3, %v3380_v42, %v3727_v36  ;;  %v3146_v1 = vsel %vm1240_vm0, %v3145_v40, %v3141_v5  ;;  %v3411_v58 = vrot.slane %v9816_v17, %v9761_v4  ;;  %v9818_v63 = vld [vmem:[#allocation132_spill] sm:$0xff]  ;;  %v9823_v5 = vld [vmem:[#allocation19_spill] sm:$0xff]  ;;  %v9824_v26 = vld [vmem:[#allocation158_spill] sm:$0xff] }
 0x43d   :  { %v3172_v0 = vrot.slane %v9817_v29, %v9763_v50  ;;  %v3155_v41 = vsel %vm1240_vm0, %v3154_v16, %v3150_v55  ;;  %v3186_v47 = vrot.slane %v9818_v63, %v9761_v4  ;;  %v3137_v57 = vsel %vm1240_vm0, %v3136_v62, %v3132_v7  ;;  %v9821_v36 = vld [vmem:[#allocation124_spill] sm:$0xff]  ;;  %v9826_v27 = vld [vmem:[#allocation18_spill] sm:$0xff]  ;;  %v9830_v63 = vld [vmem:[#allocation149_spill] sm:$0xff] }
 0x43e   :  { %3788 = vadd.xlane.f32.xlu0 %v3787_v38  ;;  %v8376_v52 = vpop.permute.xlu0 %3927  ;;  %v3177_v38 = vrot.slane %v9815_v53, %v9761_v4  ;;  %v3181_v42 = vrot.slane %v9819_v10, %v9763_v50  ;;  %v3195_v46 = vrot.slane %v9820_v28, %v9761_v4  ;;  %v3729_v25 = vsel %vm1815_vm4, %v3389_v48, %v3728_v56 }
 0x43f   :  { %v8393_v37 = vpop.permute.xlu1 %2998  ;;  %v3705_v49 = vsel %vm1809_vm1, %v3146_v1, %v3137_v57  ;;  %v3190_v43 = vrot.slane %v9821_v36, %v9763_v50  ;;  %v3173_v40 = vsel %vm1240_vm0, %v3172_v0, %v3168_v14  ;;  %v3407_v12 = vsel %vm1240_vm0, %v3406_v8, %v3402_v60  ;;  %v9831_v57 = vld [vmem:[#allocation152_spill] sm:$0xff]  ;;  %v9833_v36 = vld [vmem:[#allocation26_spill] sm:$0xff] }
 0x440   :  { %v3706_v16 = vsel %vm1811_vm2, %v3155_v41, %v3705_v49  ;;  %v3199_v62 = vrot.slane %v9822_v20, %v9763_v50  ;;  %v3182_v35 = vsel %vm1240_vm0, %v3181_v42, %v3177_v38  ;;  %v3730_v7 = vsel %vm1817_vm5, %v3398_v21, %v3729_v25  ;;  %v9825_v21 = vld [vmem:[#allocation150_spill] sm:$0xff]  ;;  %v9828_v38 = vld [vmem:[#allocation151_spill] sm:$0xff] }
 0x441   :  { %v3191_v48 = vsel %vm1240_vm0, %v3190_v43, %v3186_v47  ;;  %v3645_v61 = vrot.slane %v9823_v5, %v9761_v4  ;;  %v3416_v8 = vsel %vm1240_vm0, %v3415_v24, %v3411_v58  ;;  %v3654_v60 = vrot.slane %v9824_v26, %v9761_v4  ;;  %v9829_v58 = vld [vmem:[#allocation21_spill] sm:$0xff] }
 0x442   :  { %3782 = vadd.xlane.f32.xlu0 %v3781_v11  ;;  %v8398_v2 = vpop.permute.xlu0 %3933  ;;  %v3164_v11 = vsel %vm1240_vm0, %v3163_v32, %v3159_v19  ;;  %v3200_v32 = vsel %vm1240_vm0, %v3199_v62, %v3195_v46  ;;  %v3731_v55 = vsel %vm1819_vm6, %v3407_v12, %v3730_v7  ;;  %v3649_v14 = vrot.slane %v9825_v21, %v9763_v50  ;;  %v9835_v7 = vld [vmem:[#allocation23_spill] sm:$0xff] }
 0x443   :  { %v8421_v3 = vpop.permute.xlu1 %3004  ;;  %v3707_v56 = vsel %vm1813_vm3, %v3164_v11, %v3706_v16  ;;  %v3636_v1 = vrot.slane %v9826_v27, %v9761_v4  ;;  %v3663_v24 = vrot.slane %v9827_v44, %v9761_v4  ;;  %v3658_v17 = vrot.slane %v9828_v38, %v9763_v50  ;;  %v9832_v11 = vld [vmem:[#allocation153_spill] sm:$0xff] }
 0x444   :  { %v3708_v22 = vsel %vm1815_vm4, %v3173_v40, %v3707_v56  ;;  %v3672_v29 = vrot.slane %v9829_v58, %v9761_v4  ;;  %v3732_v0 = vsel %vm1821_vm7, %v3416_v8, %v3731_v55  ;;  %v3640_v47 = vrot.slane %v9830_v63, %v9763_v50  ;;  %v9834_v56 = vld [vmem:[#allocation22_spill] sm:$0xff] }
 0x445   :  { %v3709_v18 = vsel %vm1817_vm5, %v3182_v35, %v3708_v22  ;;  %v3667_v10 = vrot.slane %v9831_v57, %v9763_v50  ;;  %v3650_v42 = vsel %vm1240_vm0, %v3649_v14, %v3645_v61  ;;  %v3676_v28 = vrot.slane %v9832_v11, %v9763_v50  ;;  %v9836_v22 = vld [vmem:[#allocation154_spill] sm:$0xff]  ;;  %v9837_v61 = vld [vmem:[#allocation155_spill] sm:$0xff] }
 0x446   :  { %v8443_v39 = vpop.permute.xlu0 %3939  ;;  %v3710_v53 = vsel %vm1819_vm6, %v3191_v48, %v3709_v18  ;;  %v3659_v46 = vsel %vm1240_vm0, %v3658_v17, %v3654_v60  ;;  %v4239_v49 = vunpack.c.h.b16 %v9782_v9  ;;  %v4241_v43 = vunpack.c.h.b16 %v9833_v36  ;;  %v9838_v55 = vld [vmem:[#allocation14_spill] sm:$0xff] }
 0x447   :  { %v8450_v13 = vpop.permute.xlu1 %3010  ;;  %v3711_v41 = vsel %vm1821_vm7, %v3200_v32, %v3710_v53  ;;  %v3641_v40 = vsel %vm1240_vm0, %v3640_v47, %v3636_v1  ;;  %v3668_v12 = vsel %vm1240_vm0, %v3667_v10, %v3663_v24  ;;  %v3778_v16 = vsel %vm1880_vm8, %v3732_v0, 0.0  ;;  %v9839_v14 = vld [vmem:[#allocation46_spill] sm:$0xff]  ;;  %v9840_v0 = vld [vmem:[#allocation45_spill] sm:$0xff] }
 0x448   :  { %v3769_v20 = vsel %vm1880_vm8, %v3711_v41, 0.0  ;;  %v3754_v62 = vsel %vm1809_vm1, %v3650_v42, %v3641_v40  ;;  %v3677_v35 = vsel %vm1240_vm0, %v3676_v28, %v3672_v29  ;;  %v3681_v48 = vrot.slane %v9834_v56, %v9761_v4 }
 0x449   :  { %v3690_v9 = vrot.slane %v9835_v7, %v9761_v4  ;;  %v3685_v5 = vrot.slane %v9836_v22, %v9763_v50  ;;  %v3694_v8 = vrot.slane %v9837_v61, %v9763_v50  ;;  %v3755_v32 = vsel %vm1811_vm2, %v3659_v46, %v3754_v62 }
 0x44a   :  { %v8477_v19 = vpop.permute.xlu0 %3945  ;;  %v3501_v26 = vrot.slane %v8374_v45, %v9761_v4  ;;  %v3703_v18 = vrot.slane %v9838_v55, %v9763_v50  ;;  %v3756_v21 = vsel %vm1813_vm3, %v3668_v12, %v3755_v32  ;;  %v3699_v27 = vrot.slane %v9839_v14, %v9761_v4 }
 0x44b   :  { %v8467_v23 = vpop.permute.xlu1 %3016  ;;  %v3510_v1 = vrot.slane %v8393_v37, %v9761_v4  ;;  %v3757_v24 = vsel %vm1815_vm4, %v3677_v35, %v3756_v21  ;;  %v3505_v53 = vrot.slane %v8176_v30, %v9763_v50  ;;  %v3492_v45 = vrot.slane %v8350_v15, %v9761_v4  ;;  %v9841_v35 = vld [vmem:[#allocation27_spill] sm:$0xff] }
 0x44c   :  { %v3519_v38 = vrot.slane %v8421_v3, %v9761_v4  ;;  %v3686_v17 = vsel %vm1240_vm0, %v3685_v5, %v3681_v48  ;;  %v3695_v58 = vsel %vm1240_vm0, %v3694_v8, %v3690_v9  ;;  %v3514_v29 = vrot.slane %v8187_v33, %v9763_v50  ;;  %v9842_v8 = vld [vmem:[#allocation28_spill] sm:$0xff] }
 0x44d   :  { %v3528_v37 = vrot.slane %v8450_v13, %v9761_v4  ;;  %v3496_v30 = vrot.slane %v9840_v0, %v9763_v50  ;;  %v3523_v15 = vrot.slane %v8217_v31, %v9763_v50  ;;  %v3506_v41 = vsel %vm1240_vm0, %v3505_v53, %v3501_v26 }
 0x44e   :  { %v8513_v60 = vpop.permute.xlu0 %3951  ;;  %v3537_v3 = vrot.slane %v8467_v23, %v9761_v4  ;;  %v3532_v63 = vrot.slane %v8249_v51, %v9763_v50  ;;  %v3515_v33 = vsel %vm1240_vm0, %v3514_v29, %v3510_v1  ;;  %v3704_v57 = vsel %vm1240_vm0, %v3703_v18, %v3699_v27  ;;  %v9843_v18 = vld [vmem:[#allocation29_spill] sm:$0xff]  ;;  %v9844_v1 = vld [vmem:[#allocation30_spill] sm:$0xff] }
 0x44f   :  { %v3023_v25 = vpop.permute.xlu1 %3022  ;;  %v3541_v31 = vrot.slane %v8271_v54, %v9763_v50  ;;  %v3497_v10 = vsel %vm1240_vm0, %v3496_v30, %v3492_v45  ;;  %v3524_v42 = vsel %vm1240_vm0, %v3523_v15, %v3519_v38  ;;  %v3550_v51 = vrot.slane %v8300_v34, %v9763_v50  ;;  %v9845_v45 = vld [vmem:[#allocation31_spill] sm:$0xff]  ;;  %v9849_v15 = vld [vmem:[#allocation98_spill] sm:$0xff] }
 0x450   :  { %v3546_v47 = vrot.slane %v3023_v25, %v9761_v4  ;;  %v3740_v28 = vsel %vm1809_vm1, %v3506_v41, %v3497_v10  ;;  %v3533_v46 = vsel %vm1240_vm0, %v3532_v63, %v3528_v37  ;;  %v3758_v25 = vsel %vm1817_vm5, %v3686_v17, %v3757_v24  ;;  %v9846_v17 = vld [vmem:[#allocation97_spill] sm:$0xff]  ;;  %v9848_v30 = vld [vmem:[#allocation99_spill] sm:$0xff] }
 0x451   :  { %v3559_v54 = vrot.slane %v8328_v6, %v9763_v50  ;;  %v3542_v40 = vsel %vm1240_vm0, %v3541_v31, %v3537_v3  ;;  %v3759_v12 = vsel %vm1819_vm6, %v3695_v58, %v3758_v25  ;;  %v4243_v56 = vunpack.c.h.b16 %v9841_v35  ;;  %v9847_v58 = vld [vmem:[#allocation81_spill] sm:$0xff]  ;;  %v9851_v31 = vld [vmem:[#allocation114_spill] sm:$0xff] }
 0x452   :  { %v8554_v11 = vpop.permute.xlu0 %3957  ;;  %v3551_v34 = vsel %vm1240_vm0, %v3550_v51, %v3546_v47  ;;  %v4245_v32 = vunpack.c.h.b16 %v9842_v8  ;;  %v4247_v21 = vunpack.c.h.b16 %v9843_v18  ;;  %v4251_v38 = vunpack.c.h.b16 %v9845_v45 }
 0x453   :  { %v3029_v44 = vpop.permute.xlu1 %3028  ;;  %v8599_v29 = vpack.c.bf16 %v9847_v58, %v9846_v17  ;;  %v8606_v41 = vpack.c.bf16 %v9849_v15, %v9848_v30  ;;  %v4240_v63 = vunpack.c.l.b16 %v9833_v36  ;;  %v4026_v36 = vrot.slane %v8352_v59, %v9763_v50  ;;  %v9859_v59 = vld [vmem:[#allocation102_spill] sm:$0xff] }
 0x454   :  { %v3555_v23 = vrot.slane %v3029_v44, %v9761_v4  ;;  %v4249_v44 = vunpack.c.h.b16 %v9844_v1  ;;  %v4244_v17 = vunpack.c.l.b16 %v9842_v8  ;;  %v4246_v15 = vunpack.c.l.b16 %v9843_v18 }
 0x455   :  { %v4568_v0 = vunpack.c.h.b16 %v8599_v29  ;;  %v4570_v47 = vunpack.c.h.b16 %v8606_v41 }
 0x456   :  { %v3560_v6 = vsel %vm1240_vm0, %v3559_v54, %v3555_v23  ;;  %v8575_v9 = vpop.permute.xlu0 %3963  ;;  %v9853_v54 = vld [vmem:[#allocation113_spill] sm:$0xff] }
 0x457   :  { %v8546_v13 = vpop.permute.xlu1 %3924 }
 0x458   :  { %4310 = vperm.xlu0 %5394, %v4239_v49   ;;  %v3741_v49 = vsel %vm1811_vm2, %v3515_v33, %v3740_v28  ;;  %v4242_v28 = vunpack.c.l.b16 %v9841_v35  ;;  %v9858_v35 = vld [vmem:[#allocation100_spill] sm:$0xff] }
 0x459   :  { %3779 = vadd.xlane.f32.xlu1 %v3778_v16  ;;  %v3742_v16 = vsel %vm1813_vm3, %v3524_v42, %v3741_v49  ;;  %v9852_v42 = vld [vmem:[#allocation145_spill] sm:$0xff]  ;;  %v9854_v49 = vld [vmem:[#allocation116_spill] sm:$0xff] }
 0x45a   :  { %v3743_v48 = vsel %vm1815_vm4, %v3533_v46, %v3742_v16  ;;  %v8587_v14 = vpop.permute.xlu0 %3969  ;;  %v4013_v23 = vrot.slane %v9852_v42, %v9761_v4  ;;  %v4250_v42 = vunpack.c.l.b16 %v9845_v45 }
 0x45b   :  { %v8568_v62 = vpop.permute.xlu1 %3930  ;;  %v3744_v7 = vsel %vm1817_vm5, %v3542_v40, %v3743_v48  ;;  %v8630_v40 = vpack.c.bf16 %v9854_v49, %v9853_v54  ;;  %v4035_v49 = vrot.slane %v8376_v52, %v9763_v50  ;;  %v4080_v52 = vrot.slane %v8554_v11, %v9763_v50 }
 0x45c   :  { %4316 = vperm.xlu0 %5394, %v4241_v43   ;;  %v3760_v43 = vsel %vm1821_vm7, %v3704_v57, %v3759_v12  ;;  %v3745_v5 = vsel %vm1819_vm6, %v3551_v34, %v3744_v7  ;;  %v9850_v57 = vld [vmem:[#allocation111_spill] sm:$0xff]  ;;  %v4040_v45 = vrot.slane %v8568_v62, %v9761_v4  ;;  %v4089_v62 = vrot.slane %v8575_v9, %v9763_v50 }
 0x45d   :  { %3770 = vadd.xlane.f32.xlu1 %v3769_v20  ;;  %v3790_v22 = vsel %vm1880_vm8, %v3760_v43, 0.0  ;;  %v3746_v20 = vsel %vm1821_vm7, %v3560_v6, %v3745_v5  ;;  %v8616_v10 = vpack.c.bf16 %v9851_v31, %v9850_v57  ;;  %v9855_v12 = vld [vmem:[#allocation139_spill] sm:$0xff]  ;;  %v4586_v30 = vunpack.c.h.b16 %v8630_v40 }
 0x45e   :  { %v3784_v26 = vsel %vm1880_vm8, %v3746_v20, 0.0  ;;  %v8592_v24 = vpop.permute.xlu0 %3975  ;;  %v4017_v16 = vrot.slane %v9855_v12, %v9763_v50  ;;  %v9856_v34 = vld [vmem:[#allocation143_spill] sm:$0xff] }
 0x45f   :  { %v8579_v61 = vpop.permute.xlu1 %3936  ;;  %v4584_v25 = vunpack.c.h.b16 %v8616_v10  ;;  %v4008_v43 = vrot.slane %v9856_v34, %v9763_v50  ;;  %v9860_v6 = vld [vmem:[#allocation103_spill] sm:$0xff]  ;;  %v4062_v34 = vrot.slane %v8477_v19, %v9763_v50  ;;  %v4098_v19 = vrot.slane %v8587_v14, %v9763_v50 }
 0x460   :  { %4322 = vperm.xlu0 %5394, %v4243_v56   ;;  %v9857_v56 = vld [vmem:[#allocation101_spill] sm:$0xff]  ;;  %v8642_v7 = vpack.c.bf16 %v9860_v6, %v9859_v59  ;;  %v9862_v20 = vld [vmem:[#allocation115_spill] sm:$0xff] }
 0x461   :  { %3791 = vadd.xlane.f32.xlu1 %v3790_v22  ;;  %v8638_v48 = vpack.c.bf16 %v9858_v35, %v9857_v56  ;;  %v9861_v22 = vld [vmem:[#allocation147_spill] sm:$0xff] }
 0x462   :  { %v8608_v3 = vpop.permute.xlu0 %3981  ;;  %v4022_v5 = vrot.slane %v9861_v22, %v9761_v4 }
 0x463   :  { %v8584_v55 = vpop.permute.xlu1 %3942  ;;  %v4572_v31 = vunpack.c.h.b16 %v8638_v48  ;;  %v4116_v14 = vrot.slane %v8608_v3, %v9763_v50 }
 0x464   :  { %4328 = vperm.xlu0 %5394, %v4245_v32   ;;  %v9863_v32 = vld [vmem:[#allocation117_spill] sm:$0xff]  ;;  %v4027_v58 = vsel %vm1240_vm0, %v4026_v36, %v4022_v5  ;;  %v4058_v6 = vrot.slane %v8584_v55, %v9761_v4  ;;  %v4071_v55 = vrot.slane %v8513_v60, %v9763_v50 }
 0x465   :  { %3785 = vadd.xlane.f32.xlu1 %v3784_v26  ;;  %v8648_v26 = vpack.c.bf16 %v9863_v32, %v9862_v20  ;;  %v9865_v36 = vld [vmem:[#allocation141_spill] sm:$0xff] }
 0x466   :  { %v8620_v51 = vpop.permute.xlu0 %3987 }
 0x467   :  { %v8589_v27 = vpop.permute.xlu1 %3948  ;;  %v4588_v18 = vunpack.c.h.b16 %v8648_v26 }
 0x468   :  { %4334 = vperm.xlu0 %5394, %v4247_v21   ;;  %v9864_v21 = vld [vmem:[#allocation137_spill] sm:$0xff] }
 0x46a   :  { %v3994_v57 = vpop.permute.xlu0 %3993 }
 0x46b   :  { %v8594_v53 = vpop.permute.xlu1 %3954  ;;  %v4134_v3 = vrot.slane %v3994_v57, %v9763_v50 }
 0x46c   :  { %4340 = vperm.xlu0 %5394, %v4249_v44   ;;  %v4004_v44 = vrot.slane %v9864_v21, %v9761_v4 }
 0x46f   :  { %v8601_v37 = vpop.permute.xlu1 %3960 }
 0x470   :  { %4346 = vperm.xlu0 %5394, %v4251_v38   ;;  %v4018_v38 = vsel %vm1240_vm0, %v4017_v16, %v4013_v23  ;;  %v4574_v23 = vunpack.c.h.b16 %v8642_v7  ;;  %v4085_v12 = vrot.slane %v8601_v37, %v9761_v4  ;;  %v4053_v16 = vrot.slane %v8443_v39, %v9763_v50 }
 0x471   :  { %v4076_v37 = vrot.slane %v8594_v53, %v9761_v4  ;;  %v4049_v53 = vrot.slane %v8579_v61, %v9761_v4  ;;  %v4067_v61 = vrot.slane %v8589_v27, %v9761_v4 }
 0x472   :  { %v4090_v35 = vsel %vm1240_vm0, %v4089_v62, %v4085_v12  ;;  %v9869_v62 = vld [vmem:[#allocation15_spill] sm:$0xff] }
 0x473   :  { %v8611_v33 = vpop.permute.xlu1 %3966  ;;  %v4081_v20 = vsel %vm1240_vm0, %v4080_v52, %v4076_v37  ;;  %v4054_v27 = vsel %vm1240_vm0, %v4053_v16, %v4049_v53  ;;  %v9867_v16 = vld [vmem:[#allocation104_spill] sm:$0xff]  ;;  %v4569_v52 = vunpack.c.l.b16 %v8606_v41  ;;  %v9870_v37 = vld [vmem:[#allocation142_spill] sm:$0xff] }
 0x474   :  { %4603 = vperm.xlu0 %5394, %v4568_v0   ;;  %v9874_v53 = vld [vmem:[#allocation108_spill] sm:$0xff] }
 0x476   :  { %4313 = vperm.xlu1 %5393, %v4240_v63   ;;  %v4248_v63 = vunpack.c.l.b16 %v9844_v1  ;;  %v9866_v1 = vld [vmem:[#allocation133_spill] sm:$0xff] }
 0x477   :  { %v8625_v46 = vpop.permute.xlu1 %3972 }
 0x478   :  { %4609 = vperm.xlu0 %5394, %v4570_v47   ;;  %v4009_v47 = vsel %vm1240_vm0, %v4008_v43, %v4004_v44  ;;  %v4094_v43 = vrot.slane %v8611_v33, %v9761_v4  ;;  %v4107_v33 = vrot.slane %v8592_v24, %v9763_v50  ;;  %v4125_v24 = vrot.slane %v8620_v51, %v9763_v50 }
 0x479   :  { %v4145_v8 = vsel %vm1809_vm1, %v4018_v38, %v4009_v47  ;;  %v4152_v51 = vsel %vm1809_vm1, %v4090_v35, %v4081_v20  ;;  %v4072_v47 = vsel %vm1240_vm0, %v4071_v55, %v4067_v61  ;;  %v9877_v61 = vld [vmem:[#allocation107_spill] sm:$0xff]  ;;  %v9878_v20 = vld [vmem:[#allocation110_spill] sm:$0xff] }
 0x47a   :  { %4319 = vperm.xlu1 %5393, %v4242_v28   ;;  %v4031_v28 = vrot.slane %v8546_v13, %v9761_v4  ;;  %v4146_v54 = vsel %vm1811_vm2, %v4027_v58, %v4145_v8  ;;  %v4044_v13 = vrot.slane %v8398_v2, %v9763_v50  ;;  %v4103_v2 = vrot.slane %v8625_v46, %v9761_v4  ;;  %v4000_v46 = vpop.permute.xlu0 %3999 }
 0x47b   :  { %v3979_v0 = vpop.permute.xlu1 %3978  ;;  %v4099_v22 = vsel %vm1240_vm0, %v4098_v19, %v4094_v43  ;;  %v4143_v57 = vrot.slane %v4000_v46, %v9763_v50  ;;  %v9872_v19 = vmov 0.0   ;;  %v4585_v46 = vunpack.c.l.b16 %v8630_v40  ;;  %v9879_v40 = vld [vmem:[#allocation146_spill] sm:$0xff] }
 0x47c   :  { %4651 = vperm.xlu0 %5394, %v4584_v25   ;;  %v8668_v25 = vpack.c.bf16 %v9866_v1, %v9865_v36  ;;  %v4036_v39 = vsel %vm1240_vm0, %v4035_v49, %v4031_v28  ;;  %v4112_v11 = vrot.slane %v3979_v0, %v9761_v4  ;;  %v4045_v9 = vsel %vm1240_vm0, %v4044_v13, %v4040_v45 }
 0x47d   :  { %v4108_v32 = vsel %vm1240_vm0, %v4107_v33, %v4103_v2  ;;  %v4147_v38 = vsel %vm1813_vm3, %v4036_v39, %v4146_v54  ;;  %v4567_v45 = vunpack.c.l.b16 %v8599_v29  ;;  %v9871_v2 = vld [vmem:[#allocation135_spill] sm:$0xff]  ;;  %v4583_v33 = vunpack.c.l.b16 %v8616_v10 }
 0x47e   :  { %4325 = vperm.xlu1 %5393, %v4244_v17   ;;  %v4117_v44 = vsel %vm1240_vm0, %v4116_v14, %v4112_v11  ;;  %v4153_v17 = vsel %vm1811_vm2, %v4099_v22, %v4152_v51  ;;  %v4148_v0 = vsel %vm1815_vm4, %v4045_v9, %v4147_v38  ;;  %v3837_v39 = vpack.c.bf16 %v9871_v2, %v9870_v37  ;;  %v9873_v9 = vld [vmem:[#allocation106_spill] sm:$0xff]  ;;  %v9876_v14 = vld [vmem:[#allocation136_spill] sm:$0xff]  ;;  %v9891_v37 = vld [vmem:[#allocation83_spill] sm:$0xff] }
 0x47f   :  { %v3985_v56 = vpop.permute.xlu1 %3984  ;;  %v4154_v60 = vsel %vm1813_vm3, %v4108_v32, %v4153_v17  ;;  %v3830_v35 = vpack.c.bf16 %v9874_v53, %v9873_v9  ;;  %v4571_v10 = vunpack.c.l.b16 %v8638_v48  ;;  %v3831_v32 = vpack.c.bf16 %v9878_v20, %v9877_v61  ;;  %v9881_v48 = vld [vmem:[#allocation109_spill] sm:$0xff]  ;;  %v9882_v17 = vld [vmem:[#allocation112_spill] sm:$0xff] }
 0x480   :  { %4657 = vperm.xlu0 %5394, %v4586_v30   ;;  %v4121_v59 = vrot.slane %v3985_v56, %v9761_v4  ;;  %v4063_v30 = vsel %vm1240_vm0, %v4062_v34, %v4058_v6  ;;  %v4155_v8 = vsel %vm1815_vm4, %v4117_v44, %v4154_v60  ;;  %v9868_v34 = vld [vmem:[#allocation105_spill] sm:$0xff]  ;;  %v4592_v11 = vunpack.c.h.b16 %v3837_v39  ;;  %v9875_v6 = vld [vmem:[#allocation144_spill] sm:$0xff] }
 0x481   :  { %v3829_v43 = vpack.c.bf16 %v9868_v34, %v9867_v16  ;;  %v4580_v55 = vunpack.c.h.b16 %v3831_v32  ;;  %v4573_v38 = vunpack.c.l.b16 %v8642_v7  ;;  %v4577_v16 = vunpack.c.l.b16 %v3830_v35  ;;  %v9892_v2 = vld [vmem:[#allocation68_spill] sm:$0xff] }
 0x482   :  { %4331 = vperm.xlu1 %5393, %v4246_v15   ;;  %v4126_v58 = vsel %vm1240_vm0, %v4125_v24, %v4121_v59  ;;  %v4578_v59 = vunpack.c.h.b16 %v3830_v35  ;;  %v3838_v24 = vpack.c.bf16 %v9876_v14, %v9875_v6  ;;  %v4579_v9 = vunpack.c.l.b16 %v3831_v32  ;;  %v9893_v35 = vld [vmem:[#allocation57_spill] sm:$0xff]  ;;  %v9896_v61 = vld [vmem:[#allocation72_spill] sm:$0xff] }
 0x483   :  { %v3991_v5 = vpop.permute.xlu1 %3990  ;;  %v4156_v36 = vsel %vm1817_vm5, %v4126_v58, %v4155_v8  ;;  %v4576_v29 = vunpack.c.h.b16 %v3829_v43  ;;  %v3832_v58 = vpack.c.bf16 %v9882_v17, %v9881_v48  ;;  %v9885_v8 = vld [vmem:[#allocation60_spill] sm:$0xff] }
 0x484   :  { %4615 = vperm.xlu0 %5394, %v4572_v31   ;;  %v4130_v21 = vrot.slane %v3991_v5, %v9761_v4  ;;  %v8731_v31 = vpop.permute.xlu0 %4256  ;;  %v4594_v5 = vunpack.c.h.b16 %v3838_v24 }
 0x485   :  { %v4582_v60 = vunpack.c.h.b16 %v3832_v58  ;;  %v4581_v32 = vunpack.c.l.b16 %v3832_v58 }
 0x486   :  { %4337 = vperm.xlu1 %5393, %v4248_v63   ;;  %v4135_v15 = vsel %vm1240_vm0, %v4134_v3, %v4130_v21  ;;  %v4587_v21 = vunpack.c.l.b16 %v8648_v26  ;;  %v9880_v3 = vld [vmem:[#allocation138_spill] sm:$0xff]  ;;  %v4589_v26 = vunpack.c.l.b16 %v8668_v25 }
 0x487   :  { %v3997_v63 = vpop.permute.xlu1 %3996  ;;  %v4157_v54 = vsel %vm1819_vm6, %v4135_v15, %v4156_v36  ;;  %v3839_v51 = vpack.c.bf16 %v9880_v3, %v9879_v40  ;;  %v9883_v15 = vld [vmem:[#allocation148_spill] sm:$0xff]  ;;  %v9897_v40 = vld [vmem:[#allocation61_spill] sm:$0xff]  ;;  %v9898_v3 = vld [vmem:[#allocation38_spill] sm:$0xff] }
 0x488   :  { %4663 = vperm.xlu0 %5394, %v4588_v18   ;;  %v4139_v28 = vrot.slane %v3997_v63, %v9761_v4  ;;  %v4149_v18 = vsel %vm1817_vm5, %v4054_v27, %v4148_v0  ;;  %v9884_v63 = vld [vmem:[#allocation140_spill] sm:$0xff] }
 0x489   :  { %v4150_v1 = vsel %vm1819_vm6, %v4063_v30, %v4149_v18  ;;  %v4596_v27 = vunpack.c.h.b16 %v3839_v51 }
 0x48a   :  { %4343 = vperm.xlu1 %5393, %v4250_v42   ;;  %v4144_v49 = vsel %vm1240_vm0, %v4143_v57, %v4139_v28  ;;  %v4151_v12 = vsel %vm1821_vm7, %v4072_v47, %v4150_v1  ;;  %v4590_v42 = vunpack.c.h.b16 %v8668_v25  ;;  %v3840_v47 = vpack.c.bf16 %v9884_v63, %v9883_v15  ;;  %v9886_v28 = vld [vmem:[#allocation32_spill] sm:$0xff]  ;;  %v9887_v25 = vld [vmem:[#allocation66_spill] sm:$0xff] }
 0x48b   :  { %v4158_v13 = vsel %vm1821_vm7, %v4144_v49, %v4157_v54  ;;  %v8781_v30 = vpop.permute.xlu1 %4253  ;;  %v4575_v57 = vunpack.c.l.b16 %v3829_v43  ;;  %v3841_v18 = vpack.c.bf16 %v9886_v28, %v9885_v8  ;;  %v4591_v54 = vunpack.c.l.b16 %v3837_v39  ;;  %v9889_v43 = vld [vmem:[#allocation94_spill] sm:$0xff] }
 0x48c   :  { %4621 = vperm.xlu0 %5394, %v4574_v23   ;;  %v4159_v56 = vpack.c.b16 %v4158_v13, %v4151_v12  ;;  %v8748_v23 = vpop.permute.xlu0 %4262  ;;  %v4598_v7 = vunpack.c.h.b16 %v3840_v47  ;;  %v3850_v39 = vpack.c.bf16 %v9892_v2, %v9891_v37  ;;  %v9902_v8 = vld [vmem:[#allocation42_spill] sm:$0xff] }
 0x48d   :  { %v4915_v49 = vunpack.c.h.b16 %v3841_v18  ;;  %v4914_v58 = vunpack.c.l.b16 %v3841_v18 }
 0x48e   :  { %4600 = vperm.xlu1 %5393, %v4567_v45   ;;  %5360 = vmatmul.mubr.msk.bf16.vlgmr.msra.gmra.mxu1 %vm1880_vm8, %v4159_v56  ;;  %v9888_v45 = vld [vmem:[#allocation34_spill] sm:$0xff]  ;;  %v9890_v56 = vld [vmem:[#allocation53_spill] sm:$0xff]  ;;  %v4933_v53 = vunpack.c.h.b16 %v3850_v39 }
 0x48f   :  { %5364 = vmatpush3.bf16.msra.mxu1 %v9869_v62  ;;  %5365 = vmatprep.mubr.msk.bf16.mxu1 %vm5903_vm9, %v9872_v19  ;;  %v8790_v1 = vpop.permute.xlu1 %4259  ;;  %v3842_v12 = vpack.c.bf16 %v9888_v45, %v9887_v25  ;;  %v4593_v62 = vunpack.c.l.b16 %v3838_v24  ;;  %v4595_v24 = vunpack.c.l.b16 %v3839_v51  ;;  %v4597_v51 = vunpack.c.l.b16 %v3840_v47  ;;  %v9903_v47 = vld [vmem:[#allocation89_spill] sm:$0xff] }
 0x490   :  { %4669 = vperm.xlu0 %5394, %v4590_v42   ;;  %5369 = vmatprep.subr.bf16.mxu1 %v9872_v19  ;;  %v8761_v41 = vpop.permute.xlu0 %4268  ;;  %v9904_v45 = vld [vmem:[#allocation65_spill] sm:$0xff] }
 0x491   :  { %v4917_v34 = vunpack.c.h.b16 %v3842_v12 }
 0x492   :  { %4606 = vperm.xlu1 %5393, %v4569_v52   ;;  %v3849_v52 = vpack.c.bf16 %v9890_v56, %v9889_v43 }
 0x494   :  { %4627 = vperm.xlu0 %5394, %v4576_v29   ;;  %v8766_v22 = vpop.permute.xlu0 %4274  ;;  %v8796_v42 = vpop.permute.xlu1 %4265  ;;  %v4931_v29 = vunpack.c.h.b16 %v3849_v52  ;;  %v4930_v18 = vunpack.c.l.b16 %v3849_v52 }
 0x496   :  { %4648 = vperm.xlu1 %5393, %v4583_v33  }
 0x498   :  { %4675 = vperm.xlu0 %5394, %v4592_v11   ;;  %v8774_v44 = vpop.permute.xlu0 %4280  ;;  %v8804_v11 = vpop.permute.xlu1 %4271 }
 0x49a   :  { %4654 = vperm.xlu1 %5393, %v4585_v46   ;;  %v9894_v46 = vld [vmem:[#allocation37_spill] sm:$0xff] }
 0x49c   :  { %4633 = vperm.xlu0 %5394, %v4578_v59   ;;  %v8779_v0 = vpop.permute.xlu0 %4286  ;;  %v3843_v59 = vpack.c.bf16 %v9894_v46, %v9893_v35  ;;  %v8810_v14 = vpop.permute.xlu1 %4277  ;;  %v9907_v35 = vld [vmem:[#allocation91_spill] sm:$0xff]  ;;  %v9908_v46 = vld [vmem:[#allocation69_spill] sm:$0xff] }
 0x49e   :  { %4612 = vperm.xlu1 %5393, %v4571_v10   ;;  %v4919_v10 = vunpack.c.h.b16 %v3843_v59  ;;  %v4918_v52 = vunpack.c.l.b16 %v3843_v59 }
 0x4a0   :  { %4681 = vperm.xlu0 %5394, %v4594_v5   ;;  %v8788_v36 = vpop.permute.xlu0 %4292  ;;  %v9895_v5 = vld [vmem:[#allocation85_spill] sm:$0xff] }
 0x4a1   :  { %v3851_v20 = vpack.c.bf16 %v9896_v61, %v9895_v5  ;;  %v9909_v61 = vld [vmem:[#allocation86_spill] sm:$0xff] }
 0x4a2   :  { %4660 = vperm.xlu1 %5393, %v4587_v21  }
 0x4a4   :  { %4639 = vperm.xlu0 %5394, %v4580_v55   ;;  %v8794_v13 = vpop.permute.xlu0 %4298  ;;  %v4935_v55 = vunpack.c.h.b16 %v3851_v20 }
 0x4a6   :  { %4618 = vperm.xlu1 %5393, %v4573_v38   ;;  %v3844_v38 = vpack.c.bf16 %v9898_v3, %v9897_v40 }
 0x4a8   :  { %4687 = vperm.xlu0 %5394, %v4596_v27   ;;  %v8802_v33 = vpop.permute.xlu0 %4304  ;;  %v8818_v27 = vpop.permute.xlu1 %4283  ;;  %v4921_v17 = vunpack.c.h.b16 %v3844_v38 }
 0x4aa   :  { %4666 = vperm.xlu1 %5393, %v4589_v26   ;;  %v9899_v26 = vld [vmem:[#allocation87_spill] sm:$0xff] }
 0x4ac   :  { %4645 = vperm.xlu0 %5394, %v4582_v60   ;;  %v9900_v60 = vld [vmem:[#allocation76_spill] sm:$0xff]  ;;  %v8824_v63 = vpop.permute.xlu1 %4289 }
 0x4ad   :  { %v3852_v15 = vpack.c.bf16 %v9900_v60, %v9899_v26  ;;  %v9912_v26 = vld [vmem:[#allocation73_spill] sm:$0xff] }
 0x4ae   :  { %4624 = vperm.xlu1 %5393, %v4575_v57  }
 0x4af   :  { %v4937_v57 = vunpack.c.h.b16 %v3852_v15 }
 0x4b0   :  { %4693 = vperm.xlu0 %5394, %v4598_v7   ;;  %v9901_v7 = vld [vmem:[#allocation78_spill] sm:$0xff] }
 0x4b1   :  { %v3845_v28 = vpack.c.bf16 %v9902_v8, %v9901_v7  ;;  %v9913_v8 = vld [vmem:[#allocation90_spill] sm:$0xff] }
 0x4b2   :  { %4672 = vperm.xlu1 %5393, %v4591_v54  }
 0x4b3   :  { %v4923_v25 = vunpack.c.h.b16 %v3845_v28 }
 0x4b4   :  { %4950 = vperm.xlu0 %5394, %v4915_v49   ;;  %v4916_v49 = vunpack.c.l.b16 %v3842_v12 }
 0x4b6   :  { %4630 = vperm.xlu1 %5393, %v4577_v16   ;;  %v3853_v16 = vpack.c.bf16 %v9904_v45, %v9903_v47  ;;  %v4936_v45 = vunpack.c.l.b16 %v3852_v15 }
 0x4b8   :  { %4956 = vperm.xlu0 %5394, %v4917_v34   ;;  %v8832_v34 = vpop.permute.xlu1 %4295  ;;  %v4939_v56 = vunpack.c.h.b16 %v3853_v16  ;;  %v4938_v15 = vunpack.c.l.b16 %v3853_v16 }
 0x4ba   :  { %4678 = vperm.xlu1 %5393, %v4593_v62   ;;  %v9905_v62 = vld [vmem:[#allocation82_spill] sm:$0xff] }
 0x4bc   :  { %4998 = vperm.xlu0 %5394, %v4931_v29   ;;  %v9906_v29 = vld [vmem:[#allocation48_spill] sm:$0xff]  ;;  %v8840_v12 = vpop.permute.xlu1 %4301 }
 0x4bd   :  { %v3846_v37 = vpack.c.bf16 %v9906_v29, %v9905_v62  ;;  %v9916_v62 = vld [vmem:[#allocation77_spill] sm:$0xff] }
 0x4be   :  { %4636 = vperm.xlu1 %5393, %v4579_v9   ;;  %v4932_v9 = vunpack.c.l.b16 %v3850_v39  ;;  %v4934_v39 = vunpack.c.l.b16 %v3851_v20 }
 0x4bf   :  { %v8808_v6 = vpop.xlane.xlu0 %3776 }
 0x4c0   :  { %5004 = vperm.xlu0 %5394, %v4933_v53   ;;  %v4925_v53 = vunpack.c.h.b16 %v3846_v37  ;;  %v8850_v40 = vpop.permute.xlu1 %4307 }
 0x4c2   :  { %4684 = vperm.xlu1 %5393, %v4595_v24   ;;  %v3854_v24 = vpack.c.bf16 %v9908_v46, %v9907_v35 }
 0x4c3   :  { %v8814_v21 = vpop.xlane.xlu0 %3773 }
 0x4c4   :  { %4962 = vperm.xlu0 %5394, %v4919_v10   ;;  %v4941_v5 = vunpack.c.h.b16 %v3854_v24  ;;  %5791 = vrcp.f32 %v8814_v21 }
 0x4c6   :  { %4642 = vperm.xlu1 %5393, %v4581_v32   ;;  %v9910_v32 = vld [vmem:[#allocation54_spill] sm:$0xff] }
 0x4c7   :  { %v8820_v48 = vpop.xlane.xlu0 %3788 }
 0x4c8   :  { %5010 = vperm.xlu0 %5394, %v4935_v55   ;;  %v8848_v55 = vpack.c.bf16 %v9910_v32, %v9909_v61  ;;  %v4924_v32 = vunpack.c.l.b16 %v3846_v37 }
 0x4ca   :  { %4690 = vperm.xlu1 %5393, %v4597_v51   ;;  %v4927_v51 = vunpack.c.h.b16 %v8848_v55  ;;  %v4926_v37 = vunpack.c.l.b16 %v8848_v55  ;;  %v4391_v55 = vrot.slane %v8774_v44, %v9763_v50  ;;  %v4418_v44 = vrot.slane %v8794_v13, %v9763_v50 }
 0x4cb   :  { %v8828_v54 = vpop.xlane.xlu0 %3782 }
 0x4cc   :  { %4968 = vperm.xlu0 %5394, %v4921_v17   ;;  %v9911_v17 = vld [vmem:[#allocation93_spill] sm:$0xff] }
 0x4cd   :  { %v8857_v60 = vpack.c.bf16 %v9912_v26, %v9911_v17  ;;  %v4940_v17 = vunpack.c.l.b16 %v3854_v24  ;;  %v4364_v26 = vrot.slane %v8748_v23, %v9763_v50  ;;  %v4373_v24 = vrot.slane %v8761_v41, %v9763_v50 }
 0x4ce   :  { %4947 = vperm.xlu1 %5393, %v4914_v58   ;;  %v4400_v41 = vrot.slane %v8779_v0, %v9763_v50 }
 0x4cf   :  { %v4943_v7 = vunpack.c.h.b16 %v8857_v60 }
 0x4d0   :  { %5016 = vperm.xlu0 %5394, %v4937_v57   ;;  %v4920_v57 = vunpack.c.l.b16 %v3844_v38 }
 0x4d2   :  { %4953 = vperm.xlu1 %5393, %v4916_v49   ;;  %v9914_v49 = vld [vmem:[#allocation51_spill] sm:$0xff] }
 0x4d3   :  { %v8834_v43 = vpop.permute.xlu0 %4310 }
 0x4d4   :  { %4974 = vperm.xlu0 %5394, %v4923_v25   ;;  %v8866_v25 = vpack.c.bf16 %v9914_v49, %v9913_v8  ;;  %v4942_v8 = vunpack.c.l.b16 %v8857_v60  ;;  %v4378_v60 = vrot.slane %v8804_v11, %v9761_v4  ;;  %v4427_v11 = vrot.slane %v8802_v33, %v9763_v50 }
 0x4d6   :  { %4995 = vperm.xlu1 %5393, %v4930_v18   ;;  %v4929_v18 = vunpack.c.h.b16 %v8866_v25  ;;  %v4928_v49 = vunpack.c.l.b16 %v8866_v25 }
 0x4d7   :  { %v8838_v2 = vpop.permute.xlu0 %4316 }
 0x4d8   :  { %5022 = vperm.xlu0 %5394, %v4939_v56   ;;  %v9915_v56 = vld [vmem:[#allocation95_spill] sm:$0xff] }
 0x4d9   :  { %v8875_v29 = vpack.c.bf16 %v9916_v62, %v9915_v56 }
 0x4da   :  { %5001 = vperm.xlu1 %5393, %v4932_v9  }
 0x4db   :  { %v8844_v10 = vpop.permute.xlu0 %4322  ;;  %v4945_v35 = vunpack.c.h.b16 %v8875_v29 }
 0x4dc   :  { %4980 = vperm.xlu0 %5394, %v4925_v53   ;;  %v4922_v53 = vunpack.c.l.b16 %v3845_v28  ;;  %v4360_v28 = vrot.slane %v8790_v1, %v9761_v4  ;;  %v4355_v1 = vrot.slane %v8731_v31, %v9763_v50  ;;  %v4387_v31 = vrot.slane %v8810_v14, %v9761_v4 }
 0x4de   :  { %4959 = vperm.xlu1 %5393, %v4918_v52   ;;  %v4365_v23 = vsel %vm1240_vm0, %v4364_v26, %v4360_v28  ;;  %v4392_v33 = vsel %vm1240_vm0, %v4391_v55, %v4387_v31  ;;  %v4414_v28 = vrot.slane %v8832_v34, %v9761_v4 }
 0x4df   :  { %v8852_v3 = vpop.permute.xlu0 %4328 }
 0x4e0   :  { %5028 = vperm.xlu0 %5394, %v4941_v5  }
 0x4e2   :  { %v8859_v58 = vpop.xlane.xlu1 %3779  ;;  %5007 = vperm.xlu1 %5393, %v4934_v39  }
 0x4e3   :  { %v8861_v59 = vpop.permute.xlu0 %4334 }
 0x4e4   :  { %4986 = vperm.xlu0 %5394, %v4927_v51  }
 0x4e6   :  { %v8868_v20 = vpop.xlane.xlu1 %3770  ;;  %4965 = vperm.xlu1 %5393, %v4920_v57   ;;  %v4351_v57 = vrot.slane %v8781_v30, %v9761_v4  ;;  %v4369_v30 = vrot.slane %v8796_v42, %v9761_v4  ;;  %v4409_v42 = vrot.slane %v8788_v36, %v9763_v50  ;;  %v4423_v36 = vrot.slane %v8840_v12, %v9761_v4 }
 0x4e7   :  { %v8870_v47 = vpop.permute.xlu0 %4340  ;;  %v4454_v12 = vrot.slane %v8844_v10, %v9763_v50  ;;  %v4472_v10 = vrot.slane %v8861_v59, %v9763_v50  ;;  %5793 = vrcp.f32 %v8868_v20 }
 0x4e8   :  { %5034 = vperm.xlu0 %5394, %v4943_v7   ;;  %v4356_v25 = vsel %vm1240_vm0, %v4355_v1, %v4351_v57  ;;  %v4374_v62 = vsel %vm1240_vm0, %v4373_v24, %v4369_v30  ;;  %v4428_v57 = vsel %vm1240_vm0, %v4427_v11, %v4423_v36  ;;  %5795 = vrcp.f32 %v8808_v6 }
 0x4e9   :  { %5797 = vrcp.f32 %v8859_v58 }
 0x4ea   :  { %v8877_v38 = vpop.xlane.xlu1 %3791  ;;  %5013 = vperm.xlu1 %5393, %v4936_v45   ;;  %v4382_v45 = vrot.slane %v8766_v22, %v9763_v50  ;;  %v4436_v22 = vrot.slane %v8834_v43, %v9763_v50  ;;  %v4432_v43 = vrot.slane %v8850_v40, %v9761_v4  ;;  %5799 = vrcp.f32 %v8828_v54 }
 0x4eb   :  { %v8879_v9 = vpop.permute.xlu0 %4346 }
 0x4ec   :  { %4992 = vperm.xlu0 %5394, %v4929_v18   ;;  %v4492_v18 = vsel %vm1809_vm1, %v4365_v23, %v4356_v25  ;;  %v4383_v13 = vsel %vm1240_vm0, %v4382_v45, %v4378_v60  ;;  %v4419_v25 = vsel %vm1240_vm0, %v4418_v44, %v4414_v28 }
 0x4ed   :  { %v4493_v34 = vsel %vm1811_vm2, %v4374_v62, %v4492_v18 }
 0x4ee   :  { %4971 = vperm.xlu1 %5393, %v4922_v53   ;;  %v8882_v46 = vpop.xlane.xlu1 %3785  ;;  %v4494_v1 = vsel %vm1813_vm3, %v4383_v13, %v4493_v34  ;;  %v9917_v13 = vld [vmem:[#allocation16_spill] sm:$0xff] }
 0x4ef   :  { %v8884_v52 = vpop.permute.xlu0 %4603  ;;  %v4495_v30 = vsel %vm1815_vm4, %v4392_v33, %v4494_v1  ;;  %5801 = vrcp.f32 %v8882_v46 }
 0x4f0   :  { %5040 = vperm.xlu0 %5394, %v4945_v35   ;;  %v4445_v35 = vrot.slane %v8838_v2, %v9763_v50  ;;  %v4463_v2 = vrot.slane %v8852_v3, %v9763_v50  ;;  %v4481_v3 = vrot.slane %v8870_v47, %v9763_v50  ;;  %5803 = vrcp.f32 %v8820_v48 }
 0x4f1   :  { %5805 = vrcp.f32 %v8877_v38 }
 0x4f2   :  { %5019 = vperm.xlu1 %5393, %v4938_v15   ;;  %v4314_v5 = vpop.permute.xlu1 %4313 }
 0x4f3   :  { %v8886_v61 = vpop.permute.xlu0 %4609  ;;  %v4441_v14 = vrot.slane %v4314_v5, %v9761_v4  ;;  %v4396_v5 = vrot.slane %v8818_v27, %v9761_v4 }
 0x4f5   :  { %v4401_v24 = vsel %vm1240_vm0, %v4400_v41, %v4396_v5  ;;  %v4490_v41 = vrot.slane %v8879_v9, %v9763_v50 }
 0x4f6   :  { %4977 = vperm.xlu1 %5393, %v4924_v32   ;;  %v4320_v39 = vpop.permute.xlu1 %4319  ;;  %v4437_v32 = vsel %vm1240_vm0, %v4436_v22, %v4432_v43  ;;  %v4496_v11 = vsel %vm1817_vm5, %v4401_v24, %v4495_v30 }
 0x4f7   :  { %v8888_v51 = vpop.permute.xlu0 %4651  ;;  %v4450_v53 = vrot.slane %v4320_v39, %v9761_v4  ;;  %v4405_v39 = vrot.slane %v8824_v63, %v9761_v4 }
 0x4f9   :  { %v4410_v45 = vsel %vm1240_vm0, %v4409_v42, %v4405_v39 }
 0x4fa   :  { %5025 = vperm.xlu1 %5393, %v4940_v17   ;;  %v4326_v16 = vpop.permute.xlu1 %4325  ;;  %v4446_v17 = vsel %vm1240_vm0, %v4445_v35, %v4441_v14  ;;  %v4944_v14 = vunpack.c.l.b16 %v8875_v29 }
 0x4fb   :  { %v8896_v7 = vpop.permute.xlu0 %4657  ;;  %v4459_v15 = vrot.slane %v4326_v16, %v9761_v4  ;;  %v4455_v16 = vsel %vm1240_vm0, %v4454_v12, %v4450_v53 }
 0x4fc   :  { %v4783_v21 = vrot.slane %v8896_v7, %v9763_v50 }
 0x4fe   :  { %4983 = vperm.xlu1 %5393, %v4926_v37   ;;  %v4332_v0 = vpop.permute.xlu1 %4331  ;;  %v4499_v37 = vsel %vm1809_vm1, %v4437_v32, %v4428_v57 }
 0x4ff   :  { %v8929_v56 = vpop.permute.xlu0 %4615  ;;  %v4468_v40 = vrot.slane %v4332_v0, %v9761_v4  ;;  %v4500_v23 = vsel %vm1811_vm2, %v4446_v17, %v4499_v37 }
 0x500   :  { %v4501_v55 = vsel %vm1813_vm3, %v4455_v16, %v4500_v23  ;;  %v4711_v23 = vrot.slane %v8886_v61, %v9763_v50  ;;  %v4720_v61 = vrot.slane %v8929_v56, %v9763_v50 }
 0x501   :  { %v4473_v59 = vsel %vm1240_vm0, %v4472_v10, %v4468_v40 }
 0x502   :  { %5031 = vperm.xlu1 %5393, %v4942_v8   ;;  %v4338_v27 = vpop.permute.xlu1 %4337  ;;  %v4464_v8 = vsel %vm1240_vm0, %v4463_v2, %v4459_v15 }
 0x503   :  { %v8955_v26 = vpop.permute.xlu0 %4663  ;;  %v4477_v63 = vrot.slane %v4338_v27, %v9761_v4  ;;  %v4502_v22 = vsel %vm1815_vm4, %v4464_v8, %v4501_v55  ;;  %v4702_v55 = vrot.slane %v8884_v52, %v9763_v50 }
 0x504   :  { %v4503_v42 = vsel %vm1817_vm5, %v4473_v59, %v4502_v22  ;;  %v4792_v52 = vrot.slane %v8955_v26, %v9763_v50 }
 0x505   :  { %v4482_v60 = vsel %vm1240_vm0, %v4481_v3, %v4477_v63 }
 0x506   :  { %4989 = vperm.xlu1 %5393, %v4928_v49   ;;  %v4344_v47 = vpop.permute.xlu1 %4343  ;;  %v4497_v49 = vsel %vm1819_vm6, %v4410_v45, %v4496_v11  ;;  %v4504_v0 = vsel %vm1819_vm6, %v4482_v60, %v4503_v42  ;;  %v4774_v60 = vrot.slane %v8888_v51, %v9763_v50 }
 0x507   :  { %v8975_v31 = vpop.permute.xlu0 %4621  ;;  %v4486_v18 = vrot.slane %v4344_v47, %v9761_v4  ;;  %v4498_v44 = vsel %vm1821_vm7, %v4419_v25, %v4497_v49 }
 0x508   :  { %v4729_v51 = vrot.slane %v8975_v31, %v9763_v50 }
 0x509   :  { %v4491_v62 = vsel %vm1240_vm0, %v4490_v41, %v4486_v18 }
 0x50a   :  { %v4505_v9 = vsel %vm1821_vm7, %v4491_v62, %v4504_v0  ;;  %5037 = vperm.xlu1 %5393, %v4944_v14   ;;  %v4601_v36 = vpop.permute.xlu1 %4600 }
 0x50b   :  { %v8990_v43 = vpop.permute.xlu0 %4669  ;;  %v4506_v53 = vpack.c.b16 %v4505_v9, %v4498_v44  ;;  %v4698_v59 = vrot.slane %v4601_v36, %v9761_v4 }
 0x50c   :  { %v4801_v22 = vrot.slane %v8990_v43, %v9763_v50 }
 0x50d   :  { %5366 = vmatmul.mubr.msk.bf16.vlgmr.msra.gmra.mxu1 %vm1880_vm8, %v4506_v53  ;;  %v4703_v7 = vsel %vm1240_vm0, %v4702_v55, %v4698_v59 }
 0x50e   :  { %5370 = vmatpush3.bf16.msra.mxu1 %v9917_v13  ;;  %v4607_v29 = vpop.permute.xlu1 %4606  ;;  %5371 = vmatprep.mubr.msk.bf16.mxu1 %vm5903_vm9, %v9872_v19 }
 0x50f   :  { %v8994_v33 = vpop.permute.xlu0 %4627  ;;  %5375 = vmatprep.subr.bf16.mxu1 %v9872_v19  ;;  %v4707_v24 = vrot.slane %v4607_v29, %v9761_v4 }
 0x510   :  { %v4738_v56 = vrot.slane %v8994_v33, %v9763_v50 }
 0x511   :  { %v4712_v41 = vsel %vm1240_vm0, %v4711_v23, %v4707_v24 }
 0x512   :  { %v4649_v35 = vpop.permute.xlu1 %4648  ;;  %v4839_v26 = vsel %vm1809_vm1, %v4712_v41, %v4703_v7 }
 0x513   :  { %v8999_v15 = vpop.permute.xlu0 %4675  ;;  %v4770_v47 = vrot.slane %v4649_v35, %v9761_v4 }
 0x514   :  { %v4810_v31 = vrot.slane %v8999_v15, %v9763_v50 }
 0x515   :  { %v4775_v49 = vsel %vm1240_vm0, %v4774_v60, %v4770_v47  ;;  %v5792_v47 = vpop.eup %5791 }
 0x516   :  { %v4655_v5 = vpop.permute.xlu1 %4654 }
 0x517   :  { %v9001_v32 = vpop.permute.xlu0 %4633  ;;  %v4779_v30 = vrot.slane %v4655_v5, %v9761_v4 }
 0x518   :  { %v4747_v62 = vrot.slane %v9001_v32, %v9763_v50 }
 0x519   :  { %v4784_v11 = vsel %vm1240_vm0, %v4783_v21, %v4779_v30 }
 0x51a   :  { %v4613_v12 = vpop.permute.xlu1 %4612  ;;  %v4846_v43 = vsel %vm1809_vm1, %v4784_v11, %v4775_v49  ;;  %v9918_v49 = vld [vmem:[#allocation17_spill] sm:$0xff] }
 0x51b   :  { %v9003_v40 = vpop.permute.xlu0 %4681  ;;  %v4716_v20 = vrot.slane %v4613_v12, %v9761_v4 }
 0x51c   :  { %v4819_v35 = vrot.slane %v9003_v40, %v9763_v50 }
 0x51d   :  { %v4721_v44 = vsel %vm1240_vm0, %v4720_v61, %v4716_v20 }
 0x51e   :  { %v4661_v39 = vpop.permute.xlu1 %4660 }
 0x51f   :  { %v9005_v28 = vpop.permute.xlu0 %4639  ;;  %v4788_v18 = vrot.slane %v4661_v39, %v9761_v4  ;;  %v4840_v39 = vsel %vm1811_vm2, %v4721_v44, %v4839_v26 }
 0x521   :  { %v4793_v53 = vsel %vm1240_vm0, %v4792_v52, %v4788_v18  ;;  %v5794_v52 = vpop.eup %5793 }
 0x522   :  { %v4619_v2 = vpop.permute.xlu1 %4618 }
 0x523   :  { %v9007_v17 = vpop.permute.xlu0 %4687  ;;  %v4725_v42 = vrot.slane %v4619_v2, %v9761_v4  ;;  %v4756_v2 = vrot.slane %v9005_v28, %v9763_v50 }
 0x524   :  { %v4828_v40 = vrot.slane %v9007_v17, %v9763_v50 }
 0x525   :  { %v4730_v15 = vsel %vm1240_vm0, %v4729_v51, %v4725_v42 }
 0x526   :  { %v4667_v27 = vpop.permute.xlu1 %4666  ;;  %v4841_v24 = vsel %vm1813_vm3, %v4730_v15, %v4840_v39 }
 0x527   :  { %v9009_v57 = vpop.permute.xlu0 %4645  ;;  %v4797_v0 = vrot.slane %v4667_v27, %v9761_v4 }
 0x528   :  { %v4765_v23 = vrot.slane %v9009_v57, %v9763_v50 }
 0x529   :  { %v4802_v27 = vsel %vm1240_vm0, %v4801_v22, %v4797_v0 }
 0x52a   :  { %v4625_v10 = vpop.permute.xlu1 %4624 }
 0x52b   :  { %v9011_v16 = vpop.permute.xlu0 %4693  ;;  %v4734_v9 = vrot.slane %v4625_v10, %v9761_v4 }
 0x52e   :  { %v4673_v63 = vpop.permute.xlu1 %4672 }
 0x52f   :  { %v9013_v34 = vpop.permute.xlu0 %4950  ;;  %v4806_v36 = vrot.slane %v4673_v63, %v9761_v4  ;;  %v4847_v63 = vsel %vm1811_vm2, %v4793_v53, %v4846_v43 }
 0x530   :  { %v4848_v30 = vsel %vm1813_vm3, %v4802_v27, %v4847_v63 }
 0x532   :  { %v4631_v37 = vpop.permute.xlu1 %4630 }
 0x533   :  { %v9015_v3 = vpop.permute.xlu0 %4956  ;;  %v4743_v13 = vrot.slane %v4631_v37, %v9761_v4  ;;  %v4739_v37 = vsel %vm1240_vm0, %v4738_v56, %v4734_v9 }
 0x534   :  { %v4842_v21 = vsel %vm1815_vm4, %v4739_v37, %v4841_v24 }
 0x535   :  { %v4748_v28 = vsel %vm1240_vm0, %v4747_v62, %v4743_v13 }
 0x536   :  { %v4679_v8 = vpop.permute.xlu1 %4678  ;;  %v4843_v51 = vsel %vm1817_vm5, %v4748_v28, %v4842_v21 }
 0x537   :  { %v9017_v1 = vpop.permute.xlu0 %4998  ;;  %v4815_v29 = vrot.slane %v4679_v8, %v9761_v4  ;;  %v4811_v8 = vsel %vm1240_vm0, %v4810_v31, %v4806_v36 }
 0x538   :  { %v4849_v61 = vsel %vm1815_vm4, %v4811_v8, %v4848_v30 }
 0x539   :  { %v4820_v59 = vsel %vm1240_vm0, %v4819_v35, %v4815_v29 }
 0x53a   :  { %v4637_v45 = vpop.permute.xlu1 %4636 }
 0x53b   :  { %v9031_v25 = vpop.permute.xlu0 %5004  ;;  %v4752_v5 = vrot.slane %v4637_v45, %v9761_v4  ;;  %v4837_v45 = vrot.slane %v9011_v16, %v9763_v50  ;;  %v4850_v16 = vsel %vm1817_vm5, %v4820_v59, %v4849_v61 }
 0x53d   :  { %v4757_v17 = vsel %vm1240_vm0, %v4756_v2, %v4752_v5 }
 0x53e   :  { %v4685_v14 = vpop.permute.xlu1 %4684  ;;  %v4844_v22 = vsel %vm1819_vm6, %v4757_v17, %v4843_v51  ;;  %v5121_v17 = vrot.slane %v9017_v1, %v9763_v50 }
 0x53f   :  { %v9065_v33 = vpop.permute.xlu0 %4962  ;;  %v4824_v32 = vrot.slane %v4685_v14, %v9761_v4 }
 0x541   :  { %v4829_v55 = vsel %vm1240_vm0, %v4828_v40, %v4824_v32 }
 0x542   :  { %v4643_v12 = vpop.permute.xlu1 %4642  ;;  %v4851_v18 = vsel %vm1819_vm6, %v4829_v55, %v4850_v16 }
 0x543   :  { %v4761_v10 = vrot.slane %v4643_v12, %v9761_v4  ;;  %v9095_v41 = vpop.permute.xlu0 %5010 }
 0x544   :  { %v5139_v61 = vrot.slane %v9095_v41, %v9763_v50 }
 0x545   :  { %v4766_v57 = vsel %vm1240_vm0, %v4765_v23, %v4761_v10  ;;  %v5058_v23 = vrot.slane %v9015_v3, %v9763_v50 }
 0x546   :  { %v4691_v60 = vpop.permute.xlu1 %4690  ;;  %v4845_v56 = vsel %vm1821_vm7, %v4766_v57, %v4844_v22 }
 0x547   :  { %v4833_v20 = vrot.slane %v4691_v60, %v9761_v4  ;;  %v9105_v26 = vpop.permute.xlu0 %4968  ;;  %v5130_v60 = vrot.slane %v9031_v25, %v9763_v50 }
 0x549   :  { %v4838_v7 = vsel %vm1240_vm0, %v4837_v45, %v4833_v20  ;;  %v5049_v45 = vrot.slane %v9013_v34, %v9763_v50  ;;  %v5076_v34 = vrot.slane %v9105_v26, %v9763_v50 }
 0x54a   :  { %v4852_v11 = vsel %vm1821_vm7, %v4838_v7, %v4851_v18  ;;  %v4948_v42 = vpop.permute.xlu1 %4947 }
 0x54b   :  { %v4853_v14 = vpack.c.b16 %v4852_v11, %v4845_v56  ;;  %v9111_v36 = vpop.permute.xlu0 %5016  ;;  %v5045_v28 = vrot.slane %v4948_v42, %v9761_v4 }
 0x54c   :  { %v5148_v1 = vrot.slane %v9111_v36, %v9763_v50 }
 0x54d   :  { %5372 = vmatmul.mubr.msk.bf16.vlgmr.msra.gmra.mxu1 %vm1880_vm8, %v4853_v14  ;;  %v5050_v25 = vsel %vm1240_vm0, %v5049_v45, %v5045_v28 }
 0x54e   :  { %5376 = vmatpush3.bf16.msra.mxu1 %v9918_v49  ;;  %v4954_v31 = vpop.permute.xlu1 %4953  ;;  %5377 = vmatprep.mubr.msk.bf16.mxu1 %vm5903_vm9, %v9872_v19  ;;  %v4197_v0 = vpop.f32.mrf.mxu1 }
 0x54f   :  { %v5253_v62 = vmul.f32 %v5794_v52, %v4197_v0  ;;  %v4975_v35 = vpop.permute.xlu0 %4974  ;;  %v5054_v24 = vrot.slane %v4954_v31, %v9761_v4 }
 0x550   :  { %v5361_v44 = vpop.f32.mrf.mxu1 }
 0x551   :  { %5261 = vst [vmem:[#allocation9] sm:$0xff] %v5253_v62  ;;  %v5059_v3 = vsel %vm1240_vm0, %v5058_v23, %v5054_v24 }
 0x552   :  { %v4996_v9 = vpop.permute.xlu1 %4995  ;;  %v4200_v43 = vpop.f32.mrf.mxu1  ;;  %v5186_v41 = vsel %vm1809_vm1, %v5059_v3, %v5050_v25 }
 0x553   :  { %v5254_v53 = vmul.f32 %v5792_v47, %v4200_v43  ;;  %v5023_v32 = vpop.permute.xlu0 %5022  ;;  %v5117_v55 = vrot.slane %v4996_v9, %v9761_v4  ;;  %v5067_v47 = vrot.slane %v9065_v33, %v9763_v50  ;;  %v5085_v33 = vrot.slane %v4975_v35, %v9763_v50 }
 0x554   :  { %v5362_v13 = vpop.f32.mrf.mxu1  ;;  %v5157_v18 = vrot.slane %v5023_v32, %v9763_v50 }
 0x555   :  { %5262 = vst [vmem:[#allocation9 + $0x8] sm:$0xff] %v5254_v53  ;;  %v5122_v22 = vsel %vm1240_vm0, %v5121_v17, %v5117_v55 }
 0x556   :  { %v5002_v29 = vpop.permute.xlu1 %5001 }
 0x557   :  { %v4981_v39 = vpop.permute.xlu0 %4980  ;;  %v5126_v59 = vrot.slane %v5002_v29, %v9761_v4 }
 0x558   :  { %v5094_v56 = vrot.slane %v4981_v39, %v9763_v50 }
 0x559   :  { %v5131_v52 = vsel %vm1240_vm0, %v5130_v60, %v5126_v59 }
 0x55a   :  { %v4960_v15 = vpop.permute.xlu1 %4959  ;;  %v5193_v26 = vsel %vm1809_vm1, %v5131_v52, %v5122_v22 }
 0x55b   :  { %v5029_v27 = vpop.permute.xlu0 %5028  ;;  %v5063_v21 = vrot.slane %v4960_v15, %v9761_v4 }
 0x55c   :  { %v5166_v62 = vrot.slane %v5029_v27, %v9763_v50 }
 0x55d   :  { %v5068_v11 = vsel %vm1240_vm0, %v5067_v47, %v5063_v21 }
 0x55e   :  { %v5008_v5 = vpop.permute.xlu1 %5007  ;;  %v5187_v53 = vsel %vm1811_vm2, %v5068_v11, %v5186_v41 }
 0x55f   :  { %v4987_v63 = vpop.permute.xlu0 %4986  ;;  %v5135_v57 = vrot.slane %v5008_v5, %v9761_v4 }
 0x560   :  { %v5103_v13 = vrot.slane %v4987_v63, %v9763_v50 }
 0x561   :  { %v5140_v49 = vsel %vm1240_vm0, %v5139_v61, %v5135_v57 }
 0x562   :  { %v4966_v12 = vpop.permute.xlu1 %4965  ;;  %v5194_v5 = vsel %vm1811_vm2, %v5140_v49, %v5193_v26 }
 0x563   :  { %v5035_v8 = vpop.permute.xlu0 %5034  ;;  %v5072_v51 = vrot.slane %v4966_v12, %v9761_v4 }
 0x564   :  { %v5175_v32 = vrot.slane %v5035_v8, %v9763_v50 }
 0x565   :  { %v5077_v44 = vsel %vm1240_vm0, %v5076_v34, %v5072_v51 }
 0x566   :  { %v5014_v2 = vpop.permute.xlu1 %5013 }
 0x567   :  { %v4993_v20 = vpop.permute.xlu0 %4992  ;;  %v5144_v7 = vrot.slane %v5014_v2, %v9761_v4  ;;  %v5188_v2 = vsel %vm1813_vm3, %v5077_v44, %v5187_v53 }
 0x569   :  { %v5149_v29 = vsel %vm1240_vm0, %v5148_v1, %v5144_v7 }
 0x56a   :  { %v4972_v19 = vpop.permute.xlu1 %4971  ;;  %v5195_v63 = vsel %vm1813_vm3, %v5149_v29, %v5194_v5 }
 0x56b   :  { %v5081_v42 = vrot.slane %v4972_v19, %v9761_v4  ;;  %v5041_v35 = vpop.permute.xlu0 %5040  ;;  %v5112_v19 = vrot.slane %v4993_v20, %v9763_v50 }
 0x56d   :  { %v5086_v12 = vsel %vm1240_vm0, %v5085_v33, %v5081_v42 }
 0x56e   :  { %v5020_v10 = vpop.permute.xlu1 %5019  ;;  %v5189_v23 = vsel %vm1815_vm4, %v5086_v12, %v5188_v2 }
 0x56f   :  { %v5153_v14 = vrot.slane %v5020_v10, %v9761_v4 }
 0x571   :  { %v5158_v39 = vsel %vm1240_vm0, %v5157_v18, %v5153_v14 }
 0x572   :  { %v4978_v40 = vpop.permute.xlu1 %4977  ;;  %v5196_v28 = vsel %vm1815_vm4, %v5158_v39, %v5195_v63 }
 0x573   :  { %v5090_v31 = vrot.slane %v4978_v40, %v9761_v4  ;;  %v5184_v40 = vrot.slane %v5041_v35, %v9763_v50 }
 0x575   :  { %v5095_v27 = vsel %vm1240_vm0, %v5094_v56, %v5090_v31 }
 0x576   :  { %v5026_v37 = vpop.permute.xlu1 %5025  ;;  %v5190_v45 = vsel %vm1817_vm5, %v5095_v27, %v5189_v23 }
 0x577   :  { %v5162_v0 = vrot.slane %v5026_v37, %v9761_v4 }
 0x579   :  { %v5167_v10 = vsel %vm1240_vm0, %v5166_v62, %v5162_v0 }
 0x57a   :  { %v4984_v30 = vpop.permute.xlu1 %4983  ;;  %v5197_v17 = vsel %vm1817_vm5, %v5167_v10, %v5196_v28 }
 0x57b   :  { %v5099_v9 = vrot.slane %v4984_v30, %v9761_v4 }
 0x57d   :  { %v5104_v37 = vsel %vm1240_vm0, %v5103_v13, %v5099_v9 }
 0x57e   :  { %v5032_v16 = vpop.permute.xlu1 %5031  ;;  %v5191_v55 = vsel %vm1819_vm6, %v5104_v37, %v5190_v45 }
 0x57f   :  { %v5171_v36 = vrot.slane %v5032_v16, %v9761_v4 }
 0x581   :  { %v5176_v8 = vsel %vm1240_vm0, %v5175_v32, %v5171_v36 }
 0x582   :  { %v4990_v43 = vpop.permute.xlu1 %4989  ;;  %v5198_v50 = vsel %vm1819_vm6, %v5176_v8, %v5197_v17 }
 0x583   :  { %v5108_v15 = vrot.slane %v4990_v43, %v9761_v4 }
 0x585   :  { %v5113_v59 = vsel %vm1240_vm0, %v5112_v19, %v5108_v15 }
 0x586   :  { %v5038_v24 = vpop.permute.xlu1 %5037  ;;  %v5192_v47 = vsel %vm1821_vm7, %v5113_v59, %v5191_v55 }
 0x587   :  { %v5180_v30 = vrot.slane %v5038_v24, %v9761_v4  ;;  %v5796_v4 = vpop.eup %5795 }
 0x588   :  { %v5798_v57 = vpop.eup %5797 }
 0x589   :  { %v5185_v60 = vsel %vm1240_vm0, %v5184_v40, %v5180_v30  ;;  %v5800_v52 = vpop.eup %5799 }
 0x58a   :  { %v5199_v3 = vsel %vm1821_vm7, %v5185_v60, %v5198_v50  ;;  %v5802_v58 = vpop.eup %5801 }
 0x58b   :  { %v5200_v21 = vpack.c.b16 %v5199_v3, %v5192_v47  ;;  %v5804_v7 = vpop.eup %5803 }
 0x58c   :  { %v5806_v46 = vpop.eup %5805 }
 0x58d   :  { %5378 = vmatmul.mubr.msk.bf16.vlgmr.msra.gmra.mxu1 %vm1880_vm8, %v5200_v21 }
 0x5cd   :  { %v4544_v61 = vpop.f32.mrf.mxu1 }
 0x5ce   :  { %v5255_v34 = vmul.f32 %v5796_v4, %v4544_v61 }
 0x5cf   :  { %v5367_v1 = vpop.f32.mrf.mxu1 }
 0x5d0   :  { %5263 = vst [vmem:[#allocation9 + $0x10] sm:$0xff] %v5255_v34 }
 0x5d1   :  { %v4547_v20 = vpop.f32.mrf.mxu1 }
 0x5d2   :  { %v5256_v25 = vmul.f32 %v5798_v57, %v4547_v20 }
 0x5d3   :  { %v5368_v33 = vpop.f32.mrf.mxu1 }
 0x5d4   :  { %5264 = vst [vmem:[#allocation9 + $0x18] sm:$0xff] %v5256_v25 }
 0x60d   :  { %v4891_v51 = vpop.f32.mrf.mxu1 }
 0x60e   :  { %v5257_v16 = vmul.f32 %v5800_v52, %v4891_v51 }
 0x60f   :  { %v5373_v6 = vpop.f32.mrf.mxu1 }
 0x610   :  { %5265 = vst [vmem:[#allocation9 + $0x20] sm:$0xff] %v5257_v16 }
 0x611   :  { %v4894_v41 = vpop.f32.mrf.mxu1 }
 0x612   :  { %v5258_v22 = vmul.f32 %v5802_v58, %v4894_v41 }
 0x613   :  { %v5374_v18 = vpop.f32.mrf.mxu1 }
 0x614   :  { %5266 = vst [vmem:[#allocation9 + $0x28] sm:$0xff] %v5258_v22 }
 0x64d   :  { %v5238_v56 = vpop.f32.mrf.mxu1 }
 0x64e   :  { %v5259_v11 = vmul.f32 %v5804_v7, %v5238_v56 }
 0x64f   :  { %v5379_v54 = vpop.f32.mrf.mxu1 }
 0x650   :  { %5267 = vst [vmem:[#allocation9 + $0x30] sm:$0xff] %v5259_v11 }
 0x651   :  { %v5241_v42 = vpop.f32.mrf.mxu1 }
 0x652   :  { %v5260_v14 = vmul.f32 %v5806_v46, %v5241_v42 }
 0x653   :  { %v5380_v26 = vpop.f32.mrf.mxu1 }
 0x654   :  { %5268 = vst [vmem:[#allocation9 + $0x38] sm:$0xff] %v5260_v14 }
 0x655   :  { %5878 = shalt.err (!%p5875_p5)
}
 0x656   :  { %5280 = dma.vmem_to_hbm [thread:$0]  %s5275_s4, 1024, %s9201_s5, [#allocation5], %s5898_s1, %s5898_s1, %s5899_s8  }
 0x657   :  { %5891 = dma.done.wait [#allocation5], 1024  }
 0x658   :  { %5892 = vsyncadd [#allocation5], 4294966272 }
 0x659   :  { %5284 = vsyncpa [#allocation4], 1 }
 0x65a   :  { %5285 = vsyncpa [#allocation7], 1 }
 0x65b   :  { %5286 = vsyncpa [#allocation5], 1 }

</bundles_post_ra>
